<compile_context>
chip_gen: v5e
topology: v5e:2x2
jax: 0.10.0
libtpu: 0.0.40
codegen_flags: <defaults>
</compile_context>

<pallas_src>
import jax
import jax.numpy as jnp
from jax.experimental import pallas as pl
from jax.experimental.pallas import tpu as pltpu


_VMEM_LIMIT = 48 * 1024 * 1024      # safe on v5e/v6e (128 MiB) and v7x (64 MiB physical)
_TILE_BUDGET = 20 * 1024 * 1024     # accounted per-tile footprint target


# ------------------------------- helpers -----------------------------------

def _round_up(x, m):
    return (x + m - 1) // m * m


def _choose_tile_h(H, bytes_for, budget=_TILE_BUDGET):
    """Largest divisor of H whose per-tile VMEM footprint fits `budget`;
    prefer >= 2 row tiles so the BlockSpec pipeline has steps to overlap."""
    divs = sorted((d for d in range(1, H + 1) if H % d == 0), reverse=True)
    fitting = [d for d in divs if bytes_for(d) <= budget] or [1]
    best = fitting[0]
    if best == H:
        smaller = [d for d in fitting if d < H]
        if smaller:
            best = smaller[0]
    return best


def _conv_tile_h(H, W, cin, cout):
    wpad = _round_up(W + 2, 8)

    def bytes_for(th):
        inp = 2 * 2 * th * W * cin            # bf16 input blocks, double-buffered
        out = 2 * 2 * th * W * cout           # bf16 output block, double-buffered
        xpad = (th + 2) * wpad * cin * 2      # padded staging scratch (bf16)
        z = th * wpad * 3 * cout * 4          # per-band f32 matmul result
        acc = th * W * cout * 4               # f32 accumulator value
        wgt = 2 * 3 * cin * 3 * cout * 2      # bf16 weight, double-buffered
        return inp + out + xpad + z + acc + wgt

    return _choose_tile_h(H, bytes_for)


def _upconv_tile_h(H, W, cin, cout):
    def bytes_for(th):
        inp = 2 * 2 * th * W * cin            # bf16 input, double-buffered
        out = 2 * 2 * th * W * 4 * cout       # (th,2,W,2*cout) bf16, double-buffered
        y = 2 * th * W * 2 * cout * 4         # f32 matmul results
        wgt = 2 * 2 * cin * 2 * cout * 2
        return inp + out + y + wgt

    return _choose_tile_h(H, bytes_for)


def _bn_affine(sum_p, sq_p, count, gamma, beta, eps=1e-5):
    """Training-mode BatchNorm2d (batch stats, biased variance) -> per-channel scale/shift.
    sum_p / sq_p are per-(batch, row-tile) partial sums from the conv kernels."""
    axes = tuple(range(sum_p.ndim - 1))
    s = jnp.sum(sum_p, axis=axes)
    q = jnp.sum(sq_p, axis=axes)
    mean = s / count
    # TODO(synk): E[x^2]-E[x]^2 in f32 can cancel for very large feature maps; a Welford /
    # two-pass variant would be more robust.
    var = jnp.maximum(q / count - mean * mean, 0.0)
    scale = gamma / jnp.sqrt(var + eps)
    shift = beta - mean * scale
    return scale.astype(jnp.float32), shift.astype(jnp.float32)


# -------------------------- in-kernel building blocks -----------------------

def _stage_padded(dst, c0, c1, main_ref, top_ref, bot_ref, r, nrt, th, width,
                  scale=None, shift=None):
    """Stage the tile rows + 1-row halos into channel slice [c0:c1) of the padded VMEM
    scratch, optionally applying the previous layer's BN scale/shift + ReLU in f32.
    Out-of-image halo rows are zeroed (== Conv2d zero padding)."""

    def act(v):
        if scale is None:
            return v.astype(dst.dtype)
        v = jnp.maximum(v.astype(jnp.float32) * scale + shift, 0.0)
        return v.astype(dst.dtype)

    zrow = jnp.zeros((1, width, c1 - c0), dst.dtype)

    dst[1:th + 1, 1:width + 1, c0:c1] = act(main_ref[0])

    @pl.when(r == 0)
    def _():
        dst[0:1, 1:width + 1, c0:c1] = zrow

    @pl.when(r > 0)
    def _():
        dst[0:1, 1:width + 1, c0:c1] = act(top_ref[0])

    @pl.when(r == nrt - 1)
    def _():
        dst[th + 1:th + 2, 1:width + 1, c0:c1] = zrow

    @pl.when(r < nrt - 1)
    def _():
        dst[th + 1:th + 2, 1:width + 1, c0:c1] = act(bot_ref[0])


def _zero_pad_columns(xpad_ref, th, width):
    """Zero the 1-px left pad column and the right pad/alignment columns."""
    ctot = xpad_ref.shape[2]
    wpad = xpad_ref.shape[1]
    xpad_ref[:, 0:1, :] = jnp.zeros((th + 2, 1, ctot), xpad_ref.dtype)
    xpad_ref[:, width + 1:, :] = jnp.zeros((th + 2, wpad - (width + 1), ctot),
                                           xpad_ref.dtype)


def _conv3x3_bands(xpad_ref, w_ref, th, width, cout):
    """3x3 conv as 3 per-dy band matmuls (bf16 MXU, f32 results); the dx shifts are cheap
    f32 output slices. Returns (th, width, cout) f32 (no bias)."""
    wpad = xpad_ref.shape[1]
    cin = xpad_ref.shape[2]
    y = None
    for dy in range(3):
        band = xpad_ref[dy:dy + th, :, :].reshape(th * wpad, cin)
        z = jnp.dot(band, w_ref[dy], preferred_element_type=jnp.float32)
        z = z.reshape(th, wpad, 3 * cout)
        for dx in range(3):
            c = z[:, dx:dx + width, dx * cout:(dx + 1) * cout]
            y = c if y is None else y + c
    return y


def _store_with_stats(y, o_ref, sum_ref, sq_ref):
    """Store the conv tile (bf16) and emit this tile's partial BN sum / sumsq (f32)."""
    cout = y.shape[-1]
    o_ref[0] = y.astype(o_ref.dtype)
    sum_ref[...] = jnp.sum(y, axis=(0, 1)).reshape(1, 1, 1, cout)
    sq_ref[...] = jnp.sum(y * y, axis=(0, 1)).reshape(1, 1, 1, cout)


# ------------------------------ Pallas kernels ------------------------------

def _conv3x3_dual_kernel(xa_ref, xat_ref, xab_ref, xb_ref, xbt_ref, xbb_ref,
                         w_ref, b_ref, o_ref, sum_ref, sq_ref, xpad_ref):
    # 3x3 conv (stride 1, pad 1) over the *virtual* channel concat [xa, xb]: both operands
    # are staged into one padded scratch and one unsplit weight is used.
    r = pl.program_id(1)
    nrt = pl.num_programs(1)
    th, width, cout = o_ref.shape[1], o_ref.shape[2], o_ref.shape[3]
    ca = xa_ref.shape[3]
    ctot = xpad_ref.shape[2]

    _zero_pad_columns(xpad_ref, th, width)
    _stage_padded(xpad_ref, 0, ca, xa_ref, xat_ref, xab_ref, r, nrt, th, width)
    _stage_padded(xpad_ref, ca, ctot, xb_ref, xbt_ref, xbb_ref, r, nrt, th, width)

    y = _conv3x3_bands(xpad_ref, w_ref, th, width, cout) + b_ref[...].reshape(1, 1, cout)
    _store_with_stats(y, o_ref, sum_ref, sq_ref)


def _conv3x3_preact_kernel(x_ref, xt_ref, xbm_ref, w_ref, b_ref, sc_ref, sh_ref,
                           o_ref, sum_ref, sq_ref, xpad_ref):
    # 3x3 conv whose input is relu(scale*x + shift) -- the previous BN+ReLU fused into
    # the staging -- with partial BN-stats epilogue.
    r = pl.program_id(1)
    nrt = pl.num_programs(1)
    th, width, cout = o_ref.shape[1], o_ref.shape[2], o_ref.shape[3]
    cin = x_ref.shape[3]

    _zero_pad_columns(xpad_ref, th, width)
    scale = sc_ref[...].reshape(1, 1, cin)
    shift = sh_ref[...].reshape(1, 1, cin)
    _stage_padded(xpad_ref, 0, cin, x_ref, xt_ref, xbm_ref, r, nrt, th, width,
                  scale, shift)

    y = _conv3x3_bands(xpad_ref, w_ref, th, width, cout) + b_ref[...].reshape(1, 1, cout)
    _store_with_stats(y, o_ref, sum_ref, sq_ref)


def _upconv2x2_kernel(x_ref, w_ref, b_ref, o_ref):
    # ConvTranspose2d(k=2, s=2): out[2i+di, 2j+dj, co] = sum_ci x[i,j,ci]*W[di,dj,ci,co]+b.
    # Per di, one wide matmul (dj folded into the N/lane dim) + one lane-dense store; the
    # (N, H, 2, W, 2*Cout) block reshapes for free into the 2x-upsampled NHWC tensor.
    th, width, cin = x_ref.shape[1], x_ref.shape[2], x_ref.shape[3]
    cout2 = w_ref.shape[2]               # 2 * Cout
    x2 = x_ref[0].reshape(th * width, cin)
    bias = b_ref[...]                    # (1, 2*Cout) f32
    for di in range(2):
        y = jnp.dot(x2, w_ref[di], preferred_element_type=jnp.float32) + bias
        o_ref[0, :, di, :, :] = y.reshape(th, width, cout2).astype(o_ref.dtype)


def _bn_relu_kernel(y_ref, sc_ref, sh_ref, o_ref):
    y = y_ref[...].astype(jnp.float32)
    s = sc_ref[...].reshape(1, 1, 1, -1)
    b = sh_ref[...].reshape(1, 1, 1, -1)
    o_ref[...] = jnp.maximum(y * s + b, 0.0).astype(o_ref.dtype)


# ------------------------------ op wrappers ---------------------------------

def _row_specs(tile_h, W, C, H):
    """Main tile rows + 1-row top/bottom halo BlockSpecs (clamped at image edges)."""
    main = pl.BlockSpec((1, tile_h, W, C), lambda n, r: (n, r, 0, 0))
    top = pl.BlockSpec((1, 1, W, C),
                       lambda n, r: (n, jnp.maximum(r * tile_h - 1, 0), 0, 0))
    bot = pl.BlockSpec((1, 1, W, C),
                       lambda n, r: (n, jnp.minimum((r + 1) * tile_h, H - 1), 0, 0))
    return main, top, bot


def _dx_stacked_weight(w):
    """(3, 3, Cin, Cout) -> (3, Cin, 3*Cout) with dx folded into the N/lane dim."""
    k, _, cin, cout = w.shape
    return jnp.transpose(w, (0, 2, 1, 3)).reshape(k, cin, 3 * cout).astype(jnp.bfloat16)


def conv3x3_dual_stats(xa, xb, w, b, tile_h):
    """3x3 conv over virtual concat [xa, xb] (bf16 in/out);
    returns (y_bf16, partial_sum(N,nrt,1,C), partial_sumsq(N,nrt,1,C))."""
    N, H, W, Ca = xa.shape
    Cb = xb.shape[-1]
    Cin = Ca + Cb
    Cout = w.shape[-1]
    nrt = H // tile_h
    wpad = _round_up(W + 2, 8)
    w_band = _dx_stacked_weight(w)
    a_main, a_top, a_bot = _row_specs(tile_h, W, Ca, H)
    b_main, b_top, b_bot = _row_specs(tile_h, W, Cb, H)
    return pl.pallas_call(
        _conv3x3_dual_kernel,
        out_shape=(jax.ShapeDtypeStruct((N, H, W, Cout), jnp.bfloat16),
                   jax.ShapeDtypeStruct((N, nrt, 1, Cout), jnp.float32),
                   jax.ShapeDtypeStruct((N, nrt, 1, Cout), jnp.float32)),
        grid=(N, nrt),
        in_specs=[
            a_main, a_top, a_bot,
            b_main, b_top, b_bot,
            pl.BlockSpec((3, Cin, 3 * Cout), lambda n, r: (0, 0, 0)),
            pl.BlockSpec((1, Cout), lambda n, r: (0, 0)),
        ],
        out_specs=(
            pl.BlockSpec((1, tile_h, W, Cout), lambda n, r: (n, r, 0, 0)),
            pl.BlockSpec((1, 1, 1, Cout), lambda n, r: (n, r, 0, 0)),
            pl.BlockSpec((1, 1, 1, Cout), lambda n, r: (n, r, 0, 0)),
        ),
        scratch_shapes=[pltpu.VMEM((tile_h + 2, wpad, Cin), jnp.bfloat16)],
        compiler_params=pltpu.CompilerParams(
            dimension_semantics=("parallel", "parallel"),
            vmem_limit_bytes=_VMEM_LIMIT),
    )(xa, xa, xa, xb, xb, xb, w_band, b.reshape(1, Cout).astype(jnp.float32))


def conv3x3_preact_stats(x, w, b, pre_scale, pre_shift, tile_h):
    """3x3 conv of relu(pre_scale*x + pre_shift); returns (y_bf16, partial sum, sumsq)."""
    N, H, W, Cin = x.shape
    Cout = w.shape[-1]
    nrt = H // tile_h
    wpad = _round_up(W + 2, 8)
    w_band = _dx_stacked_weight(w)
    x_main, x_top, x_bot = _row_specs(tile_h, W, Cin, H)
    return pl.pallas_call(
        _conv3x3_preact_kernel,
        out_shape=(jax.ShapeDtypeStruct((N, H, W, Cout), jnp.bfloat16),
                   jax.ShapeDtypeStruct((N, nrt, 1, Cout), jnp.float32),
                   jax.ShapeDtypeStruct((N, nrt, 1, Cout), jnp.float32)),
        grid=(N, nrt),
        in_specs=[
            x_main, x_top, x_bot,
            pl.BlockSpec((3, Cin, 3 * Cout), lambda n, r: (0, 0, 0)),
            pl.BlockSpec((1, Cout), lambda n, r: (0, 0)),
            pl.BlockSpec((1, Cin), lambda n, r: (0, 0)),
            pl.BlockSpec((1, Cin), lambda n, r: (0, 0)),
        ],
        out_specs=(
            pl.BlockSpec((1, tile_h, W, Cout), lambda n, r: (n, r, 0, 0)),
            pl.BlockSpec((1, 1, 1, Cout), lambda n, r: (n, r, 0, 0)),
            pl.BlockSpec((1, 1, 1, Cout), lambda n, r: (n, r, 0, 0)),
        ),
        scratch_shapes=[pltpu.VMEM((tile_h + 2, wpad, Cin), jnp.bfloat16)],
        compiler_params=pltpu.CompilerParams(
            dimension_semantics=("parallel", "parallel"),
            vmem_limit_bytes=_VMEM_LIMIT),
    )(x, x, x, w_band, b.reshape(1, Cout).astype(jnp.float32),
      pre_scale.reshape(1, Cin).astype(jnp.float32),
      pre_shift.reshape(1, Cin).astype(jnp.float32))


def conv_transpose2x2(x, w, b):
    """ConvTranspose2d(kernel=2, stride=2). x:(N,H,W,Cin), w:(2,2,Cin,Cout) -> (N,2H,2W,Cout) bf16."""
    N, H, W, Cin = x.shape
    Cout = w.shape[-1]
    x = x.astype(jnp.bfloat16)
    # dj folded into the lane dim: w_cat[di, ci, dj*Cout+co] = w[di, dj, ci, co]
    w_cat = jnp.transpose(w, (0, 2, 1, 3)).reshape(2, Cin, 2 * Cout).astype(jnp.bfloat16)
    b_cat = jnp.concatenate([b, b]).reshape(1, 2 * Cout).astype(jnp.float32)
    tile_h = _upconv_tile_h(H, W, Cin, Cout)
    out = pl.pallas_call(
        _upconv2x2_kernel,
        out_shape=jax.ShapeDtypeStruct((N, H, 2, W, 2 * Cout), jnp.bfloat16),
        grid=(N, H // tile_h),
        in_specs=[
            pl.BlockSpec((1, tile_h, W, Cin), lambda n, r: (n, r, 0, 0)),
            pl.BlockSpec((2, Cin, 2 * Cout), lambda n, r: (0, 0, 0)),
            pl.BlockSpec((1, 2 * Cout), lambda n, r: (0, 0)),
        ],
        out_specs=pl.BlockSpec((1, tile_h, 2, W, 2 * Cout),
                               lambda n, r: (n, r, 0, 0, 0)),
        compiler_params=pltpu.CompilerParams(
            dimension_semantics=("parallel", "parallel"),
            vmem_limit_bytes=_VMEM_LIMIT),
    )(x, w_cat, b_cat)
    # (N, H, 2, W, 2, Cout) row-major == (N, 2H, 2W, Cout): pure relabeling reshape.
    return out.reshape(N, 2 * H, 2 * W, Cout)


def bn_relu(y, scale, shift, tile_h):
    """Final BN (precomputed affine) + ReLU. f32 output to match the PyTorch boundary."""
    # TODO(synk): emit bf16 here (or fuse into a downstream consumer) when the caller
    # doesn't need f32 -- this pass is purely HBM-write bound.
    N, H, W, C = y.shape
    return pl.pallas_call(
        _bn_relu_kernel,
        out_shape=jax.ShapeDtypeStruct((N, H, W, C), jnp.float32),
        grid=(N, H // tile_h),
        in_specs=[
            pl.BlockSpec((1, tile_h, W, C), lambda n, r: (n, r, 0, 0)),
            pl.BlockSpec((1, C), lambda n, r: (0, 0)),
            pl.BlockSpec((1, C), lambda n, r: (0, 0)),
        ],
        out_specs=pl.BlockSpec((1, tile_h, W, C), lambda n, r: (n, r, 0, 0)),
        compiler_params=pltpu.CompilerParams(
            dimension_semantics=("parallel", "parallel"),
            vmem_limit_bytes=_VMEM_LIMIT),
    )(y, scale.reshape(1, C), shift.reshape(1, C))


# ------------------------------ module glue ---------------------------------

def double_conv_fused(xa, xb, p):
    """DoubleConv over the virtual channel concat [xa, xb] (order = xa then xb)."""
    # TODO(synk): nn.Dropout branch not implemented (module constructed with p_dropout=None).
    assert xa.shape[:3] == xb.shape[:3]
    N, H, W, Ca = xa.shape
    Cb = xb.shape[-1]
    Cmid = p['w1'].shape[-1]
    xa = xa.astype(jnp.bfloat16)
    xb = xb.astype(jnp.bfloat16)
    count = float(N * H * W)

    tile_h1 = _conv_tile_h(H, W, Ca + Cb, Cmid)
    y1, s1, q1 = conv3x3_dual_stats(xa, xb, p['w1'], p['b1'], tile_h1)
    sc1, sh1 = _bn_affine(s1, q1, count, p['g1'], p['be1'])

    tile_h2 = _conv_tile_h(H, W, Cmid, Cmid)
    y2, s2, q2 = conv3x3_preact_stats(y1, p['w2'], p['b2'], sc1, sh1, tile_h2)
    sc2, sh2 = _bn_affine(s2, q2, count, p['g2'], p['be2'])

    return bn_relu(y2, sc2, sh2, tile_h2)


def upblock_forward(params, x_nchw, skip_nchw):
    """Matches UpBlock.forward (training-mode BatchNorm). NCHW in/out like PyTorch."""
    # TODO(synk): BatchNorm running-stat buffers (momentum update / eval mode) not modeled.
    x = jnp.transpose(x_nchw, (0, 2, 3, 1))
    skip = jnp.transpose(skip_nchw, (0, 2, 3, 1)).astype(jnp.bfloat16)
    if x.shape[-1] == skip.shape[-1]:
        # special path: up_special, concat [x_up, skip], conv_special
        xu = conv_transpose2x2(x, params['up_special_w'], params['up_special_b'])
        out = double_conv_fused(xu, skip, params['conv_special'])
    else:
        # general path: up, [pad], concat [skip, x_up], conv
        xu = conv_transpose2x2(x, params['up_w'], params['up_b'])
        diffY = skip.shape[1] - xu.shape[1]
        diffX = skip.shape[2] - xu.shape[2]
        if diffY != 0 or diffX != 0:
            xu = jnp.pad(xu, ((0, 0),
                              (diffY // 2, diffY - diffY // 2),
                              (diffX // 2, diffX - diffX // 2),
                              (0, 0)))
        out = double_conv_fused(skip, xu, params['conv'])
    return jnp.transpose(out, (0, 3, 1, 2))


def init_upblock_params(key, in_ch, out_ch):
    ks = jax.random.split(key, 8)

    def w(k, shape):
        return 0.1 * jax.random.normal(k, shape, jnp.float32)

    def dc(kA, kB, cin, cout):
        # Conv2d weight (Cout, Cin, 3, 3) -> kernel layout (3, 3, Cin, Cout)
        return dict(
            w1=jnp.transpose(w(kA, (cout, cin, 3, 3)), (2, 3, 1, 0)),
            b1=w(jax.random.fold_in(kA, 1), (cout,)),
            g1=jnp.ones((cout,), jnp.float32),     # BatchNorm weight init (PyTorch: 1)
            be1=jnp.zeros((cout,), jnp.float32),   # BatchNorm bias init (PyTorch: 0)
            w2=jnp.transpose(w(kB, (cout, cout, 3, 3)), (2, 3, 1, 0)),
            b2=w(jax.random.fold_in(kB, 1), (cout,)),
            g2=jnp.ones((cout,), jnp.float32),
            be2=jnp.zeros((cout,), jnp.float32),
        )

    # ConvTranspose2d weight (Cin, Cout, 2, 2) -> kernel layout (2, 2, Cin, Cout)
    return dict(
        up_w=jnp.transpose(w(ks[0], (in_ch, in_ch // 2, 2, 2)), (2, 3, 0, 1)),
        up_b=w(ks[1], (in_ch // 2,)),
        up_special_w=jnp.transpose(w(ks[2], (in_ch, in_ch, 2, 2)), (2, 3, 0, 1)),
        up_special_b=w(ks[3], (in_ch,)),
        conv=dc(ks[4], ks[5], in_ch, out_ch),
        conv_special=dc(ks[6], ks[7], in_ch * 2, in_ch),
    )


if __name__ == "__main__":
    key = jax.random.PRNGKey(0)
    k_p, k_x, k_s1, k_s2 = jax.random.split(key, 4)

    in_ch, out_ch = 4, 4
    N, H, W = 2, 8, 8

    params = init_upblock_params(k_p, in_ch, out_ch)

    x = jax.random.normal(k_x, (N, in_ch, H, W), jnp.float32)               # NCHW
    skip_general = jax.random.normal(k_s1, (N, in_ch // 2, 2 * H, 2 * W), jnp.float32)
    skip_special = jax.random.normal(k_s2, (N, in_ch, 2 * H, 2 * W), jnp.float32)

    fwd = jax.jit(upblock_forward)

    # General path: up (in_ch -> in_ch//2), concat [skip, x_up], DoubleConv(in_ch, out_ch)
    out_general = jax.block_until_ready(fwd(params, x, skip_general))
    # Special path: up_special (in_ch -> in_ch), concat [x_up, skip], DoubleConv(2*in_ch, in_ch)
    out_special = jax.block_until_ready(fwd(params, x, skip_special))

    assert out_general.shape == (N, out_ch, 2 * H, 2 * W), out_general.shape
    assert out_special.shape == (N, in_ch, 2 * H, 2 * W), out_special.shape
    assert bool(jnp.all(jnp.isfinite(out_general))) and bool(jnp.all(jnp.isfinite(out_special)))

    print("KERNEL_OK")
</pallas_src>

<mosaic_0001>
module attributes {stable_mosaic.version = 11 : i64} {
  func.func @_upconv2x2_kernel(%arg0: i32, %arg1: i32, %arg2: memref<1x4x8x4xbf16, #tpu.memory_space<vmem>>, %arg3: memref<2x4x4xbf16, #tpu.memory_space<vmem>>, %arg4: memref<1x4xf32, #tpu.memory_space<vmem>>, %arg5: memref<1x4x2x8x4xbf16, #tpu.memory_space<vmem>>) attributes {dimension_semantics = [#tpu.dimension_semantics<parallel>, #tpu.dimension_semantics<parallel>], iteration_bounds = array<i64: 2, 2>, scalar_prefetch = 0 : i64, scratch_operands = 0 : i64, tpu.core_type = #tpu.core_type<tc>, window_params = [{transform_indices = @transform_0, window_bounds = array<i64: 1, 4, 8, 4>}, {pipeline_mode = #tpu.pipeline_mode<synchronous>, transform_indices = @transform_1, window_bounds = array<i64: 2, 4, 4>}, {pipeline_mode = #tpu.pipeline_mode<synchronous>, transform_indices = @transform_2, window_bounds = array<i64: 1, 4>}, {transform_indices = @transform_3, window_bounds = array<i64: 1, 4, 2, 8, 4>}]} {
    %c0 = arith.constant 0 : index
    %c0_0 = arith.constant 0 : index
    %c0_1 = arith.constant 0 : index
    %c0_2 = arith.constant 0 : index
    %0 = vector.load %arg2[%c0, %c0_0, %c0_1, %c0_2] : memref<1x4x8x4xbf16, #tpu.memory_space<vmem>>, vector<1x4x8x4xbf16>
    %1 = vector.shape_cast %0 : vector<1x4x8x4xbf16> to vector<4x8x4xbf16>
    %2 = vector.shape_cast %1 : vector<4x8x4xbf16> to vector<32x4xbf16>
    %c0_3 = arith.constant 0 : index
    %c0_4 = arith.constant 0 : index
    %3 = vector.load %arg4[%c0_3, %c0_4] : memref<1x4xf32, #tpu.memory_space<vmem>>, vector<1x4xf32>
    %c0_5 = arith.constant 0 : index
    %c0_6 = arith.constant 0 : index
    %c0_7 = arith.constant 0 : index
    %4 = vector.load %arg3[%c0_5, %c0_6, %c0_7] : memref<2x4x4xbf16, #tpu.memory_space<vmem>>, vector<1x4x4xbf16>
    %5 = vector.shape_cast %4 : vector<1x4x4xbf16> to vector<4x4xbf16>
    %cst = arith.constant dense<0.000000e+00> : vector<32x4xf32>
    %6 = tpu.matmul %2, %5, %cst {dimension_numbers = #tpu.dot_dimension_numbers<[1], [0], [0], [1], [0, 0, 1, 1], [], []>} : vector<32x4xbf16>, vector<4x4xbf16>, vector<32x4xf32> -> vector<32x4xf32>
    %7 = vector.broadcast %3 : vector<1x4xf32> to vector<32x4xf32>
    %8 = arith.addf %6, %7 : vector<32x4xf32>
    %9 = vector.shape_cast %8 : vector<32x4xf32> to vector<4x8x4xf32>
    %10 = arith.truncf %9 : vector<4x8x4xf32> to vector<4x8x4xbf16>
    %c0_8 = arith.constant 0 : index
    %c0_9 = arith.constant 0 : index
    %c0_10 = arith.constant 0 : index
    %c0_11 = arith.constant 0 : index
    %c0_12 = arith.constant 0 : index
    %11 = vector.load %arg5[%c0_8, %c0_9, %c0_10, %c0_11, %c0_12] : memref<1x4x2x8x4xbf16, #tpu.memory_space<vmem>>, vector<1x4x1x8x4xbf16>
    %12 = vector.shape_cast %11 : vector<1x4x1x8x4xbf16> to vector<4x8x4xbf16>
    %13 = vector.shape_cast %10 : vector<4x8x4xbf16> to vector<1x4x1x8x4xbf16>
    tpu.vector_store %arg5[%c0_8, %c0_9, %c0_10, %c0_11, %c0_12], %13 {strides = array<i32>} : memref<1x4x2x8x4xbf16, #tpu.memory_space<vmem>>, vector<1x4x1x8x4xbf16>,
    %c1 = arith.constant 1 : index
    %c0_13 = arith.constant 0 : index
    %c0_14 = arith.constant 0 : index
    %14 = vector.load %arg3[%c1, %c0_13, %c0_14] : memref<2x4x4xbf16, #tpu.memory_space<vmem>>, vector<1x4x4xbf16>
    %15 = vector.shape_cast %14 : vector<1x4x4xbf16> to vector<4x4xbf16>
    %cst_15 = arith.constant dense<0.000000e+00> : vector<32x4xf32>
    %16 = tpu.matmul %2, %15, %cst_15 {dimension_numbers = #tpu.dot_dimension_numbers<[1], [0], [0], [1], [0, 0, 1, 1], [], []>} : vector<32x4xbf16>, vector<4x4xbf16>, vector<32x4xf32> -> vector<32x4xf32>
    %17 = vector.broadcast %3 : vector<1x4xf32> to vector<32x4xf32>
    %18 = arith.addf %16, %17 : vector<32x4xf32>
    %19 = vector.shape_cast %18 : vector<32x4xf32> to vector<4x8x4xf32>
    %20 = arith.truncf %19 : vector<4x8x4xf32> to vector<4x8x4xbf16>
    %c0_16 = arith.constant 0 : index
    %c0_17 = arith.constant 0 : index
    %c1_18 = arith.constant 1 : index
    %c0_19 = arith.constant 0 : index
    %c0_20 = arith.constant 0 : index
    %21 = vector.load %arg5[%c0_16, %c0_17, %c1_18, %c0_19, %c0_20] : memref<1x4x2x8x4xbf16, #tpu.memory_space<vmem>>, vector<1x4x1x8x4xbf16>
    %22 = vector.shape_cast %21 : vector<1x4x1x8x4xbf16> to vector<4x8x4xbf16>
    %23 = vector.shape_cast %20 : vector<4x8x4xbf16> to vector<1x4x1x8x4xbf16>
    tpu.vector_store %arg5[%c0_16, %c0_17, %c1_18, %c0_19, %c0_20], %23 {strides = array<i32>} : memref<1x4x2x8x4xbf16, #tpu.memory_space<vmem>>, vector<1x4x1x8x4xbf16>,
    return
  }
  func.func @transform_0(%arg0: i32, %arg1: i32) -> (i32, i32, i32, i32) {
    %c0_i32 = arith.constant 0 : i32
    %c0_i32_0 = arith.constant 0 : i32
    %c0_i32_1 = arith.constant 0 : i32
    return %arg0, %arg1, %c0_i32, %c0_i32_0 : i32, i32, i32, i32
  }
  func.func @transform_1(%arg0: i32, %arg1: i32) -> (i32, i32, i32) {
    %c0_i32 = arith.constant 0 : i32
    %c0_i32_0 = arith.constant 0 : i32
    %c0_i32_1 = arith.constant 0 : i32
    %c0_i32_2 = arith.constant 0 : i32
    return %c0_i32, %c0_i32_0, %c0_i32_1 : i32, i32, i32
  }
  func.func @transform_2(%arg0: i32, %arg1: i32) -> (i32, i32) {
    %c0_i32 = arith.constant 0 : i32
    %c0_i32_0 = arith.constant 0 : i32
    %c0_i32_1 = arith.constant 0 : i32
    return %c0_i32, %c0_i32_0 : i32, i32
  }
  func.func @transform_3(%arg0: i32, %arg1: i32) -> (i32, i32, i32, i32, i32) {
    %c0_i32 = arith.constant 0 : i32
    %c0_i32_0 = arith.constant 0 : i32
    %c0_i32_1 = arith.constant 0 : i32
    %c0_i32_2 = arith.constant 0 : i32
    return %arg0, %arg1, %c0_i32, %c0_i32_0, %c0_i32_1 : i32, i32, i32, i32, i32
  }
}

module attributes {stable_mosaic.version = 11 : i64} {
  func.func @_conv3x3_dual_kernel(%arg0: i32, %arg1: i32, %arg2: memref<1x8x16x2xbf16, #tpu.memory_space<vmem>>, %arg3: memref<1x1x16x2xbf16, #tpu.memory_space<vmem>>, %arg4: memref<1x1x16x2xbf16, #tpu.memory_space<vmem>>, %arg5: memref<1x8x16x2xbf16, #tpu.memory_space<vmem>>, %arg6: memref<1x1x16x2xbf16, #tpu.memory_space<vmem>>, %arg7: memref<1x1x16x2xbf16, #tpu.memory_space<vmem>>, %arg8: memref<3x4x12xbf16, #tpu.memory_space<vmem>>, %arg9: memref<1x4xf32, #tpu.memory_space<vmem>>, %arg10: memref<1x8x16x4xbf16, #tpu.memory_space<vmem>>, %arg11: memref<1x1x1x4xf32, #tpu.memory_space<vmem>>, %arg12: memref<1x1x1x4xf32, #tpu.memory_space<vmem>>, %arg13: memref<10x24x4xbf16, #tpu.memory_space<vmem>>) attributes {dimension_semantics = [#tpu.dimension_semantics<parallel>, #tpu.dimension_semantics<parallel>], iteration_bounds = array<i64: 2, 2>, scalar_prefetch = 0 : i64, scratch_operands = 1 : i64, tpu.core_type = #tpu.core_type<tc>, window_params = [{transform_indices = @transform_0, window_bounds = array<i64: 1, 8, 16, 2>}, {transform_indices = @transform_1, window_bounds = array<i64: 1, 1, 16, 2>}, {transform_indices = @transform_2, window_bounds = array<i64: 1, 1, 16, 2>}, {transform_indices = @transform_3, window_bounds = array<i64: 1, 8, 16, 2>}, {transform_indices = @transform_4, window_bounds = array<i64: 1, 1, 16, 2>}, {transform_indices = @transform_5, window_bounds = array<i64: 1, 1, 16, 2>}, {pipeline_mode = #tpu.pipeline_mode<synchronous>, transform_indices = @transform_6, window_bounds = array<i64: 3, 4, 12>}, {pipeline_mode = #tpu.pipeline_mode<synchronous>, transform_indices = @transform_7, window_bounds = array<i64: 1, 4>}, {transform_indices = @transform_8, window_bounds = array<i64: 1, 8, 16, 4>}, {transform_indices = @transform_9, window_bounds = array<i64: 1, 1, 1, 4>}, {transform_indices = @transform_10, window_bounds = array<i64: 1, 1, 1, 4>}]} {
    %cst = arith.constant 0.000000e+00 : bf16
    %0 = vector.broadcast %cst : bf16 to vector<10x1x4xbf16>
    %c0 = arith.constant 0 : index
    %c0_0 = arith.constant 0 : index
    %c0_1 = arith.constant 0 : index
    %1 = vector.load %arg13[%c0, %c0_0, %c0_1] : memref<10x24x4xbf16, #tpu.memory_space<vmem>>, vector<10x1x4xbf16>
    tpu.vector_store %arg13[%c0, %c0_0, %c0_1], %0 {strides = array<i32>} : memref<10x24x4xbf16, #tpu.memory_space<vmem>>, vector<10x1x4xbf16>,
    %cst_2 = arith.constant 0.000000e+00 : bf16
    %2 = vector.broadcast %cst_2 : bf16 to vector<10x7x4xbf16>
    %c0_3 = arith.constant 0 : index
    %c17 = arith.constant 17 : index
    %c0_4 = arith.constant 0 : index
    %3 = vector.load %arg13[%c0_3, %c17, %c0_4] : memref<10x24x4xbf16, #tpu.memory_space<vmem>>, vector<10x7x4xbf16>
    tpu.vector_store %arg13[%c0_3, %c17, %c0_4], %2 {strides = array<i32>} : memref<10x24x4xbf16, #tpu.memory_space<vmem>>, vector<10x7x4xbf16>,
    %cst_5 = arith.constant 0.000000e+00 : bf16
    %4 = vector.broadcast %cst_5 : bf16 to vector<1x16x2xbf16>
    %c0_6 = arith.constant 0 : index
    %c0_7 = arith.constant 0 : index
    %c0_8 = arith.constant 0 : index
    %c0_9 = arith.constant 0 : index
    %5 = vector.load %arg2[%c0_6, %c0_7, %c0_8, %c0_9] : memref<1x8x16x2xbf16, #tpu.memory_space<vmem>>, vector<1x8x16x2xbf16>
    %6 = vector.shape_cast %5 : vector<1x8x16x2xbf16> to vector<8x16x2xbf16>
    %c1 = arith.constant 1 : index
    %c1_10 = arith.constant 1 : index
    %c0_11 = arith.constant 0 : index
    %7 = vector.load %arg13[%c1, %c1_10, %c0_11] : memref<10x24x4xbf16, #tpu.memory_space<vmem>>, vector<8x16x2xbf16>
    tpu.vector_store %arg13[%c1, %c1_10, %c0_11], %6 {strides = array<i32>} : memref<10x24x4xbf16, #tpu.memory_space<vmem>>, vector<8x16x2xbf16>,
    %c0_i32 = arith.constant 0 : i32
    %8 = arith.cmpi eq, %arg1, %c0_i32 : i32
    %9 = arith.extui %8 : i1 to i32
    %c0_i32_12 = arith.constant 0 : i32
    %10 = arith.cmpi ne, %9, %c0_i32_12 : i32
    scf.if %10 {
      %c0_70 = arith.constant 0 : index
      %c1_71 = arith.constant 1 : index
      %c0_72 = arith.constant 0 : index
      %86 = vector.load %arg13[%c0_70, %c1_71, %c0_72] : memref<10x24x4xbf16, #tpu.memory_space<vmem>>, vector<1x16x2xbf16>
      tpu.vector_store %arg13[%c0_70, %c1_71, %c0_72], %4 {strides = array<i32>} : memref<10x24x4xbf16, #tpu.memory_space<vmem>>, vector<1x16x2xbf16>,
    } else {
    }
    %c0_i32_13 = arith.constant 0 : i32
    %11 = arith.cmpi sgt, %arg1, %c0_i32_13 : i32
    %12 = arith.extui %11 : i1 to i32
    %c0_i32_14 = arith.constant 0 : i32
    %13 = arith.cmpi ne, %12, %c0_i32_14 : i32
    scf.if %13 {
      %c0_70 = arith.constant 0 : index
      %c0_71 = arith.constant 0 : index
      %c0_72 = arith.constant 0 : index
      %c0_73 = arith.constant 0 : index
      %86 = vector.load %arg3[%c0_70, %c0_71, %c0_72, %c0_73] : memref<1x1x16x2xbf16, #tpu.memory_space<vmem>>, vector<1x1x16x2xbf16>
      %87 = vector.shape_cast %86 : vector<1x1x16x2xbf16> to vector<1x16x2xbf16>
      %c0_74 = arith.constant 0 : index
      %c1_75 = arith.constant 1 : index
      %c0_76 = arith.constant 0 : index
      %88 = vector.load %arg13[%c0_74, %c1_75, %c0_76] : memref<10x24x4xbf16, #tpu.memory_space<vmem>>, vector<1x16x2xbf16>
      tpu.vector_store %arg13[%c0_74, %c1_75, %c0_76], %87 {strides = array<i32>} : memref<10x24x4xbf16, #tpu.memory_space<vmem>>, vector<1x16x2xbf16>,
    } else {
    }
    %c1_i32 = arith.constant 1 : i32
    %14 = arith.cmpi eq, %arg1, %c1_i32 : i32
    %15 = arith.extui %14 : i1 to i32
    %c0_i32_15 = arith.constant 0 : i32
    %16 = arith.cmpi ne, %15, %c0_i32_15 : i32
    scf.if %16 {
      %c9 = arith.constant 9 : index
      %c1_70 = arith.constant 1 : index
      %c0_71 = arith.constant 0 : index
      %86 = vector.load %arg13[%c9, %c1_70, %c0_71] : memref<10x24x4xbf16, #tpu.memory_space<vmem>>, vector<1x16x2xbf16>
      tpu.vector_store %arg13[%c9, %c1_70, %c0_71], %4 {strides = array<i32>} : memref<10x24x4xbf16, #tpu.memory_space<vmem>>, vector<1x16x2xbf16>,
    } else {
    }
    %c1_i32_16 = arith.constant 1 : i32
    %17 = arith.cmpi slt, %arg1, %c1_i32_16 : i32
    %18 = arith.extui %17 : i1 to i32
    %c0_i32_17 = arith.constant 0 : i32
    %19 = arith.cmpi ne, %18, %c0_i32_17 : i32
    scf.if %19 {
      %c0_70 = arith.constant 0 : index
      %c0_71 = arith.constant 0 : index
      %c0_72 = arith.constant 0 : index
      %c0_73 = arith.constant 0 : index
      %86 = vector.load %arg4[%c0_70, %c0_71, %c0_72, %c0_73] : memref<1x1x16x2xbf16, #tpu.memory_space<vmem>>, vector<1x1x16x2xbf16>
      %87 = vector.shape_cast %86 : vector<1x1x16x2xbf16> to vector<1x16x2xbf16>
      %c9 = arith.constant 9 : index
      %c1_74 = arith.constant 1 : index
      %c0_75 = arith.constant 0 : index
      %88 = vector.load %arg13[%c9, %c1_74, %c0_75] : memref<10x24x4xbf16, #tpu.memory_space<vmem>>, vector<1x16x2xbf16>
      tpu.vector_store %arg13[%c9, %c1_74, %c0_75], %87 {strides = array<i32>} : memref<10x24x4xbf16, #tpu.memory_space<vmem>>, vector<1x16x2xbf16>,
    } else {
    }
    %cst_18 = arith.constant 0.000000e+00 : bf16
    %20 = vector.broadcast %cst_18 : bf16 to vector<1x16x2xbf16>
    %c0_19 = arith.constant 0 : index
    %c0_20 = arith.constant 0 : index
    %c0_21 = arith.constant 0 : index
    %c0_22 = arith.constant 0 : index
    %21 = vector.load %arg5[%c0_19, %c0_20, %c0_21, %c0_22] : memref<1x8x16x2xbf16, #tpu.memory_space<vmem>>, vector<1x8x16x2xbf16>
    %22 = vector.shape_cast %21 : vector<1x8x16x2xbf16> to vector<8x16x2xbf16>
    %c1_23 = arith.constant 1 : index
    %c1_24 = arith.constant 1 : index
    %c2 = arith.constant 2 : index
    %23 = vector.load %arg13[%c1_23, %c1_24, %c2] : memref<10x24x4xbf16, #tpu.memory_space<vmem>>, vector<8x16x2xbf16>
    tpu.vector_store %arg13[%c1_23, %c1_24, %c2], %22 {strides = array<i32>} : memref<10x24x4xbf16, #tpu.memory_space<vmem>>, vector<8x16x2xbf16>,
    %c0_i32_25 = arith.constant 0 : i32
    %24 = arith.cmpi eq, %arg1, %c0_i32_25 : i32
    %25 = arith.extui %24 : i1 to i32
    %c0_i32_26 = arith.constant 0 : i32
    %26 = arith.cmpi ne, %25, %c0_i32_26 : i32
    scf.if %26 {
      %c0_70 = arith.constant 0 : index
      %c1_71 = arith.constant 1 : index
      %c2_72 = arith.constant 2 : index
      %86 = vector.load %arg13[%c0_70, %c1_71, %c2_72] : memref<10x24x4xbf16, #tpu.memory_space<vmem>>, vector<1x16x2xbf16>
      tpu.vector_store %arg13[%c0_70, %c1_71, %c2_72], %20 {strides = array<i32>} : memref<10x24x4xbf16, #tpu.memory_space<vmem>>, vector<1x16x2xbf16>,
    } else {
    }
    %c0_i32_27 = arith.constant 0 : i32
    %27 = arith.cmpi sgt, %arg1, %c0_i32_27 : i32
    %28 = arith.extui %27 : i1 to i32
    %c0_i32_28 = arith.constant 0 : i32
    %29 = arith.cmpi ne, %28, %c0_i32_28 : i32
    scf.if %29 {
      %c0_70 = arith.constant 0 : index
      %c0_71 = arith.constant 0 : index
      %c0_72 = arith.constant 0 : index
      %c0_73 = arith.constant 0 : index
      %86 = vector.load %arg6[%c0_70, %c0_71, %c0_72, %c0_73] : memref<1x1x16x2xbf16, #tpu.memory_space<vmem>>, vector<1x1x16x2xbf16>
      %87 = vector.shape_cast %86 : vector<1x1x16x2xbf16> to vector<1x16x2xbf16>
      %c0_74 = arith.constant 0 : index
      %c1_75 = arith.constant 1 : index
      %c2_76 = arith.constant 2 : index
      %88 = vector.load %arg13[%c0_74, %c1_75, %c2_76] : memref<10x24x4xbf16, #tpu.memory_space<vmem>>, vector<1x16x2xbf16>
      tpu.vector_store %arg13[%c0_74, %c1_75, %c2_76], %87 {strides = array<i32>} : memref<10x24x4xbf16, #tpu.memory_space<vmem>>, vector<1x16x2xbf16>,
    } else {
    }
    %c1_i32_29 = arith.constant 1 : i32
    %30 = arith.cmpi eq, %arg1, %c1_i32_29 : i32
    %31 = arith.extui %30 : i1 to i32
    %c0_i32_30 = arith.constant 0 : i32
    %32 = arith.cmpi ne, %31, %c0_i32_30 : i32
    scf.if %32 {
      %c9 = arith.constant 9 : index
      %c1_70 = arith.constant 1 : index
      %c2_71 = arith.constant 2 : index
      %86 = vector.load %arg13[%c9, %c1_70, %c2_71] : memref<10x24x4xbf16, #tpu.memory_space<vmem>>, vector<1x16x2xbf16>
      tpu.vector_store %arg13[%c9, %c1_70, %c2_71], %20 {strides = array<i32>} : memref<10x24x4xbf16, #tpu.memory_space<vmem>>, vector<1x16x2xbf16>,
    } else {
    }
    %c1_i32_31 = arith.constant 1 : i32
    %33 = arith.cmpi slt, %arg1, %c1_i32_31 : i32
    %34 = arith.extui %33 : i1 to i32
    %c0_i32_32 = arith.constant 0 : i32
    %35 = arith.cmpi ne, %34, %c0_i32_32 : i32
    scf.if %35 {
      %c0_70 = arith.constant 0 : index
      %c0_71 = arith.constant 0 : index
      %c0_72 = arith.constant 0 : index
      %c0_73 = arith.constant 0 : index
      %86 = vector.load %arg7[%c0_70, %c0_71, %c0_72, %c0_73] : memref<1x1x16x2xbf16, #tpu.memory_space<vmem>>, vector<1x1x16x2xbf16>
      %87 = vector.shape_cast %86 : vector<1x1x16x2xbf16> to vector<1x16x2xbf16>
      %c9 = arith.constant 9 : index
      %c1_74 = arith.constant 1 : index
      %c2_75 = arith.constant 2 : index
      %88 = vector.load %arg13[%c9, %c1_74, %c2_75] : memref<10x24x4xbf16, #tpu.memory_space<vmem>>, vector<1x16x2xbf16>
      tpu.vector_store %arg13[%c9, %c1_74, %c2_75], %87 {strides = array<i32>} : memref<10x24x4xbf16, #tpu.memory_space<vmem>>, vector<1x16x2xbf16>,
    } else {
    }
    %c0_33 = arith.constant 0 : index
    %c0_34 = arith.constant 0 : index
    %c0_35 = arith.constant 0 : index
    %36 = vector.load %arg13[%c0_33, %c0_34, %c0_35] : memref<10x24x4xbf16, #tpu.memory_space<vmem>>, vector<8x24x4xbf16>
    %37 = vector.shape_cast %36 : vector<8x24x4xbf16> to vector<192x4xbf16>
    %c0_36 = arith.constant 0 : index
    %c0_37 = arith.constant 0 : index
    %c0_38 = arith.constant 0 : index
    %38 = vector.load %arg8[%c0_36, %c0_37, %c0_38] : memref<3x4x12xbf16, #tpu.memory_space<vmem>>, vector<1x4x12xbf16>
    %39 = vector.shape_cast %38 : vector<1x4x12xbf16> to vector<4x12xbf16>
    %cst_39 = arith.constant dense<0.000000e+00> : vector<192x12xf32>
    %40 = tpu.matmul %37, %39, %cst_39 {dimension_numbers = #tpu.dot_dimension_numbers<[1], [0], [0], [1], [0, 0, 1, 1], [], []>} : vector<192x4xbf16>, vector<4x12xbf16>, vector<192x12xf32> -> vector<192x12xf32>
    %41 = vector.shape_cast %40 : vector<192x12xf32> to vector<8x24x12xf32>
    %42 = vector.extract_strided_slice %41 {offsets = [0, 0, 0], sizes = [8, 16, 4], strides = [1, 1, 1]} : vector<8x24x12xf32> to vector<8x16x4xf32>
    %43 = vector.extract_strided_slice %41 {offsets = [0, 1, 4], sizes = [8, 16, 4], strides = [1, 1, 1]} : vector<8x24x12xf32> to vector<8x16x4xf32>
    %44 = arith.addf %42, %43 : vector<8x16x4xf32>
    %45 = vector.extract_strided_slice %41 {offsets = [0, 2, 8], sizes = [8, 16, 4], strides = [1, 1, 1]} : vector<8x24x12xf32> to vector<8x16x4xf32>
    %46 = arith.addf %44, %45 : vector<8x16x4xf32>
    %c1_40 = arith.constant 1 : index
    %c0_41 = arith.constant 0 : index
    %c0_42 = arith.constant 0 : index
    %47 = vector.load %arg13[%c1_40, %c0_41, %c0_42] : memref<10x24x4xbf16, #tpu.memory_space<vmem>>, vector<8x24x4xbf16>
    %48 = vector.shape_cast %47 : vector<8x24x4xbf16> to vector<192x4xbf16>
    %c1_43 = arith.constant 1 : index
    %c0_44 = arith.constant 0 : index
    %c0_45 = arith.constant 0 : index
    %49 = vector.load %arg8[%c1_43, %c0_44, %c0_45] : memref<3x4x12xbf16, #tpu.memory_space<vmem>>, vector<1x4x12xbf16>
    %50 = vector.shape_cast %49 : vector<1x4x12xbf16> to vector<4x12xbf16>
    %cst_46 = arith.constant dense<0.000000e+00> : vector<192x12xf32>
    %51 = tpu.matmul %48, %50, %cst_46 {dimension_numbers = #tpu.dot_dimension_numbers<[1], [0], [0], [1], [0, 0, 1, 1], [], []>} : vector<192x4xbf16>, vector<4x12xbf16>, vector<192x12xf32> -> vector<192x12xf32>
    %52 = vector.shape_cast %51 : vector<192x12xf32> to vector<8x24x12xf32>
    %53 = vector.extract_strided_slice %52 {offsets = [0, 0, 0], sizes = [8, 16, 4], strides = [1, 1, 1]} : vector<8x24x12xf32> to vector<8x16x4xf32>
    %54 = arith.addf %46, %53 : vector<8x16x4xf32>
    %55 = vector.extract_strided_slice %52 {offsets = [0, 1, 4], sizes = [8, 16, 4], strides = [1, 1, 1]} : vector<8x24x12xf32> to vector<8x16x4xf32>
    %56 = arith.addf %54, %55 : vector<8x16x4xf32>
    %57 = vector.extract_strided_slice %52 {offsets = [0, 2, 8], sizes = [8, 16, 4], strides = [1, 1, 1]} : vector<8x24x12xf32> to vector<8x16x4xf32>
    %58 = arith.addf %56, %57 : vector<8x16x4xf32>
    %c2_47 = arith.constant 2 : index
    %c0_48 = arith.constant 0 : index
    %c0_49 = arith.constant 0 : index
    %59 = vector.load %arg13[%c2_47, %c0_48, %c0_49] : memref<10x24x4xbf16, #tpu.memory_space<vmem>>, vector<8x24x4xbf16>
    %60 = vector.shape_cast %59 : vector<8x24x4xbf16> to vector<192x4xbf16>
    %c2_50 = arith.constant 2 : index
    %c0_51 = arith.constant 0 : index
    %c0_52 = arith.constant 0 : index
    %61 = vector.load %arg8[%c2_50, %c0_51, %c0_52] : memref<3x4x12xbf16, #tpu.memory_space<vmem>>, vector<1x4x12xbf16>
    %62 = vector.shape_cast %61 : vector<1x4x12xbf16> to vector<4x12xbf16>
    %cst_53 = arith.constant dense<0.000000e+00> : vector<192x12xf32>
    %63 = tpu.matmul %60, %62, %cst_53 {dimension_numbers = #tpu.dot_dimension_numbers<[1], [0], [0], [1], [0, 0, 1, 1], [], []>} : vector<192x4xbf16>, vector<4x12xbf16>, vector<192x12xf32> -> vector<192x12xf32>
    %64 = vector.shape_cast %63 : vector<192x12xf32> to vector<8x24x12xf32>
    %65 = vector.extract_strided_slice %64 {offsets = [0, 0, 0], sizes = [8, 16, 4], strides = [1, 1, 1]} : vector<8x24x12xf32> to vector<8x16x4xf32>
    %66 = arith.addf %58, %65 : vector<8x16x4xf32>
    %67 = vector.extract_strided_slice %64 {offsets = [0, 1, 4], sizes = [8, 16, 4], strides = [1, 1, 1]} : vector<8x24x12xf32> to vector<8x16x4xf32>
    %68 = arith.addf %66, %67 : vector<8x16x4xf32>
    %69 = vector.extract_strided_slice %64 {offsets = [0, 2, 8], sizes = [8, 16, 4], strides = [1, 1, 1]} : vector<8x24x12xf32> to vector<8x16x4xf32>
    %70 = arith.addf %68, %69 : vector<8x16x4xf32>
    %c0_54 = arith.constant 0 : index
    %c0_55 = arith.constant 0 : index
    %71 = vector.load %arg9[%c0_54, %c0_55] : memref<1x4xf32, #tpu.memory_space<vmem>>, vector<1x4xf32>
    %72 = vector.shape_cast %71 : vector<1x4xf32> to vector<1x1x4xf32>
    %73 = vector.broadcast %72 : vector<1x1x4xf32> to vector<8x16x4xf32>
    %74 = arith.addf %70, %73 : vector<8x16x4xf32>
    %75 = arith.truncf %74 : vector<8x16x4xf32> to vector<8x16x4xbf16>
    %c0_56 = arith.constant 0 : index
    %c0_57 = arith.constant 0 : index
    %c0_58 = arith.constant 0 : index
    %c0_59 = arith.constant 0 : index
    %76 = vector.load %arg10[%c0_56, %c0_57, %c0_58, %c0_59] : memref<1x8x16x4xbf16, #tpu.memory_space<vmem>>, vector<1x8x16x4xbf16>
    %77 = vector.shape_cast %76 : vector<1x8x16x4xbf16> to vector<8x16x4xbf16>
    %78 = vector.shape_cast %75 : vector<8x16x4xbf16> to vector<1x8x16x4xbf16>
    tpu.vector_store %arg10[%c0_56, %c0_57, %c0_58, %c0_59], %78 {strides = array<i32>} : memref<1x8x16x4xbf16, #tpu.memory_space<vmem>>, vector<1x8x16x4xbf16>,
    %cst_60 = arith.constant dense<0.000000e+00> : vector<4xf32>
    %79 = vector.multi_reduction <add>, %74, %cst_60 [0, 1] : vector<8x16x4xf32> to vector<4xf32>
    %80 = vector.shape_cast %79 : vector<4xf32> to vector<1x1x1x4xf32>
    %c0_61 = arith.constant 0 : index
    %c0_62 = arith.constant 0 : index
    %c0_63 = arith.constant 0 : index
    %c0_64 = arith.constant 0 : index
    %81 = vector.load %arg11[%c0_61, %c0_62, %c0_63, %c0_64] : memref<1x1x1x4xf32, #tpu.memory_space<vmem>>, vector<1x1x1x4xf32>
    tpu.vector_store %arg11[%c0_61, %c0_62, %c0_63, %c0_64], %80 {strides = array<i32>} : memref<1x1x1x4xf32, #tpu.memory_space<vmem>>, vector<1x1x1x4xf32>,
    %82 = arith.mulf %74, %74 : vector<8x16x4xf32>
    %cst_65 = arith.constant dense<0.000000e+00> : vector<4xf32>
    %83 = vector.multi_reduction <add>, %82, %cst_65 [0, 1] : vector<8x16x4xf32> to vector<4xf32>
    %84 = vector.shape_cast %83 : vector<4xf32> to vector<1x1x1x4xf32>
    %c0_66 = arith.constant 0 : index
    %c0_67 = arith.constant 0 : index
    %c0_68 = arith.constant 0 : index
    %c0_69 = arith.constant 0 : index
    %85 = vector.load %arg12[%c0_66, %c0_67, %c0_68, %c0_69] : memref<1x1x1x4xf32, #tpu.memory_space<vmem>>, vector<1x1x1x4xf32>
    tpu.vector_store %arg12[%c0_66, %c0_67, %c0_68, %c0_69], %84 {strides = array<i32>} : memref<1x1x1x4xf32, #tpu.memory_space<vmem>>, vector<1x1x1x4xf32>,
    return
  }
  func.func @transform_0(%arg0: i32, %arg1: i32) -> (i32, i32, i32, i32) {
    %c0_i32 = arith.constant 0 : i32
    %c0_i32_0 = arith.constant 0 : i32
    %c0_i32_1 = arith.constant 0 : i32
    return %arg0, %arg1, %c0_i32, %c0_i32_0 : i32, i32, i32, i32
  }
  func.func @transform_1(%arg0: i32, %arg1: i32) -> (i32, i32, i32, i32) {
    %c8_i32 = arith.constant 8 : i32
    %0 = arith.muli %arg1, %c8_i32 : i32
    %c1_i32 = arith.constant 1 : i32
    %1 = arith.subi %0, %c1_i32 : i32
    %c0_i32 = arith.constant 0 : i32
    %2 = arith.maxsi %1, %c0_i32 : i32
    %c0_i32_0 = arith.constant 0 : i32
    %c0_i32_1 = arith.constant 0 : i32
    %c0_i32_2 = arith.constant 0 : i32
    return %arg0, %2, %c0_i32_0, %c0_i32_1 : i32, i32, i32, i32
  }
  func.func @transform_2(%arg0: i32, %arg1: i32) -> (i32, i32, i32, i32) {
    %c1_i32 = arith.constant 1 : i32
    %0 = arith.addi %arg1, %c1_i32 : i32
    %c8_i32 = arith.constant 8 : i32
    %1 = arith.muli %0, %c8_i32 : i32
    %c15_i32 = arith.constant 15 : i32
    %2 = arith.minsi %1, %c15_i32 : i32
    %c0_i32 = arith.constant 0 : i32
    %c0_i32_0 = arith.constant 0 : i32
    %c0_i32_1 = arith.constant 0 : i32
    return %arg0, %2, %c0_i32, %c0_i32_0 : i32, i32, i32, i32
  }
  func.func @transform_3(%arg0: i32, %arg1: i32) -> (i32, i32, i32, i32) {
    %c0_i32 = arith.constant 0 : i32
    %c0_i32_0 = arith.constant 0 : i32
    %c0_i32_1 = arith.constant 0 : i32
    return %arg0, %arg1, %c0_i32, %c0_i32_0 : i32, i32, i32, i32
  }
  func.func @transform_4(%arg0: i32, %arg1: i32) -> (i32, i32, i32, i32) {
    %c8_i32 = arith.constant 8 : i32
    %0 = arith.muli %arg1, %c8_i32 : i32
    %c1_i32 = arith.constant 1 : i32
    %1 = arith.subi %0, %c1_i32 : i32
    %c0_i32 = arith.constant 0 : i32
    %2 = arith.maxsi %1, %c0_i32 : i32
    %c0_i32_0 = arith.constant 0 : i32
    %c0_i32_1 = arith.constant 0 : i32
    %c0_i32_2 = arith.constant 0 : i32
    return %arg0, %2, %c0_i32_0, %c0_i32_1 : i32, i32, i32, i32
  }
  func.func @transform_5(%arg0: i32, %arg1: i32) -> (i32, i32, i32, i32) {
    %c1_i32 = arith.constant 1 : i32
    %0 = arith.addi %arg1, %c1_i32 : i32
    %c8_i32 = arith.constant 8 : i32
    %1 = arith.muli %0, %c8_i32 : i32
    %c15_i32 = arith.constant 15 : i32
    %2 = arith.minsi %1, %c15_i32 : i32
    %c0_i32 = arith.constant 0 : i32
    %c0_i32_0 = arith.constant 0 : i32
    %c0_i32_1 = arith.constant 0 : i32
    return %arg0, %2, %c0_i32, %c0_i32_0 : i32, i32, i32, i32
  }
  func.func @transform_6(%arg0: i32, %arg1: i32) -> (i32, i32, i32) {
    %c0_i32 = arith.constant 0 : i32
    %c0_i32_0 = arith.constant 0 : i32
    %c0_i32_1 = arith.constant 0 : i32
    %c0_i32_2 = arith.constant 0 : i32
    return %c0_i32, %c0_i32_0, %c0_i32_1 : i32, i32, i32
  }
  func.func @transform_7(%arg0: i32, %arg1: i32) -> (i32, i32) {
    %c0_i32 = arith.constant 0 : i32
    %c0_i32_0 = arith.constant 0 : i32
    %c0_i32_1 = arith.constant 0 : i32
    return %c0_i32, %c0_i32_0 : i32, i32
  }
  func.func @transform_8(%arg0: i32, %arg1: i32) -> (i32, i32, i32, i32) {
    %c0_i32 = arith.constant 0 : i32
    %c0_i32_0 = arith.constant 0 : i32
    %c0_i32_1 = arith.constant 0 : i32
    return %arg0, %arg1, %c0_i32, %c0_i32_0 : i32, i32, i32, i32
  }
  func.func @transform_9(%arg0: i32, %arg1: i32) -> (i32, i32, i32, i32) {
    %c0_i32 = arith.constant 0 : i32
    %c0_i32_0 = arith.constant 0 : i32
    %c0_i32_1 = arith.constant 0 : i32
    return %arg0, %arg1, %c0_i32, %c0_i32_0 : i32, i32, i32, i32
  }
  func.func @transform_10(%arg0: i32, %arg1: i32) -> (i32, i32, i32, i32) {
    %c0_i32 = arith.constant 0 : i32
    %c0_i32_0 = arith.constant 0 : i32
    %c0_i32_1 = arith.constant 0 : i32
    return %arg0, %arg1, %c0_i32, %c0_i32_0 : i32, i32, i32, i32
  }
}

module attributes {stable_mosaic.version = 11 : i64} {
  func.func @_conv3x3_preact_kernel(%arg0: i32, %arg1: i32, %arg2: memref<1x8x16x4xbf16, #tpu.memory_space<vmem>>, %arg3: memref<1x1x16x4xbf16, #tpu.memory_space<vmem>>, %arg4: memref<1x1x16x4xbf16, #tpu.memory_space<vmem>>, %arg5: memref<3x4x12xbf16, #tpu.memory_space<vmem>>, %arg6: memref<1x4xf32, #tpu.memory_space<vmem>>, %arg7: memref<1x4xf32, #tpu.memory_space<vmem>>, %arg8: memref<1x4xf32, #tpu.memory_space<vmem>>, %arg9: memref<1x8x16x4xbf16, #tpu.memory_space<vmem>>, %arg10: memref<1x1x1x4xf32, #tpu.memory_space<vmem>>, %arg11: memref<1x1x1x4xf32, #tpu.memory_space<vmem>>, %arg12: memref<10x24x4xbf16, #tpu.memory_space<vmem>>) attributes {dimension_semantics = [#tpu.dimension_semantics<parallel>, #tpu.dimension_semantics<parallel>], iteration_bounds = array<i64: 2, 2>, scalar_prefetch = 0 : i64, scratch_operands = 1 : i64, tpu.core_type = #tpu.core_type<tc>, window_params = [{transform_indices = @transform_0, window_bounds = array<i64: 1, 8, 16, 4>}, {transform_indices = @transform_1, window_bounds = array<i64: 1, 1, 16, 4>}, {transform_indices = @transform_2, window_bounds = array<i64: 1, 1, 16, 4>}, {pipeline_mode = #tpu.pipeline_mode<synchronous>, transform_indices = @transform_3, window_bounds = array<i64: 3, 4, 12>}, {pipeline_mode = #tpu.pipeline_mode<synchronous>, transform_indices = @transform_4, window_bounds = array<i64: 1, 4>}, {pipeline_mode = #tpu.pipeline_mode<synchronous>, transform_indices = @transform_5, window_bounds = array<i64: 1, 4>}, {pipeline_mode = #tpu.pipeline_mode<synchronous>, transform_indices = @transform_6, window_bounds = array<i64: 1, 4>}, {transform_indices = @transform_7, window_bounds = array<i64: 1, 8, 16, 4>}, {transform_indices = @transform_8, window_bounds = array<i64: 1, 1, 1, 4>}, {transform_indices = @transform_9, window_bounds = array<i64: 1, 1, 1, 4>}]} {
    %cst = arith.constant 0.000000e+00 : bf16
    %0 = vector.broadcast %cst : bf16 to vector<10x1x4xbf16>
    %c0 = arith.constant 0 : index
    %c0_0 = arith.constant 0 : index
    %c0_1 = arith.constant 0 : index
    %1 = vector.load %arg12[%c0, %c0_0, %c0_1] : memref<10x24x4xbf16, #tpu.memory_space<vmem>>, vector<10x1x4xbf16>
    tpu.vector_store %arg12[%c0, %c0_0, %c0_1], %0 {strides = array<i32>} : memref<10x24x4xbf16, #tpu.memory_space<vmem>>, vector<10x1x4xbf16>,
    %cst_2 = arith.constant 0.000000e+00 : bf16
    %2 = vector.broadcast %cst_2 : bf16 to vector<10x7x4xbf16>
    %c0_3 = arith.constant 0 : index
    %c17 = arith.constant 17 : index
    %c0_4 = arith.constant 0 : index
    %3 = vector.load %arg12[%c0_3, %c17, %c0_4] : memref<10x24x4xbf16, #tpu.memory_space<vmem>>, vector<10x7x4xbf16>
    tpu.vector_store %arg12[%c0_3, %c17, %c0_4], %2 {strides = array<i32>} : memref<10x24x4xbf16, #tpu.memory_space<vmem>>, vector<10x7x4xbf16>,
    %c0_5 = arith.constant 0 : index
    %c0_6 = arith.constant 0 : index
    %4 = vector.load %arg7[%c0_5, %c0_6] : memref<1x4xf32, #tpu.memory_space<vmem>>, vector<1x4xf32>
    %5 = vector.shape_cast %4 : vector<1x4xf32> to vector<1x1x4xf32>
    %c0_7 = arith.constant 0 : index
    %c0_8 = arith.constant 0 : index
    %6 = vector.load %arg8[%c0_7, %c0_8] : memref<1x4xf32, #tpu.memory_space<vmem>>, vector<1x4xf32>
    %7 = vector.shape_cast %6 : vector<1x4xf32> to vector<1x1x4xf32>
    %cst_9 = arith.constant 0.000000e+00 : bf16
    %8 = vector.broadcast %cst_9 : bf16 to vector<1x16x4xbf16>
    %c0_10 = arith.constant 0 : index
    %c0_11 = arith.constant 0 : index
    %c0_12 = arith.constant 0 : index
    %c0_13 = arith.constant 0 : index
    %9 = vector.load %arg2[%c0_10, %c0_11, %c0_12, %c0_13] : memref<1x8x16x4xbf16, #tpu.memory_space<vmem>>, vector<1x8x16x4xbf16>
    %10 = vector.shape_cast %9 : vector<1x8x16x4xbf16> to vector<8x16x4xbf16>
    %11 = arith.extf %10 : vector<8x16x4xbf16> to vector<8x16x4xf32>
    %12 = vector.broadcast %5 : vector<1x1x4xf32> to vector<8x16x4xf32>
    %13 = arith.mulf %11, %12 : vector<8x16x4xf32>
    %14 = vector.broadcast %7 : vector<1x1x4xf32> to vector<8x16x4xf32>
    %15 = arith.addf %13, %14 : vector<8x16x4xf32>
    %cst_14 = arith.constant 0.000000e+00 : f32
    %16 = vector.broadcast %cst_14 : f32 to vector<8x16x4xf32>
    %17 = arith.maximumf %15, %16 : vector<8x16x4xf32>
    %18 = arith.truncf %17 : vector<8x16x4xf32> to vector<8x16x4xbf16>
    %c1 = arith.constant 1 : index
    %c1_15 = arith.constant 1 : index
    %c0_16 = arith.constant 0 : index
    %19 = vector.load %arg12[%c1, %c1_15, %c0_16] : memref<10x24x4xbf16, #tpu.memory_space<vmem>>, vector<8x16x4xbf16>
    tpu.vector_store %arg12[%c1, %c1_15, %c0_16], %18 {strides = array<i32>} : memref<10x24x4xbf16, #tpu.memory_space<vmem>>, vector<8x16x4xbf16>,
    %c0_i32 = arith.constant 0 : i32
    %20 = arith.cmpi eq, %arg1, %c0_i32 : i32
    %21 = arith.extui %20 : i1 to i32
    %c0_i32_17 = arith.constant 0 : i32
    %22 = arith.cmpi ne, %21, %c0_i32_17 : i32
    scf.if %22 {
      %c0_59 = arith.constant 0 : index
      %c1_60 = arith.constant 1 : index
      %c0_61 = arith.constant 0 : index
      %82 = vector.load %arg12[%c0_59, %c1_60, %c0_61] : memref<10x24x4xbf16, #tpu.memory_space<vmem>>, vector<1x16x4xbf16>
      tpu.vector_store %arg12[%c0_59, %c1_60, %c0_61], %8 {strides = array<i32>} : memref<10x24x4xbf16, #tpu.memory_space<vmem>>, vector<1x16x4xbf16>,
    } else {
    }
    %c0_i32_18 = arith.constant 0 : i32
    %23 = arith.cmpi sgt, %arg1, %c0_i32_18 : i32
    %24 = arith.extui %23 : i1 to i32
    %c0_i32_19 = arith.constant 0 : i32
    %25 = arith.cmpi ne, %24, %c0_i32_19 : i32
    scf.if %25 {
      %c0_59 = arith.constant 0 : index
      %c0_60 = arith.constant 0 : index
      %c0_61 = arith.constant 0 : index
      %c0_62 = arith.constant 0 : index
      %82 = vector.load %arg3[%c0_59, %c0_60, %c0_61, %c0_62] : memref<1x1x16x4xbf16, #tpu.memory_space<vmem>>, vector<1x1x16x4xbf16>
      %83 = vector.shape_cast %82 : vector<1x1x16x4xbf16> to vector<1x16x4xbf16>
      %84 = arith.extf %83 : vector<1x16x4xbf16> to vector<1x16x4xf32>
      %85 = vector.broadcast %5 : vector<1x1x4xf32> to vector<1x16x4xf32>
      %86 = arith.mulf %84, %85 : vector<1x16x4xf32>
      %87 = vector.broadcast %7 : vector<1x1x4xf32> to vector<1x16x4xf32>
      %88 = arith.addf %86, %87 : vector<1x16x4xf32>
      %cst_63 = arith.constant 0.000000e+00 : f32
      %89 = vector.broadcast %cst_63 : f32 to vector<1x16x4xf32>
      %90 = arith.maximumf %88, %89 : vector<1x16x4xf32>
      %91 = arith.truncf %90 : vector<1x16x4xf32> to vector<1x16x4xbf16>
      %c0_64 = arith.constant 0 : index
      %c1_65 = arith.constant 1 : index
      %c0_66 = arith.constant 0 : index
      %92 = vector.load %arg12[%c0_64, %c1_65, %c0_66] : memref<10x24x4xbf16, #tpu.memory_space<vmem>>, vector<1x16x4xbf16>
      tpu.vector_store %arg12[%c0_64, %c1_65, %c0_66], %91 {strides = array<i32>} : memref<10x24x4xbf16, #tpu.memory_space<vmem>>, vector<1x16x4xbf16>,
    } else {
    }
    %c1_i32 = arith.constant 1 : i32
    %26 = arith.cmpi eq, %arg1, %c1_i32 : i32
    %27 = arith.extui %26 : i1 to i32
    %c0_i32_20 = arith.constant 0 : i32
    %28 = arith.cmpi ne, %27, %c0_i32_20 : i32
    scf.if %28 {
      %c9 = arith.constant 9 : index
      %c1_59 = arith.constant 1 : index
      %c0_60 = arith.constant 0 : index
      %82 = vector.load %arg12[%c9, %c1_59, %c0_60] : memref<10x24x4xbf16, #tpu.memory_space<vmem>>, vector<1x16x4xbf16>
      tpu.vector_store %arg12[%c9, %c1_59, %c0_60], %8 {strides = array<i32>} : memref<10x24x4xbf16, #tpu.memory_space<vmem>>, vector<1x16x4xbf16>,
    } else {
    }
    %c1_i32_21 = arith.constant 1 : i32
    %29 = arith.cmpi slt, %arg1, %c1_i32_21 : i32
    %30 = arith.extui %29 : i1 to i32
    %c0_i32_22 = arith.constant 0 : i32
    %31 = arith.cmpi ne, %30, %c0_i32_22 : i32
    scf.if %31 {
      %c0_59 = arith.constant 0 : index
      %c0_60 = arith.constant 0 : index
      %c0_61 = arith.constant 0 : index
      %c0_62 = arith.constant 0 : index
      %82 = vector.load %arg4[%c0_59, %c0_60, %c0_61, %c0_62] : memref<1x1x16x4xbf16, #tpu.memory_space<vmem>>, vector<1x1x16x4xbf16>
      %83 = vector.shape_cast %82 : vector<1x1x16x4xbf16> to vector<1x16x4xbf16>
      %84 = arith.extf %83 : vector<1x16x4xbf16> to vector<1x16x4xf32>
      %85 = vector.broadcast %5 : vector<1x1x4xf32> to vector<1x16x4xf32>
      %86 = arith.mulf %84, %85 : vector<1x16x4xf32>
      %87 = vector.broadcast %7 : vector<1x1x4xf32> to vector<1x16x4xf32>
      %88 = arith.addf %86, %87 : vector<1x16x4xf32>
      %cst_63 = arith.constant 0.000000e+00 : f32
      %89 = vector.broadcast %cst_63 : f32 to vector<1x16x4xf32>
      %90 = arith.maximumf %88, %89 : vector<1x16x4xf32>
      %91 = arith.truncf %90 : vector<1x16x4xf32> to vector<1x16x4xbf16>
      %c9 = arith.constant 9 : index
      %c1_64 = arith.constant 1 : index
      %c0_65 = arith.constant 0 : index
      %92 = vector.load %arg12[%c9, %c1_64, %c0_65] : memref<10x24x4xbf16, #tpu.memory_space<vmem>>, vector<1x16x4xbf16>
      tpu.vector_store %arg12[%c9, %c1_64, %c0_65], %91 {strides = array<i32>} : memref<10x24x4xbf16, #tpu.memory_space<vmem>>, vector<1x16x4xbf16>,
    } else {
    }
    %c0_23 = arith.constant 0 : index
    %c0_24 = arith.constant 0 : index
    %c0_25 = arith.constant 0 : index
    %32 = vector.load %arg12[%c0_23, %c0_24, %c0_25] : memref<10x24x4xbf16, #tpu.memory_space<vmem>>, vector<8x24x4xbf16>
    %33 = vector.shape_cast %32 : vector<8x24x4xbf16> to vector<192x4xbf16>
    %c0_26 = arith.constant 0 : index
    %c0_27 = arith.constant 0 : index
    %c0_28 = arith.constant 0 : index
    %34 = vector.load %arg5[%c0_26, %c0_27, %c0_28] : memref<3x4x12xbf16, #tpu.memory_space<vmem>>, vector<1x4x12xbf16>
    %35 = vector.shape_cast %34 : vector<1x4x12xbf16> to vector<4x12xbf16>
    %cst_29 = arith.constant dense<0.000000e+00> : vector<192x12xf32>
    %36 = tpu.matmul %33, %35, %cst_29 {dimension_numbers = #tpu.dot_dimension_numbers<[1], [0], [0], [1], [0, 0, 1, 1], [], []>} : vector<192x4xbf16>, vector<4x12xbf16>, vector<192x12xf32> -> vector<192x12xf32>
    %37 = vector.shape_cast %36 : vector<192x12xf32> to vector<8x24x12xf32>
    %38 = vector.extract_strided_slice %37 {offsets = [0, 0, 0], sizes = [8, 16, 4], strides = [1, 1, 1]} : vector<8x24x12xf32> to vector<8x16x4xf32>
    %39 = vector.extract_strided_slice %37 {offsets = [0, 1, 4], sizes = [8, 16, 4], strides = [1, 1, 1]} : vector<8x24x12xf32> to vector<8x16x4xf32>
    %40 = arith.addf %38, %39 : vector<8x16x4xf32>
    %41 = vector.extract_strided_slice %37 {offsets = [0, 2, 8], sizes = [8, 16, 4], strides = [1, 1, 1]} : vector<8x24x12xf32> to vector<8x16x4xf32>
    %42 = arith.addf %40, %41 : vector<8x16x4xf32>
    %c1_30 = arith.constant 1 : index
    %c0_31 = arith.constant 0 : index
    %c0_32 = arith.constant 0 : index
    %43 = vector.load %arg12[%c1_30, %c0_31, %c0_32] : memref<10x24x4xbf16, #tpu.memory_space<vmem>>, vector<8x24x4xbf16>
    %44 = vector.shape_cast %43 : vector<8x24x4xbf16> to vector<192x4xbf16>
    %c1_33 = arith.constant 1 : index
    %c0_34 = arith.constant 0 : index
    %c0_35 = arith.constant 0 : index
    %45 = vector.load %arg5[%c1_33, %c0_34, %c0_35] : memref<3x4x12xbf16, #tpu.memory_space<vmem>>, vector<1x4x12xbf16>
    %46 = vector.shape_cast %45 : vector<1x4x12xbf16> to vector<4x12xbf16>
    %cst_36 = arith.constant dense<0.000000e+00> : vector<192x12xf32>
    %47 = tpu.matmul %44, %46, %cst_36 {dimension_numbers = #tpu.dot_dimension_numbers<[1], [0], [0], [1], [0, 0, 1, 1], [], []>} : vector<192x4xbf16>, vector<4x12xbf16>, vector<192x12xf32> -> vector<192x12xf32>
    %48 = vector.shape_cast %47 : vector<192x12xf32> to vector<8x24x12xf32>
    %49 = vector.extract_strided_slice %48 {offsets = [0, 0, 0], sizes = [8, 16, 4], strides = [1, 1, 1]} : vector<8x24x12xf32> to vector<8x16x4xf32>
    %50 = arith.addf %42, %49 : vector<8x16x4xf32>
    %51 = vector.extract_strided_slice %48 {offsets = [0, 1, 4], sizes = [8, 16, 4], strides = [1, 1, 1]} : vector<8x24x12xf32> to vector<8x16x4xf32>
    %52 = arith.addf %50, %51 : vector<8x16x4xf32>
    %53 = vector.extract_strided_slice %48 {offsets = [0, 2, 8], sizes = [8, 16, 4], strides = [1, 1, 1]} : vector<8x24x12xf32> to vector<8x16x4xf32>
    %54 = arith.addf %52, %53 : vector<8x16x4xf32>
    %c2 = arith.constant 2 : index
    %c0_37 = arith.constant 0 : index
    %c0_38 = arith.constant 0 : index
    %55 = vector.load %arg12[%c2, %c0_37, %c0_38] : memref<10x24x4xbf16, #tpu.memory_space<vmem>>, vector<8x24x4xbf16>
    %56 = vector.shape_cast %55 : vector<8x24x4xbf16> to vector<192x4xbf16>
    %c2_39 = arith.constant 2 : index
    %c0_40 = arith.constant 0 : index
    %c0_41 = arith.constant 0 : index
    %57 = vector.load %arg5[%c2_39, %c0_40, %c0_41] : memref<3x4x12xbf16, #tpu.memory_space<vmem>>, vector<1x4x12xbf16>
    %58 = vector.shape_cast %57 : vector<1x4x12xbf16> to vector<4x12xbf16>
    %cst_42 = arith.constant dense<0.000000e+00> : vector<192x12xf32>
    %59 = tpu.matmul %56, %58, %cst_42 {dimension_numbers = #tpu.dot_dimension_numbers<[1], [0], [0], [1], [0, 0, 1, 1], [], []>} : vector<192x4xbf16>, vector<4x12xbf16>, vector<192x12xf32> -> vector<192x12xf32>
    %60 = vector.shape_cast %59 : vector<192x12xf32> to vector<8x24x12xf32>
    %61 = vector.extract_strided_slice %60 {offsets = [0, 0, 0], sizes = [8, 16, 4], strides = [1, 1, 1]} : vector<8x24x12xf32> to vector<8x16x4xf32>
    %62 = arith.addf %54, %61 : vector<8x16x4xf32>
    %63 = vector.extract_strided_slice %60 {offsets = [0, 1, 4], sizes = [8, 16, 4], strides = [1, 1, 1]} : vector<8x24x12xf32> to vector<8x16x4xf32>
    %64 = arith.addf %62, %63 : vector<8x16x4xf32>
    %65 = vector.extract_strided_slice %60 {offsets = [0, 2, 8], sizes = [8, 16, 4], strides = [1, 1, 1]} : vector<8x24x12xf32> to vector<8x16x4xf32>
    %66 = arith.addf %64, %65 : vector<8x16x4xf32>
    %c0_43 = arith.constant 0 : index
    %c0_44 = arith.constant 0 : index
    %67 = vector.load %arg6[%c0_43, %c0_44] : memref<1x4xf32, #tpu.memory_space<vmem>>, vector<1x4xf32>
    %68 = vector.shape_cast %67 : vector<1x4xf32> to vector<1x1x4xf32>
    %69 = vector.broadcast %68 : vector<1x1x4xf32> to vector<8x16x4xf32>
    %70 = arith.addf %66, %69 : vector<8x16x4xf32>
    %71 = arith.truncf %70 : vector<8x16x4xf32> to vector<8x16x4xbf16>
    %c0_45 = arith.constant 0 : index
    %c0_46 = arith.constant 0 : index
    %c0_47 = arith.constant 0 : index
    %c0_48 = arith.constant 0 : index
    %72 = vector.load %arg9[%c0_45, %c0_46, %c0_47, %c0_48] : memref<1x8x16x4xbf16, #tpu.memory_space<vmem>>, vector<1x8x16x4xbf16>
    %73 = vector.shape_cast %72 : vector<1x8x16x4xbf16> to vector<8x16x4xbf16>
    %74 = vector.shape_cast %71 : vector<8x16x4xbf16> to vector<1x8x16x4xbf16>
    tpu.vector_store %arg9[%c0_45, %c0_46, %c0_47, %c0_48], %74 {strides = array<i32>} : memref<1x8x16x4xbf16, #tpu.memory_space<vmem>>, vector<1x8x16x4xbf16>,
    %cst_49 = arith.constant dense<0.000000e+00> : vector<4xf32>
    %75 = vector.multi_reduction <add>, %70, %cst_49 [0, 1] : vector<8x16x4xf32> to vector<4xf32>
    %76 = vector.shape_cast %75 : vector<4xf32> to vector<1x1x1x4xf32>
    %c0_50 = arith.constant 0 : index
    %c0_51 = arith.constant 0 : index
    %c0_52 = arith.constant 0 : index
    %c0_53 = arith.constant 0 : index
    %77 = vector.load %arg10[%c0_50, %c0_51, %c0_52, %c0_53] : memref<1x1x1x4xf32, #tpu.memory_space<vmem>>, vector<1x1x1x4xf32>
    tpu.vector_store %arg10[%c0_50, %c0_51, %c0_52, %c0_53], %76 {strides = array<i32>} : memref<1x1x1x4xf32, #tpu.memory_space<vmem>>, vector<1x1x1x4xf32>,
    %78 = arith.mulf %70, %70 : vector<8x16x4xf32>
    %cst_54 = arith.constant dense<0.000000e+00> : vector<4xf32>
    %79 = vector.multi_reduction <add>, %78, %cst_54 [0, 1] : vector<8x16x4xf32> to vector<4xf32>
    %80 = vector.shape_cast %79 : vector<4xf32> to vector<1x1x1x4xf32>
    %c0_55 = arith.constant 0 : index
    %c0_56 = arith.constant 0 : index
    %c0_57 = arith.constant 0 : index
    %c0_58 = arith.constant 0 : index
    %81 = vector.load %arg11[%c0_55, %c0_56, %c0_57, %c0_58] : memref<1x1x1x4xf32, #tpu.memory_space<vmem>>, vector<1x1x1x4xf32>
    tpu.vector_store %arg11[%c0_55, %c0_56, %c0_57, %c0_58], %80 {strides = array<i32>} : memref<1x1x1x4xf32, #tpu.memory_space<vmem>>, vector<1x1x1x4xf32>,
    return
  }
  func.func @transform_0(%arg0: i32, %arg1: i32) -> (i32, i32, i32, i32) {
    %c0_i32 = arith.constant 0 : i32
    %c0_i32_0 = arith.constant 0 : i32
    %c0_i32_1 = arith.constant 0 : i32
    return %arg0, %arg1, %c0_i32, %c0_i32_0 : i32, i32, i32, i32
  }
  func.func @transform_1(%arg0: i32, %arg1: i32) -> (i32, i32, i32, i32) {
    %c8_i32 = arith.constant 8 : i32
    %0 = arith.muli %arg1, %c8_i32 : i32
    %c1_i32 = arith.constant 1 : i32
    %1 = arith.subi %0, %c1_i32 : i32
    %c0_i32 = arith.constant 0 : i32
    %2 = arith.maxsi %1, %c0_i32 : i32
    %c0_i32_0 = arith.constant 0 : i32
    %c0_i32_1 = arith.constant 0 : i32
    %c0_i32_2 = arith.constant 0 : i32
    return %arg0, %2, %c0_i32_0, %c0_i32_1 : i32, i32, i32, i32
  }
  func.func @transform_2(%arg0: i32, %arg1: i32) -> (i32, i32, i32, i32) {
    %c1_i32 = arith.constant 1 : i32
    %0 = arith.addi %arg1, %c1_i32 : i32
    %c8_i32 = arith.constant 8 : i32
    %1 = arith.muli %0, %c8_i32 : i32
    %c15_i32 = arith.constant 15 : i32
    %2 = arith.minsi %1, %c15_i32 : i32
    %c0_i32 = arith.constant 0 : i32
    %c0_i32_0 = arith.constant 0 : i32
    %c0_i32_1 = arith.constant 0 : i32
    return %arg0, %2, %c0_i32, %c0_i32_0 : i32, i32, i32, i32
  }
  func.func @transform_3(%arg0: i32, %arg1: i32) -> (i32, i32, i32) {
    %c0_i32 = arith.constant 0 : i32
    %c0_i32_0 = arith.constant 0 : i32
    %c0_i32_1 = arith.constant 0 : i32
    %c0_i32_2 = arith.constant 0 : i32
    return %c0_i32, %c0_i32_0, %c0_i32_1 : i32, i32, i32
  }
  func.func @transform_4(%arg0: i32, %arg1: i32) -> (i32, i32) {
    %c0_i32 = arith.constant 0 : i32
    %c0_i32_0 = arith.constant 0 : i32
    %c0_i32_1 = arith.constant 0 : i32
    return %c0_i32, %c0_i32_0 : i32, i32
  }
  func.func @transform_5(%arg0: i32, %arg1: i32) -> (i32, i32) {
    %c0_i32 = arith.constant 0 : i32
    %c0_i32_0 = arith.constant 0 : i32
    %c0_i32_1 = arith.constant 0 : i32
    return %c0_i32, %c0_i32_0 : i32, i32
  }
  func.func @transform_6(%arg0: i32, %arg1: i32) -> (i32, i32) {
    %c0_i32 = arith.constant 0 : i32
    %c0_i32_0 = arith.constant 0 : i32
    %c0_i32_1 = arith.constant 0 : i32
    return %c0_i32, %c0_i32_0 : i32, i32
  }
  func.func @transform_7(%arg0: i32, %arg1: i32) -> (i32, i32, i32, i32) {
    %c0_i32 = arith.constant 0 : i32
    %c0_i32_0 = arith.constant 0 : i32
    %c0_i32_1 = arith.constant 0 : i32
    return %arg0, %arg1, %c0_i32, %c0_i32_0 : i32, i32, i32, i32
  }
  func.func @transform_8(%arg0: i32, %arg1: i32) -> (i32, i32, i32, i32) {
    %c0_i32 = arith.constant 0 : i32
    %c0_i32_0 = arith.constant 0 : i32
    %c0_i32_1 = arith.constant 0 : i32
    return %arg0, %arg1, %c0_i32, %c0_i32_0 : i32, i32, i32, i32
  }
  func.func @transform_9(%arg0: i32, %arg1: i32) -> (i32, i32, i32, i32) {
    %c0_i32 = arith.constant 0 : i32
    %c0_i32_0 = arith.constant 0 : i32
    %c0_i32_1 = arith.constant 0 : i32
    return %arg0, %arg1, %c0_i32, %c0_i32_0 : i32, i32, i32, i32
  }
}

module attributes {stable_mosaic.version = 11 : i64} {
  func.func @_bn_relu_kernel(%arg0: i32, %arg1: i32, %arg2: memref<1x8x16x4xbf16, #tpu.memory_space<vmem>>, %arg3: memref<1x4xf32, #tpu.memory_space<vmem>>, %arg4: memref<1x4xf32, #tpu.memory_space<vmem>>, %arg5: memref<1x8x16x4xf32, #tpu.memory_space<vmem>>) attributes {dimension_semantics = [#tpu.dimension_semantics<parallel>, #tpu.dimension_semantics<parallel>], iteration_bounds = array<i64: 2, 2>, scalar_prefetch = 0 : i64, scratch_operands = 0 : i64, tpu.core_type = #tpu.core_type<tc>, window_params = [{transform_indices = @transform_0, window_bounds = array<i64: 1, 8, 16, 4>}, {pipeline_mode = #tpu.pipeline_mode<synchronous>, transform_indices = @transform_1, window_bounds = array<i64: 1, 4>}, {pipeline_mode = #tpu.pipeline_mode<synchronous>, transform_indices = @transform_2, window_bounds = array<i64: 1, 4>}, {transform_indices = @transform_3, window_bounds = array<i64: 1, 8, 16, 4>}]} {
    %c0 = arith.constant 0 : index
    %c0_0 = arith.constant 0 : index
    %c0_1 = arith.constant 0 : index
    %c0_2 = arith.constant 0 : index
    %0 = vector.load %arg2[%c0, %c0_0, %c0_1, %c0_2] : memref<1x8x16x4xbf16, #tpu.memory_space<vmem>>, vector<1x8x16x4xbf16>
    %1 = arith.extf %0 : vector<1x8x16x4xbf16> to vector<1x8x16x4xf32>
    %c0_3 = arith.constant 0 : index
    %c0_4 = arith.constant 0 : index
    %2 = vector.load %arg3[%c0_3, %c0_4] : memref<1x4xf32, #tpu.memory_space<vmem>>, vector<1x4xf32>
    %3 = vector.shape_cast %2 : vector<1x4xf32> to vector<1x1x1x4xf32>
    %c0_5 = arith.constant 0 : index
    %c0_6 = arith.constant 0 : index
    %4 = vector.load %arg4[%c0_5, %c0_6] : memref<1x4xf32, #tpu.memory_space<vmem>>, vector<1x4xf32>
    %5 = vector.shape_cast %4 : vector<1x4xf32> to vector<1x1x1x4xf32>
    %6 = vector.broadcast %3 : vector<1x1x1x4xf32> to vector<1x8x16x4xf32>
    %7 = arith.mulf %1, %6 : vector<1x8x16x4xf32>
    %8 = vector.broadcast %5 : vector<1x1x1x4xf32> to vector<1x8x16x4xf32>
    %9 = arith.addf %7, %8 : vector<1x8x16x4xf32>
    %cst = arith.constant 0.000000e+00 : f32
    %10 = vector.broadcast %cst : f32 to vector<1x8x16x4xf32>
    %11 = arith.maximumf %9, %10 : vector<1x8x16x4xf32>
    %c0_7 = arith.constant 0 : index
    %c0_8 = arith.constant 0 : index
    %c0_9 = arith.constant 0 : index
    %c0_10 = arith.constant 0 : index
    %12 = vector.load %arg5[%c0_7, %c0_8, %c0_9, %c0_10] : memref<1x8x16x4xf32, #tpu.memory_space<vmem>>, vector<1x8x16x4xf32>
    tpu.vector_store %arg5[%c0_7, %c0_8, %c0_9, %c0_10], %11 {strides = array<i32>} : memref<1x8x16x4xf32, #tpu.memory_space<vmem>>, vector<1x8x16x4xf32>,
    return
  }
  func.func @transform_0(%arg0: i32, %arg1: i32) -> (i32, i32, i32, i32) {
    %c0_i32 = arith.constant 0 : i32
    %c0_i32_0 = arith.constant 0 : i32
    %c0_i32_1 = arith.constant 0 : i32
    return %arg0, %arg1, %c0_i32, %c0_i32_0 : i32, i32, i32, i32
  }
  func.func @transform_1(%arg0: i32, %arg1: i32) -> (i32, i32) {
    %c0_i32 = arith.constant 0 : i32
    %c0_i32_0 = arith.constant 0 : i32
    %c0_i32_1 = arith.constant 0 : i32
    return %c0_i32, %c0_i32_0 : i32, i32
  }
  func.func @transform_2(%arg0: i32, %arg1: i32) -> (i32, i32) {
    %c0_i32 = arith.constant 0 : i32
    %c0_i32_0 = arith.constant 0 : i32
    %c0_i32_1 = arith.constant 0 : i32
    return %c0_i32, %c0_i32_0 : i32, i32
  }
  func.func @transform_3(%arg0: i32, %arg1: i32) -> (i32, i32, i32, i32) {
    %c0_i32 = arith.constant 0 : i32
    %c0_i32_0 = arith.constant 0 : i32
    %c0_i32_1 = arith.constant 0 : i32
    return %arg0, %arg1, %c0_i32, %c0_i32_0 : i32, i32, i32, i32
  }
}

</mosaic_0001>

<bundles_post_ra>
// kernel: upblock_forward.4
= control target key start
LH: loop header
LB: loop body
LE: loop exit
PB: predicated region body
PF: predicated region fallthrough
CT: control target
= control target key end

     0   :  { %s536_s12 = smov 0   ;;  %s538_s13 = smov 0   ;;  %s607_s0 = inlined_call_operand.vmem [shape: bf16[2,8,8,4], index: 0, kind: input, shape index: {}]   ;;  %s608_s1 = inlined_call_operand.vmem [shape: bf16[2,4,4], index: 1, kind: input, shape index: {}]   ;;  %s609_s2 = inlined_call_operand.vmem [shape: f32[1,4], index: 2, kind: input, shape index: {}]   ;;  %s610_s3 = inlined_call_operand.vmem [shape: bf16[2,8,2,8,4], index: 3, kind: output, shape index: {}]  }
   0x1   :  { %s540_s14 = smov 0   ;;  %s542_s15 = smov 0  }
   0x2   :  { %s544_s16 = smov 0  }
   0x3 LB: > { %s22_s17 = sadd.s32 1, %s506_s14  ;;  %s25_s18 = sadd.s32 1, %s510_s15  ;;  %s514_s16 = sphi %s544_s16, %s13_s16   ;;  %s510_s15 = sphi %s542_s15, %s614_s15   ;;  %s506_s14 = sphi %s540_s14, %s613_s14   ;;  %s502_s13 = sphi %s538_s13, %s612_s13   ;;  %s498_s12 = sphi %s536_s12, %s611_s12  }
   0x4   : > { %p23_p0 = scmp.ge.s32.totalorder %s22_s17, 2  ;;  %p404_p1 = scmp.ge.s32.totalorder %s514_s16, 1 }
   0x5   : > { %p158_p2 = scmp.lt.s32.totalorder %s514_s16, 5 }
   0x6   : > { %s616_s17 = smov (%p23_p0, %s22_s17), 0  ;;  %s618_s18 = smov (!%p23_p0, %s25_s18), %s510_s15 }
   0x7   : > { %p159_p3 = pnand %p404_p1, %p158_p2  ;;  %p27_p4 = scmp.ge.s32.totalorder %s618_s18, 2 }
   0x8   : > { %s405_s23 = sshll.u32 (!%p159_p3), %s498_s12, 2  ;;  %p192_p5 = scmp.lt.s32.totalorder (!%p159_p3), %s502_s13, 1 }
   0x9   : > { %s620_s18 = smov (%p27_p4, %s618_s18), 0  ;;  %162 = sbr.rel (%p159_p3) target bundleno = 166 (0xa6), region = 32 }
   0xa   : > { %p194_p6 = scmp.lt.s32.totalorder (!%p159_p3), %s405_s23, 7 }
   0xe   : > { %v218_v0 = vld [vmem:[%s608_s1] sm:$0x3]  ;;  %vm239_vm0 = vcmask 1041408   ;;  %v422_v1 = vld [vmem:[%s608_s1 + $0x2] sm:$0x3]  ;;  %s622_s13 = smov (!%p192_p5, %s502_s13), 1 }
   0xf   : > { %v241_v2 = vsel %vm239_vm0, %v218_v0, 0  ;;  %v274_v3 = vsel %vm239_vm0, %v422_v1, 0  ;;  %s624_s23 = smov (!%p194_p6, %s405_s23), 7  ;;  %s406_s24 = sshll.u32 %s622_s13, 3  ;;  %vm232_vm1 = vcmask 31744   ;;  %vm266_vm2 = vcmask 27648  }
  0x10   : > { %250 = vmatpush.bf16.msra.mxu0 %v241_v2  ;;  %433 = vmatpush.bf16.msra.mxu2 %v241_v2  ;;  %s410_s25 = sshll.u32 %s622_s13, 4  ;;  %s197_s26 = sadd.s32 %s406_s24, %s624_s23  ;;  %v475_v6 = vld [vmem:[%s609_s2] ss:$0 sm:$0xff] }
  0x11   : > { %283 = vmatpush.bf16.msra.mxu1 %v274_v3  ;;  %434 = vmatpush.bf16.msra.mxu3 %v274_v3  ;;  %s409_s27 = sshll.u32 %s624_s23, 1  ;;  %s407_s28 = sshll.u32 %s197_s26, 2 }
  0x12   : > { %s208_s29 = sadd.s32 %s410_s25, %s409_s27  ;;  %s199_s5 = scalar_lea.vmem %s607_s0, %s407_s28 }
  0x13   : > { %v431_v4 = vld [vmem:[%s199_s5] sm:$0xff]  ;;  %v432_v5 = vld [vmem:[%s199_s5 + $0x8] sm:$0xff]  ;;  %s411_s8 = sshll.u32 %s208_s29, 2 }
  0x14   : > { %420 = vmatmul.msk.bf16.vlgmr.msra.gmra.mxu0 %vm232_vm1, %v431_v4  ;;  %421 = vmatmul.msk.bf16.vlgmr.msra.gmra.mxu2 %vm232_vm1, %v432_v5  ;;  %s210_s11 = scalar_lea.vmem %s610_s3, %s411_s8 }
  0x15   : > { %423 = vmatmul.msk.bf16.vlgmr.msra.gmra.mxu1 %vm232_vm1, %v431_v4  ;;  %424 = vmatmul.msk.bf16.vlgmr.msra.gmra.mxu3 %vm232_vm1, %v432_v5 }
  0x91   : > { %v252_v7 = vpop.f32.mrf.mxu0 }
  0x92   : > { %v253_v8 = vadd.f32 %v475_v6, %v252_v7  ;;  %v285_v9 = vpop.f32.mrf.mxu1 }
  0x93   : > { %v286_v10 = vadd.f32 %v475_v6, %v285_v9 }
  0x94   : > { %v262_v11 = vpack.c.bf16 %v253_v8, %v253_v8 }
  0x95   : > { %v295_v12 = vpack.c.bf16 %v286_v10, %v286_v10 }
  0x96   : > { %267 = vst.msk [vmem:[%s210_s11] sm:$0xf] %vm266_vm2, %v262_v11 }
  0x97   : > { %425 = vst.msk [vmem:[%s210_s11 + $0x4] sm:$0xf] %vm266_vm2, %v295_v12  ;;  %v257_v13 = vpop.f32.mrf.mxu2 }
  0x98   : > { %v258_v14 = vadd.f32 %v475_v6, %v257_v13  ;;  %v290_v15 = vpop.f32.mrf.mxu3 }
  0x99   : > { %v291_v16 = vadd.f32 %v475_v6, %v290_v15  ;;  %v254_v17 = vpop.f32.mrf.mxu0 }
  0x9a   : > { %v264_v18 = vpack.c.bf16 %v258_v14, %v258_v14  ;;  %v255_v19 = vadd.f32 %v475_v6, %v254_v17  ;;  %v287_v20 = vpop.f32.mrf.mxu1 }
  0x9b   : > { %v297_v21 = vpack.c.bf16 %v291_v16, %v291_v16  ;;  %v288_v22 = vadd.f32 %v475_v6, %v287_v20 }
  0x9c   : > { %269 = vst.msk [vmem:[%s210_s11 + $0x10] sm:$0xf] %vm266_vm2, %v264_v18  ;;  %v263_v23 = vpack.c.bf16 %v255_v19, %v255_v19 }
  0x9d   : > { %427 = vst.msk [vmem:[%s210_s11 + $0x14] sm:$0xf] %vm266_vm2, %v297_v21  ;;  %v296_v24 = vpack.c.bf16 %v288_v22, %v288_v22 }
  0x9e   : > { %268 = vst.msk [vmem:[%s210_s11 + $0x8] sm:$0xf] %vm266_vm2, %v263_v23 }
  0x9f   : > { %426 = vst.msk [vmem:[%s210_s11 + $0xc] sm:$0xf] %vm266_vm2, %v296_v24  ;;  %v259_v25 = vpop.f32.mrf.mxu2 }
  0xa0   : > { %v260_v26 = vadd.f32 %v475_v6, %v259_v25  ;;  %v292_v27 = vpop.f32.mrf.mxu3 }
  0xa1   : > { %v293_v28 = vadd.f32 %v475_v6, %v292_v27 }
  0xa2   : > { %v265_v29 = vpack.c.bf16 %v260_v26, %v260_v26 }
  0xa3   : > { %v298_v30 = vpack.c.bf16 %v293_v28, %v293_v28 }
  0xa4   : > { %270 = vst.msk [vmem:[%s210_s11 + $0x18] sm:$0xf] %vm266_vm2, %v265_v29 }
  0xa5   : > { %428 = vst.msk [vmem:[%s210_s11 + $0x1c] sm:$0xf] %vm266_vm2, %v298_v30 }
  0xa6 PF: > { %s13_s16 = sadd.s32 1, %s514_s16   ;;  %s611_s12 = smov %s506_s14 }
  0xa7   : > { %p10_p7 = scmp.ge.s32.totalorder %s13_s16, 6   ;;  %s612_s13 = smov %s510_s15 }
  0xa8   : > { %s613_s14 = smov %s616_s17  ;;  %s614_s15 = smov %s620_s18 }
  0xa9   :  { %12 = sbr.rel (!%p10_p7) target bundleno = 3 (0x3), region = 64 }

// kernel: upblock_forward.7
= control target key start
LH: loop header
LB: loop body
LE: loop exit
PB: predicated region body
PF: predicated region fallthrough
CT: control target
= control target key end

     0   :  { %s575_s12 = smov 0   ;;  %s577_s13 = smov 0   ;;  %s716_s0 = inlined_call_operand.vmem [shape: bf16[2,16,16,4], index: 0, kind: input, shape index: {}]   ;;  %s717_s1 = inlined_call_operand.vmem [shape: f32[1,4], index: 1, kind: input, shape index: {}]   ;;  %s718_s2 = inlined_call_operand.vmem [shape: f32[1,4], index: 2, kind: input, shape index: {}]   ;;  %s719_s3 = inlined_call_operand.vmem [shape: f32[2,16,16,4], index: 3, kind: output, shape index: {}]  }
   0x1   :  { %s579_s14 = smov 0   ;;  %s581_s15 = smov 0  }
   0x2   :  { %s583_s16 = smov 0  }
   0x3 LB: > { %s22_s17 = sadd.s32 1, %s545_s14  ;;  %s25_s18 = sadd.s32 1, %s549_s15  ;;  %s553_s16 = sphi %s583_s16, %s13_s16   ;;  %s549_s15 = sphi %s581_s15, %s723_s15   ;;  %s545_s14 = sphi %s579_s14, %s722_s14   ;;  %s541_s13 = sphi %s577_s13, %s721_s13   ;;  %s537_s12 = sphi %s575_s12, %s720_s12  }
   0x4   : > { %p23_p0 = scmp.ge.s32.totalorder %s22_s17, 2  ;;  %p423_p1 = scmp.ge.s32.totalorder %s553_s16, 1 }
   0x5   : > { %p159_p2 = scmp.lt.s32.totalorder %s553_s16, 5 }
   0x6   : > { %s725_s17 = smov (%p23_p0, %s22_s17), 0  ;;  %s727_s18 = smov (!%p23_p0, %s25_s18), %s549_s15 }
   0x7   : > { %p160_p3 = pnand %p423_p1, %p159_p2  ;;  %p27_p4 = scmp.ge.s32.totalorder %s727_s18, 2 }
   0x8   : > { %s424_s19 = sshll.u32 (!%p160_p3), %s537_s12, 3  ;;  %p194_p5 = scmp.lt.s32.totalorder (!%p160_p3), %s541_s13, 1 }
   0x9   : > { %s729_s18 = smov (%p27_p4, %s727_s18), 0  ;;  %163 = sbr.rel (%p160_p3) target bundleno = 44 (0x2c), region = 32 }
   0xa   : > { %p196_p6 = scmp.lt.s32.totalorder (!%p160_p3), %s424_s19, 15 }
   0xe   : > { %s731_s13 = smov (!%p194_p5, %s541_s13), 1  ;;  %s733_s19 = smov (!%p196_p6, %s424_s19), 15  ;;  %v616_v0 = vld [vmem:[%s717_s1] ss:$0 sm:$0xff]  ;;  %vm303_vm0 = vcmask 31744  }
   0xf   : > { %s426_s20 = sshll.u32 %s731_s13, 5  ;;  %s425_s21 = sshll.u32 %s733_s19, 1  ;;  %v624_v5 = vld [vmem:[%s718_s2] ss:$0 sm:$0xff] }
  0x10   : > { %s605_s22 = sadd.s32 %s426_s20, %s425_s21 }
  0x11   : > { %s427_s23 = sshll.u32 %s605_s22, 2  ;;  %s431_s4 = sshll.u32 %s605_s22, 3 }
  0x12   : > { %s611_s26 = scalar_lea.vmem %s716_s0, %s427_s23  ;;  %s643_s7 = scalar_lea.vmem %s719_s3, %s431_s4 }
  0x13   : > { %v435_v1 = vld [vmem:[%s611_s26] sm:$0xff]   ;;  %v466_v2 = vld [vmem:[%s611_s26 + $0x8] sm:$0xff]   ;;  %v467_v3 = vld [vmem:[%s611_s26 + $0x10] sm:$0xff]  }
  0x14   : > { %v436_v4 = vunpack.c.l.bf16 %v435_v1  ;;  %v437_v6 = vunpack.c.h.bf16 %v435_v1  ;;  %v440_v7 = vunpack.c.l.bf16 %v466_v2  ;;  %v441_v8 = vunpack.c.h.bf16 %v466_v2  ;;  %v468_v9 = vld [vmem:[%s611_s26 + $0x18] sm:$0xff]   ;;  %v469_v30 = vld [vmem:[%s611_s26 + $0x20] sm:$0xff]   ;;  %v470_v31 = vld [vmem:[%s611_s26 + $0x28] sm:$0xff]  }
  0x15   : > { %v444_v10 = vunpack.c.l.bf16 %v467_v3  ;;  %v445_v11 = vunpack.c.h.bf16 %v467_v3  ;;  %v448_v12 = vunpack.c.l.bf16 %v468_v9  ;;  %v449_v13 = vunpack.c.h.bf16 %v468_v9  ;;  %v471_v36 = vld [vmem:[%s611_s26 + $0x30] sm:$0xff]   ;;  %v472_v37 = vld [vmem:[%s611_s26 + $0x38] sm:$0xff]  }
  0x16   : > { %v252_v14 = vmul.f32 %v616_v0, %v436_v4  ;;  %v253_v15 = vmul.f32 %v616_v0, %v437_v6  ;;  %v254_v16 = vmul.f32 %v616_v0, %v440_v7  ;;  %v255_v17 = vmul.f32 %v616_v0, %v441_v8 }
  0x17   : > { %v256_v18 = vmul.f32 %v616_v0, %v444_v10  ;;  %v257_v19 = vmul.f32 %v616_v0, %v445_v11  ;;  %v258_v20 = vmul.f32 %v616_v0, %v448_v12  ;;  %v259_v21 = vmul.f32 %v616_v0, %v449_v13 }
  0x18   : > { %v271_v22 = vadd.f32 %v624_v5, %v252_v14  ;;  %v272_v23 = vadd.f32 %v624_v5, %v253_v15  ;;  %v273_v24 = vadd.f32 %v624_v5, %v254_v16  ;;  %v274_v25 = vadd.f32 %v624_v5, %v255_v17 }
  0x19   : > { %v275_v26 = vadd.f32 %v624_v5, %v256_v18  ;;  %v276_v27 = vadd.f32 %v624_v5, %v257_v19  ;;  %v277_v28 = vadd.f32 %v624_v5, %v258_v20  ;;  %v278_v29 = vadd.f32 %v624_v5, %v259_v21 }
  0x1a   : > { %v287_v32 = vmax.f32 %v271_v22, 0.0  ;;  %v288_v33 = vmax.f32 %v272_v23, 0.0  ;;  %v289_v34 = vmax.f32 %v273_v24, 0.0  ;;  %v290_v35 = vmax.f32 %v274_v25, 0.0 }
  0x1b   : > { %v291_v38 = vmax.f32 %v275_v26, 0.0  ;;  %v292_v39 = vmax.f32 %v276_v27, 0.0  ;;  %v293_v40 = vmax.f32 %v277_v28, 0.0  ;;  %v294_v41 = vmax.f32 %v278_v29, 0.0 }
  0x1c   : > { %304 = vst.msk [vmem:[%s643_s7] sm:$0xff] %vm303_vm0, %v287_v32  ;;  %v452_v42 = vunpack.c.l.bf16 %v469_v30  ;;  %v453_v43 = vunpack.c.h.bf16 %v469_v30  ;;  %v456_v44 = vunpack.c.l.bf16 %v470_v31  ;;  %v457_v45 = vunpack.c.h.bf16 %v470_v31 }
  0x1d   : > { %305 = vst.msk [vmem:[%s643_s7 + $0x8] sm:$0xff] %vm303_vm0, %v288_v33  ;;  %v460_v46 = vunpack.c.l.bf16 %v471_v36  ;;  %v461_v47 = vunpack.c.h.bf16 %v471_v36  ;;  %v464_v48 = vunpack.c.l.bf16 %v472_v37  ;;  %v465_v49 = vunpack.c.h.bf16 %v472_v37 }
  0x1e   : > { %306 = vst.msk [vmem:[%s643_s7 + $0x10] sm:$0xff] %vm303_vm0, %v289_v34  ;;  %v260_v50 = vmul.f32 %v616_v0, %v452_v42  ;;  %v261_v51 = vmul.f32 %v616_v0, %v453_v43  ;;  %v262_v52 = vmul.f32 %v616_v0, %v456_v44  ;;  %v263_v53 = vmul.f32 %v616_v0, %v457_v45 }
  0x1f   : > { %307 = vst.msk [vmem:[%s643_s7 + $0x18] sm:$0xff] %vm303_vm0, %v290_v35  ;;  %v264_v54 = vmul.f32 %v616_v0, %v460_v46  ;;  %v265_v55 = vmul.f32 %v616_v0, %v461_v47  ;;  %v266_v56 = vmul.f32 %v616_v0, %v464_v48  ;;  %v267_v57 = vmul.f32 %v616_v0, %v465_v49 }
  0x20   : > { %308 = vst.msk [vmem:[%s643_s7 + $0x20] sm:$0xff] %vm303_vm0, %v291_v38  ;;  %v279_v58 = vadd.f32 %v624_v5, %v260_v50  ;;  %v280_v59 = vadd.f32 %v624_v5, %v261_v51  ;;  %v281_v60 = vadd.f32 %v624_v5, %v262_v52  ;;  %v282_v61 = vadd.f32 %v624_v5, %v263_v53 }
  0x21   : > { %309 = vst.msk [vmem:[%s643_s7 + $0x28] sm:$0xff] %vm303_vm0, %v292_v39  ;;  %v283_v62 = vadd.f32 %v624_v5, %v264_v54  ;;  %v284_v63 = vadd.f32 %v624_v5, %v265_v55  ;;  %v285_v3 = vadd.f32 %v624_v5, %v266_v56  ;;  %v286_v6 = vadd.f32 %v624_v5, %v267_v57 }
  0x22   : > { %310 = vst.msk [vmem:[%s643_s7 + $0x30] sm:$0xff] %vm303_vm0, %v293_v40  ;;  %v295_v0 = vmax.f32 %v279_v58, 0.0  ;;  %v296_v1 = vmax.f32 %v280_v59, 0.0  ;;  %v297_v2 = vmax.f32 %v281_v60, 0.0  ;;  %v298_v4 = vmax.f32 %v282_v61, 0.0 }
  0x23   : > { %311 = vst.msk [vmem:[%s643_s7 + $0x38] sm:$0xff] %vm303_vm0, %v294_v41  ;;  %v299_v7 = vmax.f32 %v283_v62, 0.0  ;;  %v300_v8 = vmax.f32 %v284_v63, 0.0  ;;  %v301_v9 = vmax.f32 %v285_v3, 0.0  ;;  %v302_v10 = vmax.f32 %v286_v6, 0.0 }
  0x24   : > { %312 = vst.msk [vmem:[%s643_s7 + $0x40] sm:$0xff] %vm303_vm0, %v295_v0 }
  0x25   : > { %313 = vst.msk [vmem:[%s643_s7 + $0x48] sm:$0xff] %vm303_vm0, %v296_v1 }
  0x26   : > { %314 = vst.msk [vmem:[%s643_s7 + $0x50] sm:$0xff] %vm303_vm0, %v297_v2 }
  0x27   : > { %315 = vst.msk [vmem:[%s643_s7 + $0x58] sm:$0xff] %vm303_vm0, %v298_v4 }
  0x28   : > { %316 = vst.msk [vmem:[%s643_s7 + $0x60] sm:$0xff] %vm303_vm0, %v299_v7 }
  0x29   : > { %317 = vst.msk [vmem:[%s643_s7 + $0x68] sm:$0xff] %vm303_vm0, %v300_v8 }
  0x2a   : > { %318 = vst.msk [vmem:[%s643_s7 + $0x70] sm:$0xff] %vm303_vm0, %v301_v9 }
  0x2b   : > { %319 = vst.msk [vmem:[%s643_s7 + $0x78] sm:$0xff] %vm303_vm0, %v302_v10 }
  0x2c PF: > { %s13_s16 = sadd.s32 1, %s553_s16   ;;  %s720_s12 = smov %s545_s14 }
  0x2d   : > { %p10_p7 = scmp.ge.s32.totalorder %s13_s16, 6   ;;  %s721_s13 = smov %s549_s15 }
  0x2e   : > { %s722_s14 = smov %s725_s17  ;;  %s723_s15 = smov %s729_s18 }
  0x2f   :  { %12 = sbr.rel (!%p10_p7) target bundleno = 3 (0x3), region = 62 }

// kernel: upblock_forward.6
= control target key start
LH: loop header
LB: loop body
LE: loop exit
PB: predicated region body
PF: predicated region fallthrough
CT: control target
= control target key end

     0   :  { %s3182_s30 = smov 0   ;;  %s3184_s10 = smov 0   ;;  %s4267_s0 = inlined_call_operand.vmem [shape: bf16[2,16,16,4], index: 0, kind: input, shape index: {}, may-alias: {0,1,2}]   ;;  %s4268_s1 = inlined_call_operand.vmem [shape: bf16[2,16,16,4], index: 1, kind: input, shape index: {}, may-alias: {0,1,2}]   ;;  %s4269_s2 = inlined_call_operand.vmem [shape: bf16[2,16,16,4], index: 2, kind: input, shape index: {}, may-alias: {0,1,2}]   ;;  %s4270_s3 = inlined_call_operand.vmem [shape: bf16[3,4,12], index: 3, kind: input, shape index: {}]   ;;  %s4271_s4 = inlined_call_operand.vmem [shape: f32[1,4], index: 4, kind: input, shape index: {}]   ;;  %s4272_s5 = inlined_call_operand.vmem [shape: f32[1,4], index: 5, kind: input, shape index: {}]   ;;  %s4273_s6 = inlined_call_operand.vmem [shape: f32[1,4], index: 6, kind: input, shape index: {}]   ;;  %s4274_s7 = inlined_call_operand.vmem [shape: bf16[2,16,16,4], index: 7, kind: output, shape index: {0}]   ;;  %s4275_s8 = inlined_call_operand.vmem [shape: f32[2,2,1,4], index: 8, kind: output, shape index: {1}]   ;;  %s4276_s9 = inlined_call_operand.vmem [shape: f32[2,2,1,4], index: 9, kind: output, shape index: {2}]  }
   0x1   :  { %s3186_s11 = smov 0   ;;  %s3188_s12 = smov 0  }
   0x2   :  { %s3190_s13 = smov 0  }
   0x3 LB: > { %s29_s14 = sadd.s32 1, %s3118_s11  ;;  %s32_s15 = sadd.s32 1, %s3122_s12  ;;  %s3126_s13 = sphi %s3190_s13, %s20_s13   ;;  %s3122_s12 = sphi %s3188_s12, %s4293_s12   ;;  %s3118_s11 = sphi %s3186_s11, %s4292_s11   ;;  %s3114_s10 = sphi %s3184_s10, %s4291_s10   ;;  %s3110_s30 = sphi %s3182_s30, %s4290_s30  }
   0x4   : > { %p30_p0 = scmp.ge.s32.totalorder %s29_s14, 2  ;;  %p2731_p1 = scmp.ge.s32.totalorder %s3126_s13, 1 }
   0x5   : > { %p382_p2 = scmp.lt.s32.totalorder %s3126_s13, 5 }
   0x6   : > { %s4295_s14 = smov (%p30_p0, %s29_s14), 0  ;;  %s4297_s15 = smov (!%p30_p0, %s32_s15), %s3122_s12 }
   0x7   : > { %p383_p3 = pnand %p2731_p1, %p382_p2  ;;  %p34_p4 = scmp.ge.s32.totalorder %s4297_s15, 2 }
   0x8   : > { %s3229_s16 = sshll.u32 (!%p383_p3), %s3110_s30, 3  ;;  %p469_p5 = scmp.lt.s32.totalorder (!%p383_p3), %s3114_s10, 1 }
   0x9   : > { %s4299_s15 = smov (%p34_p4, %s4297_s15), 0  ;;  %386 = sbr.rel (%p383_p3) target bundleno = 688 (0x2b0), region = 48 }
   0xa   : > { %p471_p6 = scmp.lt.s32.totalorder (!%p383_p3), %s3229_s16, 15  ;;  %s2737_s21 = sadd.s32 (!%p383_p3), 4294967295, %s3229_s16 }
   0xb   : > { %p481_p7 = scmp.gt.s32.totalorder (!%p383_p3), %s2737_s21, 0  ;;  %p2738_p8 = scmp.lt.s32.totalorder (!%p383_p3), %s2737_s21, 15 }
   0xc   : > { %s2954_s26 = sadd.s32 (!%p383_p3), 8, %s3229_s16  ;;  %p526_p10 = scmp.lt.s32.totalorder (!%p383_p3), %s3110_s30, 1 }
   0xd   : > { %p3290_p9 = scmp.lt.s32.totalorder (!%p383_p3), %s2954_s26, 15  ;;  %p2759_p11 = scmp.ne.s32.totalorder (!%p383_p3), %s3110_s30, 0 }
   0xe   : > { %vm539_vm0 = vcmask 24576   ;;  %vm540_vm1 = vsmask.f32 256  ;;  %v545_v0 = vld [vmem:[#allocation2 + $0xc] sm:$0x1]  ;;  %vm572_vm2 = vcmask 27648  }
   0xf   : > { %vm3218_vm3 = vmand %vm539_vm0, %vm540_vm1  ;;  %v548_v2 = vld [vmem:[#allocation2 + $0x18] sm:$0x1]  ;;  %v551_v3 = vld [vmem:[#allocation2 + $0x24] sm:$0x1]  ;;  %vm573_vm4 = vsmask.f32 7938 }
  0x10   : > { %v546_v4 = vsel %vm3218_vm3, 0, %v545_v0  ;;  %v549_v5 = vsel %vm3218_vm3, 0, %v548_v2  ;;  %v552_v6 = vsel %vm3218_vm3, 0, %v551_v3  ;;  %v554_v7 = vld [vmem:[#allocation2 + $0x30] sm:$0x1]  ;;  %vm3241_vm5 = vmand %vm572_vm2, %vm573_vm4  ;;  %s4301_s10 = smov (!%p469_p5, %s3114_s10), 1 }
  0x11   : > { %547 = vst [vmem:[#allocation2 + $0xc] sm:$0x1] %v546_v4  ;;  %v555_v8 = vsel %vm3218_vm3, 0, %v554_v7  ;;  %v557_v9 = vld [vmem:[#allocation2 + $0x3c] sm:$0x1]  ;;  %s472_s17 = scalar_select %p471_p6, %s3229_s16, 15 }
  0x12   : > { %550 = vst [vmem:[#allocation2 + $0x18] sm:$0x1] %v549_v5  ;;  %v558_v10 = vsel %vm3218_vm3, 0, %v557_v9  ;;  %v560_v11 = vld [vmem:[#allocation2 + $0x48] sm:$0x1]  ;;  %s3254_s18 = sshll.u32 %s4301_s10, 5 }
  0x13   : > { %553 = vst [vmem:[#allocation2 + $0x24] sm:$0x1] %v552_v6  ;;  %v561_v12 = vsel %vm3218_vm3, 0, %v560_v11  ;;  %v563_v13 = vld [vmem:[#allocation2 + $0x54] sm:$0x1]  ;;  %s2733_s19 = sshll.u32 %s472_s17, 1 }
  0x14   : > { %556 = vst [vmem:[#allocation2 + $0x30] sm:$0x1] %v555_v8  ;;  %v564_v15 = vsel %vm3218_vm3, 0, %v563_v13  ;;  %v566_v16 = vld [vmem:[#allocation2 + $0x60] sm:$0x1]  ;;  %s3261_s20 = sadd.s32 %s3254_s18, %s2733_s19  ;;  %s4303_s21 = smov (!%p481_p7, %s2737_s21), 0 }
  0x15   : > { %559 = vst [vmem:[#allocation2 + $0x3c] sm:$0x1] %v558_v10  ;;  %v567_v17 = vsel %vm3218_vm3, 0, %v566_v16  ;;  %v578_v18 = vld [vmem:[#allocation2 + $0x14] sm:$0xf]  ;;  %s2735_s22 = sshll.u32 %s3261_s20, 2 }
  0x16   : > { %562 = vst [vmem:[#allocation2 + $0x48] sm:$0x1] %v561_v12  ;;  %v579_v19 = vsel %vm3241_vm5, 0, %v578_v18  ;;  %v581_v20 = vld [vmem:[#allocation2 + $0x20] sm:$0xf]  ;;  %s3274_s25 = scalar_lea.vmem %s4274_s7, %s2735_s22  ;;  %s4305_s21 = smov (!%p2738_p8, %s4303_s21), 15 }
  0x17   : > { %565 = vst [vmem:[#allocation2 + $0x54] sm:$0x1] %v564_v15  ;;  %v582_v21 = vsel %vm3241_vm5, 0, %v581_v20  ;;  %v584_v22 = vld [vmem:[#allocation2 + $0x2c] sm:$0xf]  ;;  %s3288_s29 = scalar_lea.vmem %s4267_s0, %s2735_s22  ;;  %s2743_s17 = sshll.u32 %s4305_s21, 1 }
  0x18   : > { %568 = vst [vmem:[#allocation2 + $0x60] sm:$0x1] %v567_v17  ;;  %v585_v23 = vsel %vm3241_vm5, 0, %v584_v22  ;;  %v587_v24 = vld [vmem:[#allocation2 + $0x38] sm:$0xf]  ;;  %s489_s19 = sadd.s32 %s2743_s17, %s3254_s18  ;;  %s2757_s22 = sshll.u32 %s4301_s10, 1 }
  0x19   : > { %580 = vst [vmem:[#allocation2 + $0x14] sm:$0xf] %v579_v19  ;;  %v588_v25 = vsel %vm3241_vm5, 0, %v587_v24  ;;  %v590_v26 = vld [vmem:[#allocation2 + $0x44] sm:$0xf]  ;;  %s2745_s20 = sshll.u32 %s489_s19, 2 }
  0x1a   : > { %583 = vst [vmem:[#allocation2 + $0x20] sm:$0xf] %v582_v21  ;;  %v591_v27 = vsel %vm3241_vm5, 0, %v590_v26  ;;  %v593_v28 = vld [vmem:[#allocation2 + $0x50] sm:$0xf]  ;;  %v2992_v42 = vld [vmem:[%s3288_s29] sm:$0xff]   ;;  %s3307_s24 = scalar_lea.vmem %s4268_s1, %s2745_s20 }
  0x1b   : > { %586 = vst [vmem:[#allocation2 + $0x2c] sm:$0xf] %v585_v23  ;;  %v594_v29 = vsel %vm3241_vm5, 0, %v593_v28  ;;  %v596_v30 = vld [vmem:[#allocation2 + $0x5c] sm:$0xf]  ;;  %v2993_v43 = vunpack.c.l.bf16 %v2992_v42  ;;  %v2994_v44 = vunpack.c.h.bf16 %v2992_v42  ;;  %s4307_s26 = smov (!%p3290_p9, %s2954_s26), 15 }
  0x1c   : > { %589 = vst [vmem:[#allocation2 + $0x38] sm:$0xf] %v588_v25  ;;  %v597_v31 = vsel %vm3241_vm5, 0, %v596_v30  ;;  %v599_v32 = vld [vmem:[#allocation2 + $0x68] sm:$0xf]  ;;  %s527_s10 = scalar_select %p526_p10, %s3110_s30, 1 }
  0x1d   : > { %592 = vst [vmem:[#allocation2 + $0x44] sm:$0xf] %v591_v27  ;;  %v600_v33 = vsel %vm3241_vm5, 0, %v599_v32  ;;  %v542_v34 = vld [vmem:[#allocation2] sm:$0x1]  ;;  %v3031_v46 = vld [vmem:[%s3288_s29 + $0x8] sm:$0xff]  }
  0x1e   : > { %595 = vst [vmem:[#allocation2 + $0x50] sm:$0xf] %v594_v29  ;;  %v543_v35 = vsel %vm3218_vm3, 0, %v542_v34  ;;  %v569_v36 = vld [vmem:[#allocation2 + $0x6c] sm:$0x1]  ;;  %v2997_v48 = vunpack.c.l.bf16 %v3031_v46  ;;  %v2998_v49 = vunpack.c.h.bf16 %v3031_v46  ;;  %v3032_v50 = vld [vmem:[%s3288_s29 + $0x10] sm:$0xff]   ;;  %s3331_s20 = sadd.s32 %s2757_s22, %s527_s10 }
  0x1f   : > { %598 = vst [vmem:[#allocation2 + $0x5c] sm:$0xf] %v597_v31  ;;  %v570_v37 = vsel %vm3218_vm3, 0, %v569_v36  ;;  %v575_v38 = vld [vmem:[#allocation2 + $0x8] sm:$0xf]  ;;  %s4309_s26 = smov (!%p3290_p9, %s4307_s26), 15  ;;  %v3001_v53 = vunpack.c.l.bf16 %v3032_v50  ;;  %v3002_v57 = vunpack.c.h.bf16 %v3032_v50  ;;  %s530_s27 = scalar_lea.vmem %s4275_s8, %s3331_s20 }
  0x20   : > { %601 = vst [vmem:[#allocation2 + $0x68] sm:$0xf] %v600_v33  ;;  %v576_v39 = vsel %vm3241_vm5, 0, %v575_v38  ;;  %v602_v40 = vld [vmem:[#allocation2 + $0x74] sm:$0xf]  ;;  %v3033_v54 = vld [vmem:[%s3288_s29 + $0x18] sm:$0xff]   ;;  %s537_s17 = scalar_lea.vmem %s4276_s9, %s3331_s20 }
  0x21   : > { %544 = vst [vmem:[#allocation2] sm:$0x1] %v543_v35  ;;  %v603_v41 = vsel %vm3241_vm5, 0, %v602_v40  ;;  %v3314_v45 = vld [vmem:[%s4272_s5] ss:$0 sm:$0xff]  ;;  %v3005_v58 = vunpack.c.l.bf16 %v3033_v54  ;;  %s2750_s16 = sshll.u32 %s4309_s26, 1  ;;  %v3006_v62 = vunpack.c.h.bf16 %v3033_v54 }
  0x22   : > { %571 = vst [vmem:[#allocation2 + $0x6c] sm:$0x1] %v570_v37  ;;  %v3323_v47 = vld [vmem:[%s4273_s6] ss:$0 sm:$0xff]  ;;  %v642_v51 = vmul.f32 %v3314_v45, %v2993_v43  ;;  %v643_v52 = vmul.f32 %v3314_v45, %v2994_v44  ;;  %vm709_vm6 = vsmask.f32 4368  ;;  %v644_v55 = vmul.f32 %v3314_v45, %v2997_v48  ;;  %s506_s22 = sadd.s32 %s2750_s16, %s3254_s18 }
  0x23   : > { %577 = vst [vmem:[#allocation2 + $0x8] sm:$0xf] %v576_v39  ;;  %v645_v56 = vmul.f32 %v3314_v45, %v2998_v49  ;;  %v646_v61 = vmul.f32 %v3314_v45, %v3001_v53  ;;  %v647_v2 = vmul.f32 %v3314_v45, %v3002_v57  ;;  %v648_v3 = vmul.f32 %v3314_v45, %v3005_v58  ;;  %s3351_s26 = sshll.u32 %s506_s22, 2  ;;  %v872_v30 = vld [vmem:[#allocation2 + $0xc] sm:$0xf]  ;;  %vm3364_vm7 = vmor %vm540_vm1, %vm709_vm6 }
  0x24   : > { %604 = vst [vmem:[#allocation2 + $0x74] sm:$0xf] %v603_v41  ;;  %v661_v59 = vadd.f32 %v3323_v47, %v642_v51  ;;  %v662_v60 = vadd.f32 %v3323_v47, %v643_v52  ;;  %v663_v63 = vadd.f32 %v3323_v47, %v644_v55  ;;  %v649_v7 = vmul.f32 %v3314_v45, %v3006_v62  ;;  %s508_s16 = scalar_lea.vmem %s4269_s2, %s3351_s26  ;;  %v877_v35 = vld [vmem:[#allocation2 + $0x14] sm:$0x1]  ;;  %v880_v44 = vld [vmem:[#allocation2 + $0x18] sm:$0xf] }
  0x25   : > { %v664_v0 = vadd.f32 %v3323_v47, %v645_v56  ;;  %v665_v6 = vadd.f32 %v3323_v47, %v646_v61  ;;  %v666_v10 = vadd.f32 %v3323_v47, %v647_v2  ;;  %v667_v11 = vadd.f32 %v3323_v47, %v648_v3  ;;  %v884_v46 = vld [vmem:[#allocation2 + $0x20] sm:$0x1]  ;;  %v887_v61 = vld [vmem:[#allocation2 + $0x24] sm:$0xf]  ;;  %v891_v3 = vld [vmem:[#allocation2 + $0x2c] sm:$0x1] }
  0x26   : > { %v677_v4 = vmax.f32 %v661_v59, 0.0  ;;  %v678_v5 = vmax.f32 %v662_v60, 0.0  ;;  %v679_v8 = vmax.f32 %v663_v63, 0.0  ;;  %v668_v16 = vadd.f32 %v3323_v47, %v649_v7  ;;  %v3034_v56 = vld [vmem:[%s3288_s29 + $0x20] sm:$0xff]  }
  0x27   : > { %v680_v9 = vmax.f32 %v664_v0, 0.0  ;;  %v681_v15 = vmax.f32 %v665_v6, 0.0  ;;  %v682_v19 = vmax.f32 %v666_v10, 0.0  ;;  %v683_v20 = vmax.f32 %v667_v11, 0.0 }
  0x28   : > { %v693_v12 = vpack.c.bf16 %v677_v4, %v677_v4  ;;  %v694_v13 = vpack.c.bf16 %v678_v5, %v678_v5  ;;  %v695_v17 = vpack.c.bf16 %v679_v8, %v679_v8  ;;  %v684_v39 = vmax.f32 %v668_v16, 0.0  ;;  %v894_v5 = vld [vmem:[#allocation2 + $0x30] sm:$0xf] }
  0x29   : > { %v696_v18 = vpack.c.bf16 %v680_v9, %v680_v9  ;;  %v697_v32 = vpack.c.bf16 %v681_v15, %v681_v15  ;;  %v698_v33 = vpack.c.bf16 %v682_v19, %v682_v19  ;;  %v699_v38 = vpack.c.bf16 %v683_v20, %v683_v20 }
  0x2a   : > { %v712_v21 = vshrl.u32 %v693_v12, 16  ;;  %v715_v22 = vshll.u32 %v693_v12, 16  ;;  %v720_v23 = vshrl.u32 %v694_v13, 16  ;;  %v723_v24 = vshll.u32 %v694_v13, 16 }
  0x2b   : > { %v729_v25 = vshrl.u32 %v695_v17, 16  ;;  %v732_v26 = vshll.u32 %v695_v17, 16  ;;  %v737_v27 = vshrl.u32 %v696_v18, 16  ;;  %v740_v28 = vshll.u32 %v696_v18, 16  ;;  %v3035_v18 = vld [vmem:[%s3288_s29 + $0x28] sm:$0xff]  }
  0x2c   : > { %v714_v29 = vrot.slane %v712_v21, 7  ;;  %v722_v31 = vrot.slane %v720_v23, 7  ;;  %v746_v55 = vshrl.u32 %v697_v32, 16  ;;  %v749_v60 = vshll.u32 %v697_v32, 16 }
  0x2d   : > { %v731_v36 = vrot.slane %v729_v25, 7  ;;  %v739_v37 = vrot.slane %v737_v27, 7  ;;  %v754_v63 = vshrl.u32 %v698_v33, 16  ;;  %v757_v0 = vshll.u32 %v698_v33, 16  ;;  %v3036_v27 = vld [vmem:[%s3288_s29 + $0x30] sm:$0xff]  }
  0x2e   : > { %v717_v40 = vor.u32 %v715_v22, %v714_v29  ;;  %v718_v41 = vrot.slane %v714_v29, 4  ;;  %v725_v42 = vor.u32 %v723_v24, %v722_v31  ;;  %v727_v43 = vrot.slane %v722_v31, 4  ;;  %v898_v31 = vld [vmem:[#allocation2 + $0x38] sm:$0x1] }
  0x2f   : > { %v734_v48 = vor.u32 %v732_v26, %v731_v36  ;;  %v735_v49 = vrot.slane %v731_v36, 4  ;;  %v742_v50 = vor.u32 %v740_v28, %v739_v37  ;;  %v744_v51 = vrot.slane %v739_v37, 4 }
  0x30   : > { %v873_v52 = vsel %vm3241_vm5, %v717_v40, %v872_v30  ;;  %v726_v53 = vsel %vm3364_vm7, %v718_v41, %v725_v42  ;;  %v878_v54 = vsel %vm3218_vm3, %v727_v43, %v877_v35  ;;  %v748_v62 = vrot.slane %v746_v55, 7 }
  0x31   : > { %874 = vst [vmem:[#allocation2 + $0xc] sm:$0xf] %v873_v52  ;;  %v881_v57 = vsel %vm3241_vm5, %v734_v48, %v880_v44  ;;  %v743_v58 = vsel %vm3364_vm7, %v735_v49, %v742_v50  ;;  %v885_v59 = vsel %vm3218_vm3, %v744_v51, %v884_v46  ;;  %v763_v2 = vshrl.u32 %v699_v38, 16  ;;  %v3037_v52 = vld [vmem:[%s3288_s29 + $0x38] sm:$0xff]  }
  0x32   : > { %876 = vst.msk [vmem:[#allocation2 + $0x10] sm:$0xf] %vm572_vm2, %v726_v53  ;;  %v766_v4 = vshll.u32 %v699_v38, 16  ;;  %v700_v6 = vpack.c.bf16 %v684_v39, %v684_v39  ;;  %v3009_v7 = vunpack.c.l.bf16 %v3034_v56  ;;  %v3010_v8 = vunpack.c.h.bf16 %v3034_v56 }
  0x33   : > { %879 = vst [vmem:[#allocation2 + $0x14] sm:$0x1] %v878_v54  ;;  %v751_v9 = vor.u32 %v749_v60, %v748_v62  ;;  %v752_v10 = vrot.slane %v748_v62, 4  ;;  %v756_v11 = vrot.slane %v754_v63, 7  ;;  %v765_v12 = vrot.slane %v763_v2, 7 }
  0x34   : > { %882 = vst [vmem:[#allocation2 + $0x18] sm:$0xf] %v881_v57  ;;  %v771_v13 = vshrl.u32 %v700_v6, 16  ;;  %v774_v15 = vshll.u32 %v700_v6, 16  ;;  %v650_v16 = vmul.f32 %v3314_v45, %v3009_v7  ;;  %v651_v17 = vmul.f32 %v3314_v45, %v3010_v8  ;;  %v901_v62 = vld [vmem:[#allocation2 + $0x3c] sm:$0xf] }
  0x35   : > { %883 = vst.msk [vmem:[#allocation2 + $0x1c] sm:$0xf] %vm572_vm2, %v743_v58  ;;  %v888_v19 = vsel %vm3241_vm5, %v751_v9, %v887_v61  ;;  %v759_v20 = vor.u32 %v757_v0, %v756_v11  ;;  %v761_v21 = vrot.slane %v756_v11, 4  ;;  %v768_v22 = vor.u32 %v766_v4, %v765_v12 }
  0x36   : > { %886 = vst [vmem:[#allocation2 + $0x20] sm:$0x1] %v885_v59  ;;  %v769_v23 = vrot.slane %v765_v12, 4  ;;  %v773_v24 = vrot.slane %v771_v13, 7  ;;  %v669_v25 = vadd.f32 %v3323_v47, %v650_v16  ;;  %v670_v26 = vadd.f32 %v3323_v47, %v651_v17 }
  0x37   : > { %889 = vst [vmem:[#allocation2 + $0x24] sm:$0xf] %v888_v19  ;;  %v760_v28 = vsel %vm3364_vm7, %v752_v10, %v759_v20  ;;  %v892_v29 = vsel %vm3218_vm3, %v761_v21, %v891_v3  ;;  %v895_v30 = vsel %vm3241_vm5, %v768_v22, %v894_v5  ;;  %v3013_v32 = vunpack.c.l.bf16 %v3035_v18  ;;  %v905_v3 = vld [vmem:[#allocation2 + $0x44] sm:$0x1]  ;;  %v908_v20 = vld [vmem:[#allocation2 + $0x48] sm:$0xf] }
  0x38   : > { %890 = vst.msk [vmem:[#allocation2 + $0x28] sm:$0xf] %vm572_vm2, %v760_v28  ;;  %v776_v33 = vor.u32 %v774_v15, %v773_v24  ;;  %v778_v35 = vrot.slane %v773_v24, 4  ;;  %v685_v36 = vmax.f32 %v669_v25, 0.0  ;;  %v686_v37 = vmax.f32 %v670_v26, 0.0 }
  0x39   : > { %893 = vst [vmem:[#allocation2 + $0x2c] sm:$0x1] %v892_v29  ;;  %v652_v38 = vmul.f32 %v3314_v45, %v3013_v32  ;;  %v3014_v39 = vunpack.c.h.bf16 %v3035_v18  ;;  %v3017_v40 = vunpack.c.l.bf16 %v3036_v27  ;;  %v3018_v41 = vunpack.c.h.bf16 %v3036_v27 }
  0x3a   : > { %896 = vst [vmem:[#allocation2 + $0x30] sm:$0xf] %v895_v30  ;;  %v777_v42 = vsel %vm3364_vm7, %v769_v23, %v776_v33  ;;  %v899_v43 = vsel %vm3218_vm3, %v778_v35, %v898_v31  ;;  %v701_v44 = vpack.c.bf16 %v685_v36, %v685_v36  ;;  %v702_v46 = vpack.c.bf16 %v686_v37, %v686_v37  ;;  %v912_v35 = vld [vmem:[#allocation2 + $0x50] sm:$0x1]  ;;  %v915_v36 = vld [vmem:[#allocation2 + $0x54] sm:$0xf] }
  0x3b   : > { %897 = vst.msk [vmem:[#allocation2 + $0x34] sm:$0xf] %vm572_vm2, %v777_v42  ;;  %v671_v48 = vadd.f32 %v3323_v47, %v652_v38  ;;  %v653_v49 = vmul.f32 %v3314_v45, %v3014_v39  ;;  %v654_v50 = vmul.f32 %v3314_v45, %v3017_v40  ;;  %v655_v51 = vmul.f32 %v3314_v45, %v3018_v41 }
  0x3c   : > { %900 = vst [vmem:[#allocation2 + $0x38] sm:$0x1] %v899_v43  ;;  %v780_v53 = vshrl.u32 %v701_v44, 16  ;;  %v783_v54 = vshll.u32 %v701_v44, 16  ;;  %v788_v55 = vshrl.u32 %v702_v46, 16  ;;  %v791_v56 = vshll.u32 %v702_v46, 16 }
  0x3d   : > { %v687_v57 = vmax.f32 %v671_v48, 0.0  ;;  %v672_v58 = vadd.f32 %v3323_v47, %v653_v49  ;;  %v673_v59 = vadd.f32 %v3323_v47, %v654_v50  ;;  %v674_v60 = vadd.f32 %v3323_v47, %v655_v51  ;;  %v919_v44 = vld [vmem:[#allocation2 + $0x5c] sm:$0x1] }
  0x3e   : > { %v782_v61 = vrot.slane %v780_v53, 7  ;;  %v790_v63 = vrot.slane %v788_v55, 7  ;;  %v3021_v0 = vunpack.c.l.bf16 %v3037_v52  ;;  %v3022_v2 = vunpack.c.h.bf16 %v3037_v52 }
  0x3f   : > { %v703_v4 = vpack.c.bf16 %v687_v57, %v687_v57  ;;  %v688_v5 = vmax.f32 %v672_v58, 0.0  ;;  %v689_v6 = vmax.f32 %v673_v59, 0.0  ;;  %v690_v7 = vmax.f32 %v674_v60, 0.0 }
  0x40   : > { %v785_v8 = vor.u32 %v783_v54, %v782_v61  ;;  %v786_v9 = vrot.slane %v782_v61, 4  ;;  %v793_v10 = vor.u32 %v791_v56, %v790_v63  ;;  %v795_v11 = vrot.slane %v790_v63, 4  ;;  %v922_v63 = vld [vmem:[#allocation2 + $0x60] sm:$0xf] }
  0x41   : > { %v797_v12 = vshrl.u32 %v703_v4, 16  ;;  %v800_v13 = vshll.u32 %v703_v4, 16  ;;  %v704_v15 = vpack.c.bf16 %v688_v5, %v688_v5  ;;  %v705_v16 = vpack.c.bf16 %v689_v6, %v689_v6 }
  0x42   : > { %v902_v17 = vsel %vm3241_vm5, %v785_v8, %v901_v62  ;;  %v794_v18 = vsel %vm3364_vm7, %v786_v9, %v793_v10  ;;  %v906_v19 = vsel %vm3218_vm3, %v795_v11, %v905_v3  ;;  %v706_v21 = vpack.c.bf16 %v690_v7, %v690_v7  ;;  %v926_v7 = vld [vmem:[#allocation2 + $0x68] sm:$0x1] }
  0x43   : > { %903 = vst [vmem:[#allocation2 + $0x3c] sm:$0xf] %v902_v17  ;;  %v799_v22 = vrot.slane %v797_v12, 7  ;;  %v805_v23 = vshrl.u32 %v704_v15, 16  ;;  %v808_v24 = vshll.u32 %v704_v15, 16  ;;  %v814_v25 = vshrl.u32 %v705_v16, 16 }
  0x44   : > { %904 = vst.msk [vmem:[#allocation2 + $0x40] sm:$0xf] %vm572_vm2, %v794_v18  ;;  %v817_v26 = vshll.u32 %v705_v16, 16  ;;  %v822_v27 = vshrl.u32 %v706_v21, 16  ;;  %v825_v28 = vshll.u32 %v706_v21, 16  ;;  %v656_v29 = vmul.f32 %v3314_v45, %v3021_v0 }
  0x45   : > { %907 = vst [vmem:[#allocation2 + $0x44] sm:$0x1] %v906_v19  ;;  %v802_v30 = vor.u32 %v800_v13, %v799_v22  ;;  %v803_v31 = vrot.slane %v799_v22, 4  ;;  %v807_v32 = vrot.slane %v805_v23, 7  ;;  %v816_v33 = vrot.slane %v814_v25, 7 }
  0x46   : > { %v824_v37 = vrot.slane %v822_v27, 7  ;;  %v675_v38 = vadd.f32 %v3323_v47, %v656_v29  ;;  %v657_v39 = vmul.f32 %v3314_v45, %v3022_v2 }
  0x47   : > { %v909_v40 = vsel %vm3241_vm5, %v802_v30, %v908_v20  ;;  %v810_v41 = vor.u32 %v808_v24, %v807_v32  ;;  %v812_v42 = vrot.slane %v807_v32, 4  ;;  %v819_v43 = vor.u32 %v817_v26, %v816_v33 }
  0x48   : > { %910 = vst [vmem:[#allocation2 + $0x48] sm:$0xf] %v909_v40  ;;  %v820_v46 = vrot.slane %v816_v33, 4  ;;  %v827_v48 = vor.u32 %v825_v28, %v824_v37  ;;  %v829_v49 = vrot.slane %v824_v37, 4  ;;  %v691_v50 = vmax.f32 %v675_v38, 0.0 }
  0x49   : > { %v811_v51 = vsel %vm3364_vm7, %v803_v31, %v810_v41  ;;  %v913_v52 = vsel %vm3218_vm3, %v812_v42, %v912_v35  ;;  %v916_v53 = vsel %vm3241_vm5, %v819_v43, %v915_v36  ;;  %v676_v54 = vadd.f32 %v3323_v47, %v657_v39 }
  0x4a   : > { %911 = vst.msk [vmem:[#allocation2 + $0x4c] sm:$0xf] %vm572_vm2, %v811_v51  ;;  %v828_v55 = vsel %vm3364_vm7, %v820_v46, %v827_v48  ;;  %v707_v56 = vpack.c.bf16 %v691_v50, %v691_v50  ;;  %v920_v57 = vsel %vm3218_vm3, %v829_v49, %v919_v44 }
  0x4b   : > { %914 = vst [vmem:[#allocation2 + $0x50] sm:$0x1] %v913_v52  ;;  %v692_v58 = vmax.f32 %v676_v54, 0.0 }
  0x4c   : > { %917 = vst [vmem:[#allocation2 + $0x54] sm:$0xf] %v916_v53  ;;  %v831_v59 = vshrl.u32 %v707_v56, 16  ;;  %v834_v60 = vshll.u32 %v707_v56, 16 }
  0x4d   : > { %918 = vst.msk [vmem:[#allocation2 + $0x58] sm:$0xf] %vm572_vm2, %v828_v55  ;;  %v708_v61 = vpack.c.bf16 %v692_v58, %v692_v58 }
  0x4e   : > { %921 = vst [vmem:[#allocation2 + $0x5c] sm:$0x1] %v920_v57  ;;  %v833_v62 = vrot.slane %v831_v59, 7 }
  0x4f   : > { %v839_v0 = vshrl.u32 %v708_v61, 16  ;;  %v842_v2 = vshll.u32 %v708_v61, 16 }
  0x50   : > { %v836_v3 = vor.u32 %v834_v60, %v833_v62  ;;  %v837_v4 = vrot.slane %v833_v62, 4 }
  0x51   : > { %v841_v5 = vrot.slane %v839_v0, 7 }
  0x52   : > { %v923_v6 = vsel %vm3241_vm5, %v836_v3, %v922_v63 }
  0x53   : > { %924 = vst [vmem:[#allocation2 + $0x60] sm:$0xf] %v923_v6  ;;  %v844_v8 = vor.u32 %v842_v2, %v841_v5  ;;  %v846_v9 = vrot.slane %v841_v5, 4  ;;  %932 = sbr.rel (%p2759_p11) target bundleno = 92 (0x5c), region = 52 }
  0x55   : > { %v845_v10 = vsel %vm3364_vm7, %v837_v4, %v844_v8  ;;  %v927_v11 = vsel %vm3218_vm3, %v846_v9, %v926_v7 }
  0x56   : > { %925 = vst.msk [vmem:[#allocation2 + $0x64] sm:$0xf] %vm572_vm2, %v845_v10 }
  0x57   : > { %928 = vst [vmem:[#allocation2 + $0x68] sm:$0x1] %v927_v11 }
  0x58   : > { %v933_v12 = vld [vmem:[#allocation2] sm:$0xf]  ;;  %v937_v13 = vld [vmem:[#allocation2 + $0x8] sm:$0x1]  ;;  %v3128_v16 = vmov 0  }
  0x59   : > { %v934_v15 = vsel %vm3241_vm5, 0, %v933_v12  ;;  %936 = vst.msk [vmem:[#allocation2 + $0x4] sm:$0xf] %vm572_vm2, %v3128_v16  ;;  %v938_v17 = vsel %vm3218_vm3, 0, %v937_v13 }
  0x5a   : > { %935 = vst [vmem:[#allocation2] sm:$0xf] %v934_v15 }
  0x5b   : > { %939 = vst [vmem:[#allocation2 + $0x8] sm:$0x1] %v938_v17 }
  0x5c PF: > { %p2760_p12 = scmp.le.s32.totalorder %s3110_s30, 0 }
  0x5e   : > { %943 = sbr.rel (%p2760_p12) target bundleno = 120 (0x78), region = 56 }
  0x63   : > { %v3024_v18 = vld [vmem:[%s3307_s24] sm:$0xff]   ;;  %v980_v37 = vld [vmem:[#allocation2 + $0x8] sm:$0x1] }
  0x64   : > { %v3025_v19 = vunpack.c.l.bf16 %v3024_v18  ;;  %v3026_v20 = vunpack.c.h.bf16 %v3024_v18  ;;  %v976_v36 = vld [vmem:[#allocation2] sm:$0xf] }
  0x66   : > { %v948_v21 = vmul.f32 %v3314_v45, %v3025_v19  ;;  %v949_v22 = vmul.f32 %v3314_v45, %v3026_v20 }
  0x68   : > { %v950_v23 = vadd.f32 %v3323_v47, %v948_v21  ;;  %v951_v24 = vadd.f32 %v3323_v47, %v949_v22 }
  0x6a   : > { %v952_v25 = vmax.f32 %v950_v23, 0.0  ;;  %v953_v26 = vmax.f32 %v951_v24, 0.0 }
  0x6c   : > { %v954_v27 = vpack.c.bf16 %v952_v25, %v952_v25  ;;  %v955_v28 = vpack.c.bf16 %v953_v26, %v953_v26 }
  0x6e   : > { %v957_v29 = vshrl.u32 %v954_v27, 16  ;;  %v960_v30 = vshll.u32 %v954_v27, 16  ;;  %v965_v31 = vshrl.u32 %v955_v28, 16  ;;  %v968_v32 = vshll.u32 %v955_v28, 16 }
  0x70   : > { %v959_v33 = vrot.slane %v957_v29, 7  ;;  %v967_v35 = vrot.slane %v965_v31, 7 }
  0x72   : > { %v962_v38 = vor.u32 %v960_v30, %v959_v33  ;;  %v963_v39 = vrot.slane %v959_v33, 4  ;;  %v970_v40 = vor.u32 %v968_v32, %v967_v35  ;;  %v972_v41 = vrot.slane %v967_v35, 4 }
  0x74   : > { %v977_v42 = vsel %vm3241_vm5, %v962_v38, %v976_v36  ;;  %v971_v43 = vsel %vm3364_vm7, %v963_v39, %v970_v40  ;;  %v981_v44 = vsel %vm3218_vm3, %v972_v41, %v980_v37 }
  0x75   : > { %978 = vst [vmem:[#allocation2] sm:$0xf] %v977_v42 }
  0x76   : > { %979 = vst.msk [vmem:[#allocation2 + $0x4] sm:$0xf] %vm572_vm2, %v971_v43 }
  0x77   : > { %982 = vst [vmem:[#allocation2 + $0x8] sm:$0x1] %v981_v44 }
  0x78 PF: > { %p2761_p13 = scmp.ne.s32.totalorder %s3110_s30, 1 }
  0x7a   : > { %986 = sbr.rel (%p2761_p13) target bundleno = 131 (0x83), region = 60 }
  0x7f   : > { %v988_v46 = vld [vmem:[#allocation2 + $0x6c] sm:$0xf]  ;;  %v992_v48 = vld [vmem:[#allocation2 + $0x74] sm:$0x1]  ;;  %v3129_v50 = vmov 0  }
  0x80   : > { %v989_v49 = vsel %vm3241_vm5, 0, %v988_v46  ;;  %991 = vst.msk [vmem:[#allocation2 + $0x70] sm:$0xf] %vm572_vm2, %v3129_v50  ;;  %v993_v51 = vsel %vm3218_vm3, 0, %v992_v48 }
  0x81   : > { %990 = vst [vmem:[#allocation2 + $0x6c] sm:$0xf] %v989_v49 }
  0x82   : > { %994 = vst [vmem:[#allocation2 + $0x74] sm:$0x1] %v993_v51 }
  0x83 PF: > { %p2762_p0 = scmp.ge.s32.totalorder %s3110_s30, 1 }
  0x85   : > { %998 = sbr.rel (%p2762_p0) target bundleno = 159 (0x9f), region = 64 }
  0x8a   : > { %v3028_v52 = vld [vmem:[%s508_s16] sm:$0xff]   ;;  %v1032_v6 = vld [vmem:[#allocation2 + $0x6c] sm:$0xf]  ;;  %v1036_v7 = vld [vmem:[#allocation2 + $0x74] sm:$0x1] }
  0x8b   : > { %v3029_v53 = vunpack.c.l.bf16 %v3028_v52  ;;  %v3030_v54 = vunpack.c.h.bf16 %v3028_v52 }
  0x8d   : > { %v1003_v55 = vmul.f32 %v3314_v45, %v3029_v53  ;;  %v1004_v56 = vmul.f32 %v3314_v45, %v3030_v54 }
  0x8f   : > { %v1005_v57 = vadd.f32 %v3323_v47, %v1003_v55  ;;  %v1006_v58 = vadd.f32 %v3323_v47, %v1004_v56 }
  0x91   : > { %v1007_v59 = vmax.f32 %v1005_v57, 0.0  ;;  %v1008_v60 = vmax.f32 %v1006_v58, 0.0 }
  0x93   : > { %v1009_v61 = vpack.c.bf16 %v1007_v59, %v1007_v59  ;;  %v1010_v62 = vpack.c.bf16 %v1008_v60, %v1008_v60 }
  0x95   : > { %v1012_v63 = vshrl.u32 %v1009_v61, 16  ;;  %v1015_v0 = vshll.u32 %v1009_v61, 16  ;;  %v1020_v2 = vshrl.u32 %v1010_v62, 16  ;;  %v1023_v3 = vshll.u32 %v1010_v62, 16 }
  0x97   : > { %v1014_v4 = vrot.slane %v1012_v63, 7  ;;  %v1022_v5 = vrot.slane %v1020_v2, 7 }
  0x99   : > { %v1017_v8 = vor.u32 %v1015_v0, %v1014_v4  ;;  %v1018_v9 = vrot.slane %v1014_v4, 4  ;;  %v1025_v10 = vor.u32 %v1023_v3, %v1022_v5  ;;  %v1027_v45 = vrot.slane %v1022_v5, 4 }
  0x9b   : > { %v1033_v11 = vsel %vm3241_vm5, %v1017_v8, %v1032_v6  ;;  %v1026_v47 = vsel %vm3364_vm7, %v1018_v9, %v1025_v10  ;;  %v1037_v12 = vsel %vm3218_vm3, %v1027_v45, %v1036_v7 }
  0x9c   : > { %1034 = vst [vmem:[#allocation2 + $0x6c] sm:$0xf] %v1033_v11 }
  0x9d   : > { %1035 = vst.msk [vmem:[#allocation2 + $0x70] sm:$0xf] %vm572_vm2, %v1026_v47 }
  0x9e   : > { %1038 = vst [vmem:[#allocation2 + $0x74] sm:$0x1] %v1037_v12 }
  0x9f PF: > { %v1063_v13 = vld [vmem:[%s4270_s3] sm:$0x3]  ;;  %vm1161_vm8 = vcmask 1041408   ;;  %v2823_v14 = vld [vmem:[%s4270_s3 + $0x2] sm:$0x3]  ;;  %v2964_v17 = vld [vmem:[#allocation2 + $0x48] sm:$0xff] }
  0xa0   : > { %v1163_v15 = vsel %vm1161_vm8, %v1063_v13, 0  ;;  %v1591_v34 = vsel %vm1161_vm8, %v2823_v14, 0  ;;  %v2884_v1 = vld [vmem:[%s4270_s3 + $0x4] sm:$0x3]  ;;  %vm1124_vm9 = vcmask 31744   ;;  %v2967_v19 = vld [vmem:[#allocation2 + $0xc] sm:$0xff] }
  0xa1   : > { %v2955_v16 = vld [vmem:[#allocation2] sm:$0xff]  ;;  %1172 = vmatpush.bf16.msra.mxu0 %v1163_v15  ;;  %3038 = vmatpush.bf16.msra.mxu3 %v1163_v15  ;;  %v2034_v18 = vsel %vm1161_vm8, %v2884_v1, 0  ;;  %v2979_v20 = vld [vmem:[#allocation2 + $0x18] sm:$0xff]  ;;  %v2956_v21 = vld [vmem:[#allocation2 + $0x8] sm:$0xff]  ;;  %vm1258_vm10 = vcmask 1046528   ;;  %vm1363_vm11 = vcmask 1045504  }
  0xa2   : > { %1600 = vmatpush.bf16.msra.mxu1 %v1591_v34  ;;  %2043 = vmatpush.bf16.msra.mxu2 %v2034_v18  ;;  %v2965_v22 = vld [vmem:[#allocation2 + $0x50] sm:$0xff]  ;;  %v2980_v24 = vld [vmem:[#allocation2 + $0x20] sm:$0xff]  ;;  %v2966_v26 = vld [vmem:[#allocation2 + $0x58] sm:$0xff]  ;;  %s3130_s26 = smov 120   ;;  %s3131_s18 = smov 124  }
  0xa3   : > { %v2968_v23 = vld [vmem:[#allocation2 + $0x14] sm:$0xff]  ;;  %v2969_v27 = vld [vmem:[#allocation2 + $0x1c] sm:$0xff]  ;;  %v2981_v28 = vld [vmem:[#allocation2 + $0x28] sm:$0xff] }
  0xa4   : > { %2811 = vmatmul.msk.bf16.vlgmr.msra.gmra.mxu0 %vm1124_vm9, %v2955_v16  ;;  %2820 = vmatmul.msk.bf16.vlgmr.msra.gmra.mxu3 %vm1124_vm9, %v2964_v17  ;;  %v2957_v25 = vld [vmem:[#allocation2 + $0x10] sm:$0xff]  ;;  %v2958_v29 = vld [vmem:[#allocation2 + $0x18] sm:$0xff]  ;;  %v2970_v31 = vld [vmem:[#allocation2 + $0x24] sm:$0xff] }
  0xa5   : > { %3039 = vmatpush.bf16.msrb.mxu3 %v1591_v34  ;;  %2872 = vmatmul.msk.bf16.vlgmr.msra.gmra.mxu1 %vm1124_vm9, %v2967_v19  ;;  %v2976_v30 = vld [vmem:[#allocation2 + $0x54] sm:$0xff]  ;;  %v2959_v33 = vld [vmem:[#allocation2 + $0x20] sm:$0xff]  ;;  %v2971_v36 = vld [vmem:[#allocation2 + $0x2c] sm:$0xff] }
  0xa6   : > { %2933 = vmatmul.msk.bf16.vlgmr.msra.gmra.mxu2 %vm1124_vm9, %v2979_v20  ;;  %v2982_v32 = vld [vmem:[#allocation2 + $0x30] sm:$0xff]  ;;  %v2977_v35 = vld [vmem:[#allocation2 + $0x5c] sm:$0xff]  ;;  %v2978_v38 = vld [vmem:[#allocation2 + $0x64] sm:$0xff] }
  0xa7   : > { %v2983_v37 = vld [vmem:[#allocation2 + $0x38] sm:$0xff]  ;;  %v2960_v39 = vld [vmem:[#allocation2 + $0x28] sm:$0xff]  ;;  %v2984_v41 = vld [vmem:[#allocation2 + $0x40] sm:$0xff] }
  0xa8   : > { %v2972_v40 = vld [vmem:[#allocation2 + $0x34] sm:$0xff]  ;;  %v2973_v42 = vld [vmem:[#allocation2 + $0x3c] sm:$0xff]  ;;  %v2985_v43 = vld [vmem:[#allocation2 + $0x48] sm:$0xff] }
  0xa9   : > { %3040 = vmatpush.bf16.msra.mxu3 %v2034_v18  ;;  %v2961_v48 = vld [vmem:[#allocation2 + $0x30] sm:$0xff]  ;;  %v2974_v50 = vld [vmem:[#allocation2 + $0x44] sm:$0xff]  ;;  %v2962_v6 = vld [vmem:[#allocation2 + $0x38] sm:$0xff] }
  0xaa   : > { %v2986_v63 = vld [vmem:[#allocation2 + $0x50] sm:$0xff]  ;;  %v2988_v0 = vld [vmem:[#allocation2 + $0x60] sm:$0xff]  ;;  %v2989_v20 = vld [vmem:[#allocation2 + $0x68] sm:$0xff] }
  0xb4   : > { %2812 = vmatmul.msk.bf16.gmra.mxu0 %vm1124_vm9, %v2956_v21  ;;  %2821 = vmatmul.msk.bf16.gmra.mxu3 %vm1124_vm9, %v2965_v22 }
  0xb5   : > { %2873 = vmatmul.msk.bf16.gmra.mxu1 %vm1124_vm9, %v2968_v23 }
  0xb6   : > { %2934 = vmatmul.msk.bf16.gmra.mxu2 %vm1124_vm9, %v2980_v24 }
  0xc4   : > { %2813 = vmatmul.msk.bf16.gmra.mxu0 %vm1124_vm9, %v2957_v25  ;;  %2822 = vmatmul.msk.bf16.gmra.mxu3 %vm1124_vm9, %v2966_v26  ;;  %v2963_v26 = vld [vmem:[#allocation2 + $0x40] sm:$0xff] }
  0xc5   : > { %2874 = vmatmul.msk.bf16.gmra.mxu1 %vm1124_vm9, %v2969_v27 }
  0xc6   : > { %2935 = vmatmul.msk.bf16.gmra.mxu2 %vm1124_vm9, %v2981_v28 }
  0xd4   : > { %2814 = vmatmul.msk.bf16.gmra.mxu0 %vm1124_vm9, %v2958_v29  ;;  %2881 = vmatmul.msk.bf16.vlgmr.msrb.gmra.mxu3 %vm1124_vm9, %v2976_v30 }
  0xd5   : > { %2875 = vmatmul.msk.bf16.gmra.mxu1 %vm1124_vm9, %v2970_v31 }
  0xd6   : > { %2936 = vmatmul.msk.bf16.gmra.mxu2 %vm1124_vm9, %v2982_v32  ;;  %v2975_v32 = vld [vmem:[#allocation2 + $0x4c] sm:$0xff] }
  0xe4   : > { %2815 = vmatmul.msk.bf16.gmra.mxu0 %vm1124_vm9, %v2959_v33  ;;  %2882 = vmatmul.msk.bf16.gmra.mxu3 %vm1124_vm9, %v2977_v35 }
  0xe5   : > { %2876 = vmatmul.msk.bf16.gmra.mxu1 %vm1124_vm9, %v2971_v36 }
  0xe6   : > { %2937 = vmatmul.msk.bf16.gmra.mxu2 %vm1124_vm9, %v2983_v37 }
  0xf4   : > { %2883 = vmatmul.msk.bf16.gmra.mxu3 %vm1124_vm9, %v2978_v38  ;;  %2816 = vmatmul.msk.bf16.gmra.mxu0 %vm1124_vm9, %v2960_v39 }
  0xf5   : > { %2877 = vmatmul.msk.bf16.gmra.mxu1 %vm1124_vm9, %v2972_v40 }
  0xf6   : > { %2938 = vmatmul.msk.bf16.gmra.mxu2 %vm1124_vm9, %v2984_v41 }
 0x104   : > { %2817 = vmatmul.msk.bf16.gmra.mxu0 %vm1124_vm9, %v2961_v48  ;;  %2942 = vmatmul.msk.bf16.vlgmr.msra.gmra.mxu3 %vm1124_vm9, %v2988_v0 }
 0x105   : > { %2878 = vmatmul.msk.bf16.gmra.mxu1 %vm1124_vm9, %v2973_v42  ;;  %v2987_v42 = vld [vmem:[#allocation2 + $0x58] sm:$0xff] }
 0x106   : > { %2939 = vmatmul.msk.bf16.gmra.mxu2 %vm1124_vm9, %v2985_v43  ;;  %v2990_v43 = vld [vmem:[#allocation2 + $0x70] sm:$0xff] }
 0x114   : > { %2818 = vmatmul.msk.bf16.gmra.mxu0 %vm1124_vm9, %v2962_v6  ;;  %2943 = vmatmul.msk.bf16.gmra.mxu3 %vm1124_vm9, %v2989_v20 }
 0x115   : > { %2879 = vmatmul.msk.bf16.gmra.mxu1 %vm1124_vm9, %v2974_v50 }
 0x116   : > { %2940 = vmatmul.msk.bf16.gmra.mxu2 %vm1124_vm9, %v2986_v63 }
 0x121   : > { %v3521_v44 = vpop.f32.mrf.mxu0 }
 0x122   : > { %v3523_v46 = vpop.f32.mrf.mxu1  ;;  %v1259_v53 = vrot.slane %v3521_v44, 1  ;;  %v1364_v54 = vrot.slane %v3521_v44, 2 }
 0x123   : > { %v1702_v51 = vrot.slane %v3523_v46, 1  ;;  %v1806_v3 = vrot.slane %v3523_v46, 2 }
 0x124   : > { %2819 = vmatmul.msk.bf16.gmra.mxu0 %vm1124_vm9, %v2963_v26  ;;  %2944 = vmatmul.msk.bf16.gmra.mxu3 %vm1124_vm9, %v2990_v43 }
 0x125   : > { %2880 = vmatmul.msk.bf16.gmra.mxu1 %vm1124_vm9, %v2975_v32 }
 0x126   : > { %2941 = vmatmul.msk.bf16.gmra.mxu2 %vm1124_vm9, %v2987_v42 }
 0x127   : > { %v3526_v49 = vpop.f32.mrf.mxu3 }
 0x128   : > { %v1394_v8 = vrot.slane %v3526_v49, 2  ;;  %v1289_v1 = vrot.slane %v3526_v49, 1 }
 0x129   : > { %v3529_v52 = vpop.f32.mrf.mxu0  ;;  %v3533_v55 = vpop.f32.mrf.mxu2 }
 0x12a   : > { %v1260_v56 = vrot.slane %v3529_v52, 1  ;;  %v1365_v57 = vrot.slane %v3529_v52, 2  ;;  %v3537_v58 = vpop.f32.mrf.mxu1  ;;  %v2145_v13 = vrot.slane %v3533_v55, 1  ;;  %v2249_v22 = vrot.slane %v3533_v55, 2 }
 0x12b   : > { %v1703_v59 = vrot.slane %v3537_v58, 1  ;;  %v1807_v4 = vrot.slane %v3537_v58, 2 }
 0x12c   : > { %v1366_v60 = vsel %vm1363_vm11, %v1364_v54, %v1365_v57  ;;  %v1261_v61 = vsel %vm1258_vm10, %v1259_v53, %v1260_v56 }
 0x12d   : > { %v1704_v62 = vsel %vm1258_vm10, %v1702_v51, %v1703_v59  ;;  %1404 = vrot.lane.b32.xlu1 %v1366_v60, %s3130_s26  ;;  %1299 = vrot.lane.b32.xlu0 %v1261_v61, %s3131_s18  ;;  %v1808_v11 = vsel %vm1363_vm11, %v1806_v3, %v1807_v4 }
 0x12e   : > { %1742 = vrot.lane.b32.xlu2 %v1704_v62, %s3131_s18 }
 0x12f   : > { %v3549_v2 = vpop.f32.mrf.mxu3 }
 0x130   : > { %v1395_v5 = vrot.slane %v3549_v2, 2  ;;  %v1290_v14 = vrot.slane %v3549_v2, 1 }
 0x131   : > { %v1179_v7 = vpop.f32.mrf.mxu0  ;;  %v3557_v10 = vpop.f32.mrf.mxu2 }
 0x132   : > { %v1367_v9 = vrot.slane %v1179_v7, 2  ;;  %v1396_v45 = vsel %vm1363_vm11, %v1394_v8, %v1395_v5  ;;  %v2146_v15 = vrot.slane %v3557_v10, 1  ;;  %v1607_v16 = vpop.f32.mrf.mxu1  ;;  %v1291_v18 = vsel %vm1258_vm10, %v1289_v1, %v1290_v14 }
 0x133   : > { %v2250_v23 = vrot.slane %v3557_v10, 2  ;;  %v1262_v24 = vrot.slane %v1179_v7, 1  ;;  %v1705_v33 = vrot.slane %v1607_v16, 1  ;;  %v1809_v35 = vrot.slane %v1607_v16, 2 }
 0x134   : > { %v1368_v47 = vsel %vm1363_vm11, %v1365_v57, %v1367_v9  ;;  %v2147_v17 = vsel %vm1258_vm10, %v2145_v13, %v2146_v15 }
 0x135   : > { %1428 = vrot.lane.b32.xlu1 %v1396_v45, %s3130_s26  ;;  %1846 = vrot.lane.b32.xlu0 %v1808_v11, %s3130_s26  ;;  %v2251_v29 = vsel %vm1363_vm11, %v2249_v22, %v2250_v23  ;;  %v1263_v30 = vsel %vm1258_vm10, %v1260_v56, %v1262_v24  ;;  %v1810_v39 = vsel %vm1363_vm11, %v1807_v4, %v1809_v35 }
 0x136   : > { %1406 = vrot.lane.b32.xlu2 %v1368_v47, %s3130_s26  ;;  %v1706_v40 = vsel %vm1258_vm10, %v1703_v59, %v1705_v33 }
 0x137   : > { %v1224_v12 = vpop.f32.mrf.mxu3 }
 0x138   : > { %v1397_v34 = vrot.slane %v1224_v12, 2  ;;  %v1292_v50 = vrot.slane %v1224_v12, 1 }
 0x139   : > { %v2050_v21 = vpop.f32.mrf.mxu2  ;;  %v3579_v25 = vpop.f32.mrf.mxu0 }
 0x13a   : > { %v1398_v19 = vsel %vm1363_vm11, %v1395_v5, %v1397_v34  ;;  %v2148_v27 = vrot.slane %v2050_v21, 1  ;;  %v3581_v28 = vpop.f32.mrf.mxu1  ;;  %v2252_v36 = vrot.slane %v2050_v21, 2  ;;  %v1369_v51 = vrot.slane %v3579_v25, 2 }
 0x13b   : > { %v1811_v54 = vrot.slane %v3581_v28, 2  ;;  %v1293_v60 = vsel %vm1258_vm10, %v1290_v14, %v1292_v50  ;;  %v1264_v0 = vrot.slane %v3579_v25, 1  ;;  %v1707_v14 = vrot.slane %v3581_v28, 1 }
 0x13c   : > { %v2149_v31 = vsel %vm1258_vm10, %v2146_v15, %v2148_v27  ;;  %v2253_v41 = vsel %vm1363_vm11, %v2250_v23, %v2252_v36 }
 0x13d   : > { %2185 = vrot.lane.b32.xlu1 %v2147_v17, %s3131_s18  ;;  %1323 = vrot.lane.b32.xlu0 %v1291_v18, %s3131_s18 }
 0x13e   : > { %1430 = vrot.lane.b32.xlu2 %v1398_v19, %s3130_s26 }
 0x13f   : > { %v3593_v38 = vpop.f32.mrf.mxu3 }
 0x140   : > { %v1399_v4 = vrot.slane %v3593_v38, 2  ;;  %v1294_v6 = vrot.slane %v3593_v38, 1 }
 0x141   : > { %v3591_v37 = vpop.f32.mrf.mxu0  ;;  %v3613_v59 = vpop.f32.mrf.mxu2 }
 0x142   : > { %v3602_v48 = vpop.f32.mrf.mxu1  ;;  %v1370_v53 = vrot.slane %v3591_v37, 2  ;;  %v1265_v3 = vrot.slane %v3591_v37, 1  ;;  %v2150_v34 = vrot.slane %v3613_v59, 1  ;;  %v2254_v23 = vrot.slane %v3613_v59, 2 }
 0x143   : > { %v1812_v56 = vrot.slane %v3602_v48, 2  ;;  %v1708_v15 = vrot.slane %v3602_v48, 1 }
 0x144   : > { %v1371_v61 = vsel %vm1363_vm11, %v1369_v51, %v1370_v53  ;;  %v1266_v45 = vsel %vm1258_vm10, %v1264_v0, %v1265_v3 }
 0x145   : > { %2289 = vrot.lane.b32.xlu1 %v2251_v29, %s3130_s26  ;;  %1301 = vrot.lane.b32.xlu0 %v1263_v30, %s3131_s18  ;;  %v1813_v63 = vsel %vm1363_vm11, %v1811_v54, %v1812_v56  ;;  %v1709_v19 = vsel %vm1258_vm10, %v1707_v14, %v1708_v15 }
 0x146   : > { %2187 = vrot.lane.b32.xlu2 %v2149_v31, %s3131_s18 }
 0x147   : > { %v3619_v62 = vpop.f32.mrf.mxu3 }
 0x148   : > { %v1400_v5 = vrot.slane %v3619_v62, 2  ;;  %v1295_v7 = vrot.slane %v3619_v62, 1 }
 0x149   : > { %v3611_v57 = vpop.f32.mrf.mxu0  ;;  %v3637_v47 = vpop.f32.mrf.mxu2 }
 0x14a   : > { %v1401_v9 = vsel %vm1363_vm11, %v1399_v4, %v1400_v5  ;;  %v1614_v11 = vpop.f32.mrf.mxu1  ;;  %v1296_v12 = vsel %vm1258_vm10, %v1294_v6, %v1295_v7  ;;  %v2151_v1 = vrot.slane %v3637_v47, 1  ;;  %v2255_v24 = vrot.slane %v3637_v47, 2 }
 0x14b   : > { %v1710_v13 = vrot.slane %v1614_v11, 1  ;;  %v1814_v26 = vrot.slane %v1614_v11, 2  ;;  %v1267_v36 = vrot.slane %v3611_v57, 1 }
 0x14c   : > { %v2152_v18 = vsel %vm1258_vm10, %v2150_v34, %v2151_v1  ;;  %v2256_v32 = vsel %vm1363_vm11, %v2254_v23, %v2255_v24 }
 0x14d   : > { %1848 = vrot.lane.b32.xlu1 %v1810_v39, %s3130_s26  ;;  %1744 = vrot.lane.b32.xlu0 %v1706_v40, %s3131_s18  ;;  %v1711_v17 = vsel %vm1258_vm10, %v1708_v15, %v1710_v13  ;;  %v1815_v31 = vsel %vm1363_vm11, %v1812_v56, %v1814_v26  ;;  %v1268_v43 = vsel %vm1258_vm10, %v1265_v3, %v1267_v36 }
 0x14e   : > { %2291 = vrot.lane.b32.xlu2 %v2253_v41, %s3130_s26 }
 0x14f   : > { %v1231_v16 = vpop.f32.mrf.mxu3 }
 0x150   : > { %v1297_v39 = vrot.slane %v1231_v16, 1 }
 0x151   : > { %v3631_v8 = vpop.f32.mrf.mxu0  ;;  %v2057_v27 = vpop.f32.mrf.mxu2 }
 0x152   : > { %v1269_v21 = vrot.slane %v3631_v8, 1  ;;  %v1374_v33 = vrot.slane %v3631_v8, 2  ;;  %v1298_v42 = vsel %vm1258_vm10, %v1295_v7, %v1297_v39  ;;  %v3683_v51 = vpop.f32.mrf.mxu1  ;;  %v1402_v7 = vrot.slane %v1231_v16, 2 }
 0x153   : > { %v1712_v15 = vrot.slane %v3683_v51, 1  ;;  %v1816_v34 = vrot.slane %v3683_v51, 2 }
 0x155   : > { %1325 = vrot.lane.b32.xlu1 %v1293_v60, %s3131_s18  ;;  %1408 = vrot.lane.b32.xlu0 %v1371_v61, %s3130_s26  ;;  %v1372_v60 = vrot.slane %v3611_v57, 2  ;;  %v2153_v61 = vrot.slane %v2057_v27, 1 }
 0x156   : > { %1850 = vrot.lane.b32.xlu2 %v1813_v63, %s3130_s26 }
 0x157   : > { %v3659_v29 = vpop.f32.mrf.mxu3  ;;  %v2154_v0 = vsel %vm1258_vm10, %v2151_v1, %v2153_v61  ;;  %v1373_v3 = vsel %vm1363_vm11, %v1370_v53, %v1372_v60 }
 0x158   : > { %v1732_v54 = vrot.slane %v3659_v29, 1 }
 0x159   : > { %v3650_v20 = vpop.f32.mrf.mxu0  ;;  %v3672_v40 = vpop.f32.mrf.mxu2 }
 0x15a   : > { %v1270_v22 = vrot.slane %v3650_v20, 1  ;;  %v1375_v35 = vrot.slane %v3650_v20, 2  ;;  %v2155_v57 = vrot.slane %v3672_v40, 1  ;;  %v2259_v13 = vrot.slane %v3672_v40, 2 }
 0x15c   : > { %v1271_v30 = vsel %vm1258_vm10, %v1269_v21, %v1270_v22  ;;  %v1376_v41 = vsel %vm1363_vm11, %v1374_v33, %v1375_v35 }
 0x15d   : > { %1432 = vrot.lane.b32.xlu0 %v1401_v9, %s3130_s26  ;;  %1303 = vrot.lane.b32.xlu1 %v1266_v45, %s3131_s18  ;;  %v2257_v9 = vrot.slane %v2057_v27, 2  ;;  %v3703_v45 = vpop.f32.mrf.mxu1 }
 0x15e   : > { %1327 = vrot.lane.b32.xlu2 %v1296_v12, %s3131_s18  ;;  %v1403_v12 = vsel %vm1363_vm11, %v1400_v5, %v1402_v7  ;;  %v1713_v1 = vrot.slane %v3703_v45, 1  ;;  %v1817_v16 = vrot.slane %v3703_v45, 2 }
 0x15f   : > { %v3679_v50 = vpop.f32.mrf.mxu3  ;;  %v2258_v53 = vsel %vm1363_vm11, %v2255_v24, %v2257_v9  ;;  %v1836_v24 = vrot.slane %v3659_v29, 2 }
 0x160   : > { %v1733_v56 = vrot.slane %v3679_v50, 1  ;;  %v1818_v21 = vsel %vm1363_vm11, %v1816_v34, %v1817_v16  ;;  %v1837_v26 = vrot.slane %v3679_v50, 2 }
 0x161   : > { %v3696_v4 = vpop.f32.mrf.mxu2  ;;  %v1194_v23 = vpop.f32.mrf.mxu0 }
 0x162   : > { %v1734_v63 = vsel %vm1258_vm10, %v1732_v54, %v1733_v56  ;;  %v2156_v6 = vrot.slane %v3696_v4, 1  ;;  %v2260_v14 = vrot.slane %v3696_v4, 2  ;;  %v1838_v36 = vsel %vm1363_vm11, %v1836_v24, %v1837_v26 }
 0x164   : > { %v2157_v11 = vsel %vm1258_vm10, %v2155_v57, %v2156_v6 }
 0x165   : > { %2189 = vrot.lane.b32.xlu0 %v2152_v18, %s3131_s18  ;;  %1746 = vrot.lane.b32.xlu1 %v1709_v19, %s3131_s18  ;;  %v1622_v5 = vpop.f32.mrf.mxu1  ;;  %v2261_v18 = vsel %vm1363_vm11, %v2259_v13, %v2260_v14  ;;  %v1714_v19 = vsel %vm1258_vm10, %v1712_v15, %v1713_v1 }
 0x166   : > { %1748 = vrot.lane.b32.xlu2 %v1711_v17, %s3131_s18  ;;  %v1715_v27 = vrot.slane %v1622_v5, 1  ;;  %v1819_v60 = vrot.slane %v1622_v5, 2 }
 0x168   : > { %v1716_v39 = vsel %vm1258_vm10, %v1713_v1, %v1715_v27 }
 0x169   : > { %v3745_v61 = vpop.f32.mrf.mxu0  ;;  %v2065_v57 = vpop.f32.mrf.mxu2 }
 0x16a   : > { %v2262_v24 = vrot.slane %v2065_v57, 2 }
 0x16d   : > { %1852 = vrot.lane.b32.xlu0 %v1815_v31, %s3130_s26  ;;  %2293 = vrot.lane.b32.xlu1 %v2256_v32, %s3130_s26  ;;  %v1272_v31 = vrot.slane %v1194_v23, 1  ;;  %v1652_v32 = vpop.f32.mrf.mxu3  ;;  %v3733_v33 = vpop.f32.mrf.mxu1 }
 0x16e   : > { %1307 = vrot.lane.b32.xlu2 %v1271_v30, %s3131_s18 }
 0x175   : > { %1329 = vrot.lane.b32.xlu0 %v1298_v42, %s3131_s18  ;;  %1305 = vrot.lane.b32.xlu1 %v1268_v43, %s3131_s18  ;;  %v1377_v42 = vrot.slane %v1194_v23, 2  ;;  %v1839_v43 = vrot.slane %v1652_v32, 2  ;;  %v3756_v7 = vpop.f32.mrf.mxu1  ;;  %v1274_v23 = vrot.slane %v3745_v61, 1 }
 0x176   : > { %1412 = vrot.lane.b32.xlu2 %v1376_v41, %s3130_s26  ;;  %v1273_v41 = vsel %vm1258_vm10, %v1270_v22, %v1272_v31  ;;  %v1820_v22 = vsel %vm1363_vm11, %v1817_v16, %v1819_v60  ;;  %v1718_v34 = vrot.slane %v3756_v7, 1  ;;  %v1379_v60 = vrot.slane %v3745_v61, 2 }
 0x17d   : > { %2191 = vrot.lane.b32.xlu0 %v2154_v0, %s3131_s18  ;;  %1410 = vrot.lane.b32.xlu1 %v1373_v3, %s3130_s26  ;;  %v1840_v0 = vsel %vm1363_vm11, %v1837_v26, %v1839_v43  ;;  %v1378_v3 = vsel %vm1363_vm11, %v1375_v35, %v1377_v42  ;;  %v1717_v35 = vrot.slane %v3733_v33, 1 }
 0x17e   : > { %1766 = vrot.lane.b32.xlu2 %v1734_v63, %s3131_s18  ;;  %v3747_v63 = vpop.f32.mrf.mxu3 }
 0x17f   : > { %v1841_v31 = vrot.slane %v3747_v63, 2 }
 0x185   : > { %2295 = vrot.lane.b32.xlu0 %v2258_v53, %s3130_s26  ;;  %1434 = vrot.lane.b32.xlu1 %v1403_v12, %s3130_s26  ;;  %v1735_v53 = vrot.slane %v1652_v32, 1  ;;  %v2158_v12 = vrot.slane %v2065_v57, 1 }
 0x186   : > { %2193 = vrot.lane.b32.xlu2 %v2157_v11, %s3131_s18 }
 0x187   : > { %v2159_v5 = vsel %vm1258_vm10, %v2156_v6, %v2158_v12  ;;  %v1736_v16 = vsel %vm1258_vm10, %v1733_v56, %v1735_v53 }
 0x188   : > { %v3719_v17 = vpop.permute.xlu2 %1742 }
 0x18d   : > { %1750 = vrot.lane.b32.xlu0 %v1714_v19, %s3131_s18  ;;  %1854 = vrot.lane.b32.xlu1 %v1818_v21, %s3130_s26  ;;  %v3775_v19 = vpop.f32.mrf.mxu3 }
 0x18e   : > { %2297 = vrot.lane.b32.xlu2 %v2261_v18, %s3130_s26  ;;  %v3768_v18 = vpop.f32.mrf.mxu0  ;;  %v1842_v32 = vrot.slane %v3775_v19, 2 }
 0x18f   : > { %v1275_v56 = vrot.slane %v3768_v18, 1  ;;  %v1380_v57 = vrot.slane %v3768_v18, 2 }
 0x190   : > { %v3731_v30 = vpop.permute.xlu2 %1406 }
 0x191   : > { %v1276_v42 = vsel %vm1258_vm10, %v1274_v23, %v1275_v56 }
 0x195   : > { %1870 = vrot.lane.b32.xlu0 %v1838_v36, %s3130_s26  ;;  %1752 = vrot.lane.b32.xlu1 %v1716_v39, %s3131_s18  ;;  %v3785_v36 = vpop.f32.mrf.mxu2 }
 0x196   : > { %1309 = vrot.lane.b32.xlu2 %v1273_v41, %s3131_s18  ;;  %v2263_v41 = vsel %vm1363_vm11, %v2260_v14, %v2262_v24  ;;  %v1201_v43 = vpop.f32.mrf.mxu0 }
 0x197   : > { %v1382_v53 = vrot.slane %v1201_v43, 2 }
 0x198   : > { %v3743_v54 = vpop.permute.xlu2 %1430 }
 0x19d   : > { %1872 = vrot.lane.b32.xlu1 %v1840_v0, %s3130_s26  ;;  %1414 = vrot.lane.b32.xlu0 %v1378_v3, %s3130_s26  ;;  %v1822_v3 = vrot.slane %v3756_v7, 2 }
 0x19e   : > { %1856 = vrot.lane.b32.xlu2 %v1820_v22, %s3130_s26 }
 0x19f   : > { %v1405_v9 = vpop.permute.xlu1 %1404  ;;  %v1300_v11 = vpop.permute.xlu0 %1299 }
 0x1a0   : > { %v1347_v13 = vadd.f32 %v1300_v11, %v3521_v44  ;;  %v3760_v15 = vpop.permute.xlu2 %2187  ;;  %v1719_v44 = vsel %vm1258_vm10, %v1717_v35, %v1718_v34 }
 0x1a2   : > { %v1452_v1 = vadd.f32 %v1405_v9, %v1347_v13  ;;  %v3809_v13 = vpop.f32.mrf.mxu2 }
 0x1a4   : > { %v1662_v26 = vadd.f32 %v3523_v46, %v1452_v1  ;;  %v1843_v46 = vsel %vm1363_vm11, %v1841_v31, %v1842_v32  ;;  %v1381_v1 = vsel %vm1363_vm11, %v1379_v60, %v1380_v57  ;;  %v2160_v31 = vrot.slane %v3785_v36, 1 }
 0x1a5   : > { %2195 = vrot.lane.b32.xlu1 %v2159_v5, %s3131_s18  ;;  %1768 = vrot.lane.b32.xlu0 %v1736_v16, %s3131_s18  ;;  %v3816_v16 = vpop.f32.mrf.mxu3 }
 0x1a6   : > { %1754 = vrot.lane.b32.xlu2 %v1719_v44, %s3131_s18  ;;  %v1790_v39 = vadd.f32 %v3719_v17, %v1662_v26  ;;  %v1821_v17 = vrot.slane %v3733_v33, 2  ;;  %v1740_v26 = vrot.slane %v3816_v16, 1 }
 0x1a7   : > { %v1429_v21 = vpop.permute.xlu1 %1428  ;;  %v1847_v6 = vpop.permute.xlu0 %1846 }
 0x1a8   : > { %v3781_v27 = vpop.permute.xlu2 %2291  ;;  %v1894_v22 = vadd.f32 %v1847_v6, %v1790_v39  ;;  %v1823_v5 = vsel %vm1363_vm11, %v1821_v17, %v1822_v3  ;;  %v1738_v6 = vrot.slane %v3775_v19, 1  ;;  %v2161_v39 = vrot.slane %v3809_v13, 1  ;;  %v1629_v17 = vpop.f32.mrf.mxu1 }
 0x1aa   : > { %v2105_v35 = vadd.f32 %v3533_v55, %v1894_v22  ;;  %v3825_v55 = vld [vmem:[%s4271_s4] ss:$0 sm:$0xff]  ;;  %v2072_v22 = vpop.f32.mrf.mxu2 }
 0x1ad   : > { %2299 = vrot.lane.b32.xlu1 %v2263_v41, %s3130_s26  ;;  %1311 = vrot.lane.b32.xlu0 %v1276_v42, %s3131_s18 }
 0x1ae   : > { %1874 = vrot.lane.b32.xlu2 %v1843_v46, %s3130_s26 }
 0x1af   : > { %v2186_v14 = vpop.permute.xlu1 %2185  ;;  %v1324_v0 = vpop.permute.xlu0 %1323 }
 0x1b0   : > { %v1359_v9 = vadd.f32 %v1324_v0, %v3526_v49  ;;  %v3805_v11 = vpop.permute.xlu2 %1850  ;;  %v1383_v49 = vsel %vm1363_vm11, %v1380_v57, %v1382_v53  ;;  %v2233_v44 = vadd.f32 %v2186_v14, %v2105_v35  ;;  %v1741_v0 = vsel %vm1258_vm10, %v1738_v6, %v1740_v26  ;;  %v3844_v35 = vpop.f32.mrf.mxu0 }
 0x1b1   : > { %v2162_v53 = vsel %vm1258_vm10, %v2160_v31, %v2161_v39  ;;  %v3850_v26 = vpop.f32.mrf.mxu1 }
 0x1b2   : > { %v3807_v12 = vadd.f32 %v1429_v21, %v1359_v9  ;;  %v1737_v21 = vrot.slane %v3747_v63, 1 }
 0x1b4   : > { %v1739_v9 = vsel %vm1258_vm10, %v1737_v21, %v1738_v6 }
 0x1b5   : > { %1416 = vrot.lane.b32.xlu1 %v1381_v1, %s3130_s26  ;;  %1858 = vrot.lane.b32.xlu0 %v1823_v5, %s3130_s26  ;;  %v2264_v5 = vrot.slane %v3785_v36, 2 }
 0x1b6   : > { %1418 = vrot.lane.b32.xlu2 %v1383_v49, %s3130_s26  ;;  %v2265_v49 = vrot.slane %v3809_v13, 2 }
 0x1b7   : > { %v2290_v23 = vpop.permute.xlu1 %2289  ;;  %v1302_v24 = vpop.permute.xlu0 %1301 }
 0x1b8   : > { %v2337_v41 = vadd.f32 %v2290_v23, %v2233_v44  ;;  %v1328_v42 = vpop.permute.xlu2 %1327  ;;  %v1348_v46 = vadd.f32 %v1302_v24, %v3529_v52  ;;  %v1277_v44 = vrot.slane %v1201_v43, 1  ;;  %v2163_v23 = vrot.slane %v2072_v22, 1 }
 0x1ba   : > { %v2357_v60 = vadd.f32 %v3825_v55, %v2337_v41  ;;  %v1453_v14 = vadd.f32 %v3731_v30, %v1348_v46  ;;  %v1278_v41 = vsel %vm1258_vm10, %v1275_v56, %v1277_v44  ;;  %v2164_v46 = vsel %vm1258_vm10, %v2161_v39, %v2163_v23 }
 0x1bb   : > { %v2267_v39 = vrot.slane %v2072_v22, 2 }
 0x1bc   : > { %v2373_v57 = vpack.c.bf16 %v2357_v60, %v2357_v60  ;;  %v1663_v52 = vadd.f32 %v3537_v58, %v1453_v14  ;;  %v2266_v58 = vsel %vm1363_vm11, %v2264_v5, %v2265_v49  ;;  %v3861_v14 = vpop.f32.mrf.mxu2 }
 0x1bd   : > { %1770 = vrot.lane.b32.xlu1 %v1739_v9, %s3131_s18  ;;  %2197 = vrot.lane.b32.xlu0 %v2162_v53, %s3131_s18  ;;  %v2268_v23 = vsel %vm1363_vm11, %v2265_v49, %v2267_v39  ;;  %v1279_v49 = vrot.slane %v3844_v35, 1 }
 0x1be   : > { %2389 = vst.msk [vmem:[%s3274_s25] sm:$0xf] %vm572_vm2, %v2373_v57  ;;  %1772 = vrot.lane.b32.xlu2 %v1741_v0, %s3131_s18  ;;  %v1720_v0 = vrot.slane %v1629_v17, 1 }
 0x1bf   : > { %v1849_v30 = vpop.permute.xlu1 %1848  ;;  %v1745_v1 = vpop.permute.xlu0 %1744 }
 0x1c0   : > { %v3848_v21 = vpop.permute.xlu2 %1748  ;;  %v1791_v6 = vadd.f32 %v1745_v1, %v1663_v52  ;;  %v2444_v1 = vmul.f32 %v2357_v60, %v2357_v60 }
 0x1c2   : > { %v1895_v24 = vadd.f32 %v1849_v30, %v1791_v6  ;;  %v3868_v30 = vpop.f32.mrf.mxu0 }
 0x1c4   : > { %v2106_v31 = vadd.f32 %v3557_v10, %v1895_v24  ;;  %v1824_v10 = vrot.slane %v1629_v17, 2  ;;  %v1721_v17 = vsel %vm1258_vm10, %v1718_v34, %v1720_v0  ;;  %v2460_v34 = vsel %vm1124_vm9, %v2444_v1, 0.0  ;;  %v3902_v0 = vpop.f32.mrf.mxu2  ;;  %v3912_v1 = vpop.f32.mrf.mxu3 }
 0x1c5   : > { %2301 = vrot.lane.b32.xlu0 %v2266_v58, %s3130_s26  ;;  %1313 = vrot.lane.b32.xlu1 %v1278_v41, %s3131_s18  ;;  %v1361_v24 = vadd.f32 %v1328_v42, %v3593_v38  ;;  %v1280_v58 = vrot.slane %v3868_v30, 1  ;;  %v1722_v38 = vrot.slane %v3850_v26, 1 }
 0x1c6   : > { %v2234_v43 = vadd.f32 %v3760_v15, %v2106_v31  ;;  %2199 = vrot.lane.b32.xlu2 %v2164_v46, %s3131_s18  ;;  %v1844_v31 = vrot.slane %v3816_v16, 2 }
 0x1c7   : > { %v1326_v57 = vpop.permute.xlu1 %1325  ;;  %v1409_v9 = vpop.permute.xlu0 %1408  ;;  %v1281_v39 = vsel %vm1258_vm10, %v1279_v49, %v1280_v58 }
 0x1c8   : > { %v2338_v53 = vadd.f32 %v3781_v27, %v2234_v43  ;;  %v1360_v56 = vadd.f32 %v1326_v57, %v3549_v2  ;;  %v3866_v52 = vpop.permute.xlu2 %1307  ;;  %v1825_v2 = vsel %vm1363_vm11, %v1822_v3, %v1824_v10  ;;  %v2405_v27 = vsel %vm1124_vm9, %v2357_v60, 0.0  ;;  %v3891_v3 = vpop.f32.mrf.mxu1 }
 0x1c9   : > { %v1723_v42 = vrot.slane %v3891_v3, 1 }
 0x1ca   : > { %v2358_v15 = vadd.f32 %v3825_v55, %v2338_v53  ;;  %v3872_v5 = vadd.f32 %v3743_v54, %v1360_v56  ;;  %v3909_v56 = vpop.f32.mrf.mxu0 }
 0x1cc   : > { %v2374_v44 = vpack.c.bf16 %v2358_v15, %v2358_v15  ;;  %v2406_v22 = vsel %vm1124_vm9, %v2358_v15, 0.0  ;;  %v2445_v6 = vmul.f32 %v2358_v15, %v2358_v15  ;;  %v1845_v15 = vsel %vm1363_vm11, %v1842_v32, %v1844_v31  ;;  %v3932_v31 = vpop.f32.mrf.mxu2 }
 0x1cd   : > { %1756 = vrot.lane.b32.xlu0 %v1721_v17, %s3131_s18  ;;  %1860 = vrot.lane.b32.xlu1 %v1825_v2, %s3130_s26  ;;  %v3885_v54 = vadd.f32 %v2406_v22, %v2405_v27  ;;  %v1724_v17 = vsel %vm1258_vm10, %v1722_v38, %v1723_v42  ;;  %v2165_v22 = vrot.slane %v3861_v14, 1  ;;  %v1385_v32 = vrot.slane %v3868_v30, 2 }
 0x1ce   : > { %2390 = vst.msk [vmem:[%s3274_s25 + $0x4] sm:$0xf] %vm572_vm2, %v2374_v44  ;;  %2303 = vrot.lane.b32.xlu2 %v2268_v23, %s3130_s26  ;;  %v2461_v60 = vsel %vm1124_vm9, %v2445_v6, 0.0  ;;  %v1674_v44 = vadd.f32 %v3659_v29, %v3807_v12  ;;  %v2166_v6 = vrot.slane %v3902_v0, 1 }
 0x1cf   : > { %v1433_v41 = vpop.permute.xlu0 %1432  ;;  %v1304_v46 = vpop.permute.xlu1 %1303  ;;  %v3898_v43 = vadd.f32 %v2461_v60, %v2460_v34  ;;  %v1827_v60 = vrot.slane %v3891_v3, 2 }
 0x1d0   : > { %v3904_v10 = vadd.f32 %v1433_v41, %v1361_v24  ;;  %v1349_v57 = vadd.f32 %v1304_v46, %v3579_v25  ;;  %v3907_v53 = vpop.permute.xlu2 %1412  ;;  %v1826_v24 = vrot.slane %v3850_v26, 2  ;;  %v2167_v29 = vsel %vm1258_vm10, %v2165_v22, %v2166_v6 }
 0x1d2   : > { %v1454_v16 = vadd.f32 %v1409_v9, %v1349_v57  ;;  %v1384_v9 = vrot.slane %v3844_v35, 2  ;;  %v3935_v41 = vpop.f32.mrf.mxu0  ;;  %v1828_v38 = vsel %vm1363_vm11, %v1826_v24, %v1827_v60  ;;  %v1637_v57 = vpop.f32.mrf.mxu1 }
 0x1d4   : > { %v1664_v25 = vadd.f32 %v3581_v28, %v1454_v16  ;;  %v1386_v12 = vsel %vm1363_vm11, %v1384_v9, %v1385_v32  ;;  %v3945_v16 = vpop.f32.mrf.mxu3 }
 0x1d5   : > { %1876 = vrot.lane.b32.xlu0 %v1845_v15, %s3130_s26  ;;  %1758 = vrot.lane.b32.xlu1 %v1724_v17, %s3131_s18  ;;  %v2270_v15 = vrot.slane %v3902_v0, 2 }
 0x1d6   : > { %1315 = vrot.lane.b32.xlu2 %v1281_v39, %s3131_s18  ;;  %v2269_v39 = vrot.slane %v3861_v14, 2 }
 0x1d7   : > { %v2190_v2 = vpop.permute.xlu0 %2189  ;;  %v1747_v27 = vpop.permute.xlu1 %1746 }
 0x1d8   : > { %v1792_v23 = vadd.f32 %v1747_v27, %v1664_v25  ;;  %v1767_v34 = vpop.permute.xlu2 %1766 }
 0x1d9   : > { %v3930_v28 = vadd.f32 %v1767_v34, %v1674_v44  ;;  %v1725_v44 = vrot.slane %v1637_v57, 1 }
 0x1da   : > { %v1896_v49 = vadd.f32 %v3805_v11, %v1792_v23  ;;  %v3954_v23 = vpop.f32.mrf.mxu2 }
 0x1dc   : > { %v2107_v46 = vadd.f32 %v3613_v59, %v1896_v49  ;;  %v1282_v59 = vrot.slane %v3909_v56, 1 }
 0x1dd   : > { %2201 = vrot.lane.b32.xlu1 %v2167_v29, %s3131_s18  ;;  %1420 = vrot.lane.b32.xlu0 %v1386_v12, %s3130_s26 }
 0x1de   : > { %1862 = vrot.lane.b32.xlu2 %v1828_v38, %s3130_s26  ;;  %v2235_v11 = vadd.f32 %v2190_v2, %v2107_v46  ;;  %v2271_v2 = vsel %vm1363_vm11, %v2269_v39, %v2270_v15  ;;  %v1283_v29 = vsel %vm1258_vm10, %v1280_v58, %v1282_v59  ;;  %v1726_v46 = vsel %vm1258_vm10, %v1723_v42, %v1725_v44 }
 0x1df   : > { %v1853_v17 = vpop.permute.xlu0 %1852  ;;  %v2294_v25 = vpop.permute.xlu1 %2293  ;;  %v1387_v59 = vrot.slane %v3909_v56, 2  ;;  %v1389_v44 = vrot.slane %v3935_v41, 2 }
 0x1e0   : > { %v2339_v9 = vadd.f32 %v2294_v25, %v2235_v11  ;;  %v3951_v27 = vpop.permute.xlu2 %2193  ;;  %v3970_v11 = vpop.f32.mrf.mxu0  ;;  %v1829_v25 = vrot.slane %v1637_v57, 2 }
 0x1e2   : > { %v2359_v22 = vadd.f32 %v3825_v55, %v2339_v9  ;;  %v3977_v9 = vpop.f32.mrf.mxu3 }
 0x1e4   : > { %v2375_v34 = vpack.c.bf16 %v2359_v22, %v2359_v22  ;;  %v2408_v24 = vsel %vm1124_vm9, %v2359_v22, 0.0  ;;  %v2446_v49 = vmul.f32 %v2359_v22, %v2359_v22  ;;  %v1390_v22 = vrot.slane %v3970_v11, 2 }
 0x1e5   : > { %v3962_v12 = vadd.f32 %v2408_v24, %v3885_v54  ;;  %2305 = vrot.lane.b32.xlu1 %v2271_v2, %s3130_s26  ;;  %1317 = vrot.lane.b32.xlu0 %v1283_v29, %s3131_s18  ;;  %v3983_v2 = vpop.f32.mrf.mxu1  ;;  %v3987_v24 = vpop.f32.mrf.mxu2 }
 0x1e6   : > { %2391 = vst.msk [vmem:[%s3274_s25 + $0x8] sm:$0xf] %vm572_vm2, %v2375_v34  ;;  %v2463_v38 = vsel %vm1124_vm9, %v2446_v49, 0.0  ;;  %1760 = vrot.lane.b32.xlu2 %v1726_v46, %s3131_s18  ;;  %v1388_v34 = vsel %vm1363_vm11, %v1385_v32, %v1387_v59  ;;  %v1391_v56 = vsel %vm1363_vm11, %v1389_v44, %v1390_v22  ;;  %v2170_v49 = vrot.slane %v3954_v23, 1 }
 0x1e7   : > { %v3974_v39 = vadd.f32 %v2463_v38, %v3898_v43  ;;  %v1330_v58 = vpop.permute.xlu0 %1329  ;;  %v1306_v54 = vpop.permute.xlu1 %1305  ;;  %v1830_v43 = vsel %vm1363_vm11, %v1827_v60, %v1829_v25  ;;  %v4277_v60 = vrot.slane %v3987_v24, 1  ;;  %v2168_v46 = vrot.slane %v3932_v31, 1 }
 0x1e8   : > { %v3979_v42 = vpop.permute.xlu2 %2297  ;;  %v1350_v57 = vadd.f32 %v1306_v54, %v3591_v37  ;;  %v1284_v38 = vrot.slane %v3935_v41, 1  ;;  %v1285_v25 = vrot.slane %v3970_v11, 1 }
 0x1e9   : > { %v2172_v54 = vsel %vm1258_vm10, %v2170_v49, %v4277_v60 }
 0x1ea   : > { %v4003_v44 = vpop.f32.mrf.mxu3 }
 0x1ed   : > { %1422 = vrot.lane.b32.xlu1 %v1388_v34, %s3130_s26  ;;  %1864 = vrot.lane.b32.xlu0 %v1830_v43, %s3130_s26 }
 0x1ee   : > { %1424 = vrot.lane.b32.xlu2 %v1391_v56, %s3130_s26  ;;  %v2169_v56 = vsel %vm1258_vm10, %v2166_v6, %v2168_v46 }
 0x1ef   : > { %v2192_v29 = vpop.permute.xlu0 %2191  ;;  %v1411_v32 = vpop.permute.xlu1 %1410 }
 0x1f0   : > { %v1455_v59 = vadd.f32 %v1411_v32, %v1350_v57  ;;  %v4001_v34 = vpop.permute.xlu2 %1309  ;;  %v1286_v57 = vsel %vm1258_vm10, %v1284_v38, %v1285_v25  ;;  %v4016_v32 = vpop.f32.mrf.mxu1  ;;  %v1351_v38 = vadd.f32 %v3866_v52, %v3631_v8 }
 0x1f2   : > { %v1665_v37 = vadd.f32 %v3602_v48, %v1455_v59  ;;  %v1362_v48 = vadd.f32 %v1330_v58, %v3619_v62  ;;  %v1831_v59 = vrot.slane %v3983_v2, 2  ;;  %v2274_v62 = vrot.slane %v3954_v23, 2 }
 0x1f4   : > { %v1793_v43 = vadd.f32 %v3848_v21, %v1665_v37  ;;  %v2272_v21 = vrot.slane %v3932_v31, 2  ;;  %v4279_v37 = vrot.slane %v4016_v32, 2  ;;  %v1456_v31 = vadd.f32 %v3907_v53, %v1351_v38  ;;  %v1216_v53 = vpop.f32.mrf.mxu0 }
 0x1f5   : > { %2203 = vrot.lane.b32.xlu0 %v2169_v56, %s3131_s18  ;;  %1319 = vrot.lane.b32.xlu1 %v1286_v57, %s3131_s18 }
 0x1f6   : > { %2205 = vrot.lane.b32.xlu2 %v2172_v54, %s3131_s18  ;;  %v1897_v49 = vadd.f32 %v1853_v17, %v1793_v43  ;;  %v4278_v17 = vrot.slane %v3987_v24, 2  ;;  %v4035_v54 = vpop.f32.mrf.mxu3  ;;  %v2273_v8 = vsel %vm1363_vm11, %v2270_v15, %v2272_v21  ;;  %v1666_v15 = vadd.f32 %v3683_v51, %v1456_v31 }
 0x1f7   : > { %v2296_v6 = vpop.permute.xlu0 %2295  ;;  %v1435_v46 = vpop.permute.xlu1 %1434  ;;  %v2180_v21 = vrot.slane %v4003_v44, 1 }
 0x1f8   : > { %v2108_v56 = vadd.f32 %v3637_v47, %v1897_v49  ;;  %v4028_v60 = vadd.f32 %v1435_v46, %v1362_v48  ;;  %v4030_v57 = vpop.permute.xlu2 %1856  ;;  %v1833_v47 = vsel %vm1363_vm11, %v1831_v59, %v4279_v37  ;;  %v2276_v52 = vsel %vm1363_vm11, %v2274_v62, %v4278_v17 }
 0x1f9   : > { %v1727_v48 = vrot.slane %v3983_v2, 1  ;;  %v1728_v49 = vrot.slane %v4016_v32, 1  ;;  %v2181_v59 = vrot.slane %v4035_v54, 1 }
 0x1fa   : > { %v2236_v58 = vadd.f32 %v2192_v29, %v2108_v56 }
 0x1fb   : > { %v1729_v37 = vsel %vm1258_vm10, %v1727_v48, %v1728_v49 }
 0x1fc   : > { %v2340_v43 = vadd.f32 %v2296_v6, %v2236_v58 }
 0x1fd   : > { %2307 = vrot.lane.b32.xlu0 %v2273_v8, %s3130_s26  ;;  %1866 = vrot.lane.b32.xlu1 %v1833_v47, %s3130_s26  ;;  %v1287_v8 = vrot.slane %v1216_v53, 1 }
 0x1fe   : > { %v2360_v29 = vadd.f32 %v3825_v55, %v2340_v43  ;;  %2309 = vrot.lane.b32.xlu2 %v2276_v52, %s3130_s26 }
 0x1ff   : > { %v1751_v6 = vpop.permute.xlu0 %1750  ;;  %v1855_v46 = vpop.permute.xlu1 %1854 }
 0x200   : > { %v2376_v38 = vpack.c.bf16 %v2360_v29, %v2360_v29  ;;  %v2410_v56 = vsel %vm1124_vm9, %v2360_v29, 0.0  ;;  %v2447_v62 = vmul.f32 %v2360_v29, %v2360_v29  ;;  %v1794_v58 = vadd.f32 %v1751_v6, %v1666_v15  ;;  %v4056_v43 = vpop.permute.xlu2 %1754  ;;  %v1644_v15 = vpop.f32.mrf.mxu1 }
 0x201   : > { %v2411_v51 = vadd.f32 %v2410_v56, %v3962_v12  ;;  %v2182_v29 = vsel %vm1258_vm10, %v2180_v21, %v2181_v59  ;;  %v1288_v12 = vsel %vm1258_vm10, %v1285_v25, %v1287_v8  ;;  %v2176_v56 = vrot.slane %v3945_v16, 1 }
 0x202   : > { %2392 = vst.msk [vmem:[%s3274_s25 + $0xc] sm:$0xf] %vm572_vm2, %v2376_v38  ;;  %v2465_v31 = vsel %vm1124_vm9, %v2447_v62, 0.0  ;;  %v1898_v47 = vadd.f32 %v1855_v46, %v1794_v58  ;;  %v1730_v46 = vrot.slane %v1644_v15, 1  ;;  %v2178_v25 = vrot.slane %v3977_v9, 1  ;;  %v2087_v58 = vpop.f32.mrf.mxu2 }
 0x203   : > { %v2466_v52 = vadd.f32 %v2465_v31, %v3974_v39 }
 0x204   : > { %v2109_v17 = vadd.f32 %v3672_v40, %v1898_v47  ;;  %v1392_v40 = vrot.slane %v1216_v53, 2  ;;  %v2179_v8 = vsel %vm1258_vm10, %v2176_v56, %v2178_v25  ;;  %v1352_v47 = vadd.f32 %v4001_v34, %v3650_v20 }
 0x205   : > { %1762 = vrot.lane.b32.xlu0 %v1729_v37, %s3131_s18  ;;  %2213 = vrot.lane.b32.xlu1 %v2182_v29, %s3131_s18  ;;  %v4287_v20 = vrot.slane %v3987_v24, 1 }
 0x206   : > { %v2237_v6 = vadd.f32 %v3951_v27, %v2109_v17  ;;  %1321 = vrot.lane.b32.xlu2 %v1288_v12, %s3131_s18  ;;  %v1393_v17 = vsel %vm1363_vm11, %v1390_v22, %v1392_v40  ;;  %v2173_v40 = vrot.slane %v2087_v58, 1 }
 0x207   : > { %v1871_v39 = vpop.permute.xlu0 %1870  ;;  %v1753_v48 = vpop.permute.xlu1 %1752 }
 0x208   : > { %v2341_v38 = vadd.f32 %v3979_v42, %v2237_v6  ;;  %v4077_v21 = vadd.f32 %v1871_v39, %v3930_v28  ;;  %v4079_v37 = vpop.permute.xlu2 %1874  ;;  %v1731_v42 = vsel %vm1258_vm10, %v1728_v49, %v1730_v46  ;;  %v2175_v6 = vrot.slane %v3912_v1, 1 }
 0x209   : > { %v2174_v34 = vsel %vm1258_vm10, %v4287_v20, %v2173_v40 }
 0x20a   : > { %v2361_v27 = vadd.f32 %v3825_v55, %v2341_v38  ;;  %v1834_v38 = vrot.slane %v1644_v15, 2 }
 0x20c   : > { %v2377_v53 = vpack.c.bf16 %v2361_v27, %v2361_v27  ;;  %v2448_v62 = vmul.f32 %v2361_v27, %v2361_v27  ;;  %v2412_v28 = vsel %vm1124_vm9, %v2361_v27, 0.0  ;;  %v2177_v27 = vsel %vm1258_vm10, %v2175_v6, %v2176_v56 }
 0x20d   : > { %1764 = vrot.lane.b32.xlu1 %v1731_v42, %s3131_s18  ;;  %1426 = vrot.lane.b32.xlu0 %v1393_v17, %s3130_s26  ;;  %v2413_v31 = vadd.f32 %v2412_v28, %v2411_v51  ;;  %v1677_v56 = vadd.f32 %v3775_v19, %v4028_v60  ;;  %v2280_v42 = vrot.slane %v3945_v16, 2  ;;  %v2277_v28 = vrot.slane %v2087_v58, 2  ;;  %v2102_v60 = vpop.f32.mrf.mxu3 }
 0x20e   : > { %2393 = vst.msk [vmem:[%s3274_s25 + $0x10] sm:$0xf] %vm572_vm2, %v2377_v53  ;;  %2211 = vrot.lane.b32.xlu2 %v2179_v8, %s3131_s18  ;;  %v2467_v22 = vsel %vm1124_vm9, %v2448_v62, 0.0  ;;  %v2279_v62 = vrot.slane %v3912_v1, 2  ;;  %v2287_v20 = vrot.slane %v2102_v60, 2 }
 0x20f   : > { %v1873_v49 = vpop.permute.xlu1 %1872  ;;  %v1415_v29 = vpop.permute.xlu0 %1414  ;;  %v2468_v12 = vadd.f32 %v2467_v22, %v2466_v52  ;;  %v4288_v52 = vrot.slane %v4016_v32, 2  ;;  %v2282_v22 = vrot.slane %v3977_v9, 2 }
 0x210   : > { %v1457_v39 = vadd.f32 %v1415_v29, %v1352_v47  ;;  %v4099_v46 = vpop.permute.xlu2 %1418  ;;  %v2281_v19 = vsel %vm1363_vm11, %v2279_v62, %v2280_v42 }
 0x211   : > { %v1835_v17 = vsel %vm1363_vm11, %v4288_v52, %v1834_v38  ;;  %v2283_v58 = vsel %vm1363_vm11, %v2280_v42, %v2282_v22  ;;  %v2183_v38 = vrot.slane %v2102_v60, 1 }
 0x212   : > { %v1667_v51 = vadd.f32 %v3703_v45, %v1457_v39  ;;  %v1675_v45 = vadd.f32 %v3679_v50, %v3872_v5  ;;  %v4289_v50 = vrot.slane %v3987_v24, 2 }
 0x214   : > { %v1795_v25 = vadd.f32 %v1753_v48, %v1667_v51  ;;  %v2278_v5 = vsel %vm1363_vm11, %v4289_v50, %v2277_v28  ;;  %v1676_v50 = vadd.f32 %v3747_v63, %v3904_v10 }
 0x215   : > { %2207 = vrot.lane.b32.xlu1 %v2174_v34, %s3131_s18  ;;  %2209 = vrot.lane.b32.xlu0 %v2177_v27, %s3131_s18 }
 0x216   : > { %1868 = vrot.lane.b32.xlu2 %v1835_v17, %s3130_s26  ;;  %v1899_v15 = vadd.f32 %v4030_v57, %v1795_v25 }
 0x217   : > { %v2196_v48 = vpop.permute.xlu1 %2195  ;;  %v1769_v53 = vpop.permute.xlu0 %1768 }
 0x218   : > { %v1803_v8 = vadd.f32 %v1769_v53, %v1675_v45  ;;  %v1773_v47 = vpop.permute.xlu2 %1772  ;;  %v2110_v57 = vadd.f32 %v3696_v4, %v1899_v15  ;;  %v2284_v4 = vrot.slane %v4003_v44, 2  ;;  %v2184_v45 = vsel %vm1258_vm10, %v2181_v59, %v2183_v38 }
 0x219   : > { %v4120_v29 = vadd.f32 %v1773_v47, %v1677_v56 }
 0x21a   : > { %v4123_v6 = vadd.f32 %v1873_v49, %v1803_v8  ;;  %v2238_v9 = vadd.f32 %v2196_v48, %v2110_v57  ;;  %v2285_v49 = vrot.slane %v4035_v54, 2 }
 0x21c   : > { %v2286_v27 = vsel %vm1363_vm11, %v2284_v4, %v2285_v49  ;;  %v2288_v53 = vsel %vm1363_vm11, %v2285_v49, %v2287_v20 }
 0x21d   : > { %2311 = vrot.lane.b32.xlu1 %v2278_v5, %s3130_s26  ;;  %2313 = vrot.lane.b32.xlu0 %v2281_v19, %s3130_s26 }
 0x21e   : > { %2315 = vrot.lane.b32.xlu2 %v2283_v58, %s3130_s26 }
 0x21f   : > { %v2300_v40 = vpop.permute.xlu1 %2299  ;;  %v1312_v39 = vpop.permute.xlu0 %1311 }
 0x220   : > { %v2342_v51 = vadd.f32 %v2300_v40, %v2238_v9  ;;  %v2200_v25 = vpop.permute.xlu2 %2199  ;;  %v1353_v62 = vadd.f32 %v1312_v39, %v3745_v61 }
 0x222   : > { %v2362_v34 = vadd.f32 %v3825_v55, %v2342_v51 }
 0x224   : > { %v2378_v52 = vpack.c.bf16 %v2362_v34, %v2362_v34  ;;  %v2414_v17 = vsel %vm1124_vm9, %v2362_v34, 0.0  ;;  %v2449_v15 = vmul.f32 %v2362_v34, %v2362_v34 }
 0x225   : > { %v2415_v48 = vadd.f32 %v2414_v17, %v2413_v31  ;;  %2317 = vrot.lane.b32.xlu1 %v2286_v27, %s3130_s26  ;;  %2215 = vrot.lane.b32.xlu0 %v2184_v45, %s3131_s18 }
 0x226   : > { %2394 = vst.msk [vmem:[%s3274_s25 + $0x14] sm:$0xf] %vm572_vm2, %v2378_v52  ;;  %v2469_v56 = vsel %vm1124_vm9, %v2449_v15, 0.0  ;;  %2319 = vrot.lane.b32.xlu2 %v2288_v53, %s3130_s26 }
 0x227   : > { %v2470_v42 = vadd.f32 %v2469_v56, %v2468_v12  ;;  %v1417_v28 = vpop.permute.xlu1 %1416  ;;  %v1859_v8 = vpop.permute.xlu0 %1858 }
 0x228   : > { %v1458_v47 = vadd.f32 %v1417_v28, %v1353_v62  ;;  %v2304_v59 = vpop.permute.xlu2 %2303 }
 0x22a   : > { %v1668_v31 = vadd.f32 %v3733_v33, %v1458_v47 }
 0x22c   : > { %v1796_v22 = vadd.f32 %v4056_v43, %v1668_v31 }
 0x22e   : > { %v1900_v57 = vadd.f32 %v1859_v8, %v1796_v22 }
 0x22f   : > { %v1771_v5 = vpop.permute.xlu1 %1770  ;;  %v2198_v19 = vpop.permute.xlu0 %2197 }
 0x230   : > { %v1804_v60 = vadd.f32 %v1771_v5, %v1676_v50  ;;  %v1316_v61 = vpop.permute.xlu2 %1315  ;;  %v2111_v12 = vadd.f32 %v3785_v36, %v1900_v57 }
 0x231   : > { %v1355_v22 = vadd.f32 %v1316_v61, %v3844_v35 }
 0x232   : > { %v4154_v58 = vadd.f32 %v4079_v37, %v1804_v60  ;;  %v2239_v9 = vadd.f32 %v2198_v19, %v2111_v12 }
 0x237   : > { %v2302_v4 = vpop.permute.xlu0 %2301  ;;  %v1314_v49 = vpop.permute.xlu1 %1313 }
 0x238   : > { %v2343_v33 = vadd.f32 %v2302_v4, %v2239_v9  ;;  %v1354_v43 = vadd.f32 %v1314_v49, %v3768_v18  ;;  %v1863_v40 = vpop.permute.xlu2 %1862 }
 0x23a   : > { %v2363_v39 = vadd.f32 %v3825_v55, %v2343_v33  ;;  %v1459_v63 = vadd.f32 %v4099_v46, %v1354_v43 }
 0x23c   : > { %v2379_v10 = vpack.c.bf16 %v2363_v39, %v2363_v39  ;;  %v2416_v38 = vsel %vm1124_vm9, %v2363_v39, 0.0  ;;  %v2450_v51 = vmul.f32 %v2363_v39, %v2363_v39  ;;  %v1669_v37 = vadd.f32 %v3756_v7, %v1459_v63 }
 0x23d   : > { %v2417_v20 = vadd.f32 %v2416_v38, %v2415_v48 }
 0x23e   : > { %2395 = vst.msk [vmem:[%s3274_s25 + $0x18] sm:$0xf] %vm572_vm2, %v2379_v10  ;;  %v2471_v36 = vsel %vm1124_vm9, %v2450_v51, 0.0 }
 0x23f   : > { %v2472_v34 = vadd.f32 %v2471_v36, %v2470_v42  ;;  %v1757_v27 = vpop.permute.xlu0 %1756  ;;  %v1861_v52 = vpop.permute.xlu1 %1860 }
 0x240   : > { %v1797_v18 = vadd.f32 %v1757_v27, %v1669_v37  ;;  %v1761_v17 = vpop.permute.xlu2 %1760 }
 0x242   : > { %v1901_v15 = vadd.f32 %v1861_v52, %v1797_v18 }
 0x244   : > { %v2112_v46 = vadd.f32 %v3809_v13, %v1901_v15 }
 0x246   : > { %v2240_v45 = vadd.f32 %v2200_v25, %v2112_v46 }
 0x247   : > { %v1877_v53 = vpop.permute.xlu0 %1876  ;;  %v1759_v56 = vpop.permute.xlu1 %1758 }
 0x248   : > { %v2344_v62 = vadd.f32 %v2304_v59, %v2240_v45  ;;  %v4167_v48 = vadd.f32 %v1877_v53, %v4120_v29  ;;  %v1425_v28 = vpop.permute.xlu2 %1424 }
 0x24a   : > { %v2364_v8 = vadd.f32 %v3825_v55, %v2344_v62 }
 0x24c   : > { %v2380_v7 = vpack.c.bf16 %v2364_v8, %v2364_v8  ;;  %v2451_v42 = vmul.f32 %v2364_v8, %v2364_v8  ;;  %v2418_v47 = vsel %vm1124_vm9, %v2364_v8, 0.0 }
 0x24d   : > { %v4171_v31 = vadd.f32 %v2418_v47, %v2417_v20 }
 0x24e   : > { %2396 = vst.msk [vmem:[%s3274_s25 + $0x1c] sm:$0xf] %vm572_vm2, %v2380_v7  ;;  %v2473_v13 = vsel %vm1124_vm9, %v2451_v42, 0.0 }
 0x24f   : > { %v2202_v25 = vpop.permute.xlu1 %2201  ;;  %v1421_v59 = vpop.permute.xlu0 %1420  ;;  %v4177_v57 = vadd.f32 %v2473_v13, %v2472_v34 }
 0x250   : > { %v1460_v29 = vadd.f32 %v1421_v59, %v1355_v22  ;;  %v2206_v50 = vpop.permute.xlu2 %2205 }
 0x252   : > { %v1670_v5 = vadd.f32 %v3850_v26, %v1460_v29 }
 0x254   : > { %v1798_v19 = vadd.f32 %v1759_v56, %v1670_v5 }
 0x256   : > { %v1902_v60 = vadd.f32 %v1863_v40, %v1798_v19 }
 0x257   : > { %v2306_v12 = vpop.permute.xlu1 %2305  ;;  %v1318_v9 = vpop.permute.xlu0 %1317 }
 0x258   : > { %v2113_v4 = vadd.f32 %v3861_v14, %v1902_v60  ;;  %v2310_v35 = vpop.permute.xlu2 %2309  ;;  %v1356_v43 = vadd.f32 %v1318_v9, %v3868_v30 }
 0x25a   : > { %v2241_v61 = vadd.f32 %v2202_v25, %v2113_v4 }
 0x25c   : > { %v2345_v49 = vadd.f32 %v2306_v12, %v2241_v61 }
 0x25e   : > { %v2365_v33 = vadd.f32 %v3825_v55, %v2345_v49 }
 0x25f   : > { %v1423_v39 = vpop.permute.xlu1 %1422  ;;  %v1865_v63 = vpop.permute.xlu0 %1864 }
 0x260   : > { %v2381_v10 = vpack.c.bf16 %v2365_v33, %v2365_v33  ;;  %v1461_v38 = vadd.f32 %v1423_v39, %v1356_v43  ;;  %v1322_v51 = vpop.permute.xlu2 %1321  ;;  %v2452_v61 = vmul.f32 %v2365_v33, %v2365_v33 }
 0x261   : > { %v1358_v25 = vadd.f32 %v1322_v51, %v3970_v11 }
 0x262   : > { %2397 = vst.msk [vmem:[%s3274_s25 + $0x20] sm:$0xf] %vm572_vm2, %v2381_v10  ;;  %v1671_v26 = vadd.f32 %v3891_v3, %v1461_v38  ;;  %v2118_v3 = vadd.f32 %v3945_v16, %v4123_v6  ;;  %v2475_v43 = vsel %vm1124_vm9, %v2452_v61, 0.0 }
 0x264   : > { %v1799_v40 = vadd.f32 %v1761_v17, %v1671_v26 }
 0x266   : > { %v1903_v20 = vadd.f32 %v1865_v63, %v1799_v40 }
 0x267   : > { %v2204_v14 = vpop.permute.xlu0 %2203  ;;  %v1320_v36 = vpop.permute.xlu1 %1319 }
 0x268   : > { %v2212_v37 = vpop.permute.xlu2 %2211  ;;  %v2114_v34 = vadd.f32 %v3902_v0, %v1903_v20  ;;  %v1357_v30 = vadd.f32 %v1320_v36, %v3935_v41 }
 0x269   : > { %v2246_v0 = vadd.f32 %v2212_v37, %v2118_v3 }
 0x26a   : > { %v2242_v27 = vadd.f32 %v2204_v14, %v2114_v34  ;;  %v1462_v45 = vadd.f32 %v1425_v28, %v1357_v30  ;;  %v2476_v14 = vadd.f32 %v2475_v43, %v4177_v57 }
 0x26c   : > { %v1672_v17 = vadd.f32 %v3983_v2, %v1462_v45 }
 0x26f   : > { %v2308_v52 = vpop.permute.xlu0 %2307  ;;  %v1867_v18 = vpop.permute.xlu1 %1866 }
 0x270   : > { %v2346_v15 = vadd.f32 %v2308_v52, %v2242_v27  ;;  %v1869_v46 = vpop.permute.xlu2 %1868 }
 0x272   : > { %v2366_v53 = vadd.f32 %v3825_v55, %v2346_v15 }
 0x274   : > { %v2382_v56 = vpack.c.bf16 %v2366_v53, %v2366_v53  ;;  %v2453_v49 = vmul.f32 %v2366_v53, %v2366_v53 }
 0x276   : > { %2398 = vst.msk [vmem:[%s3274_s25 + $0x24] sm:$0xf] %vm572_vm2, %v2382_v56  ;;  %v2477_v40 = vsel %vm1124_vm9, %v2453_v49, 0.0 }
 0x277   : > { %v1763_v62 = vpop.permute.xlu0 %1762  ;;  %v2214_v8 = vpop.permute.xlu1 %2213  ;;  %v2478_v34 = vadd.f32 %v2477_v40, %v2476_v14 }
 0x278   : > { %v1800_v41 = vadd.f32 %v1763_v62, %v1672_v17  ;;  %v2316_v7 = vpop.permute.xlu2 %2315 }
 0x279   : > { %v2350_v42 = vadd.f32 %v2316_v7, %v2246_v0 }
 0x27a   : > { %v1904_v47 = vadd.f32 %v1867_v18, %v1800_v41 }
 0x27b   : > { %v2370_v28 = vadd.f32 %v3825_v55, %v2350_v42 }
 0x27c   : > { %v2115_v22 = vadd.f32 %v3954_v23, %v1904_v47 }
 0x27d   : > { %v2386_v13 = vpack.c.bf16 %v2370_v28, %v2370_v28  ;;  %v2457_v3 = vmul.f32 %v2370_v28, %v2370_v28  ;;  %v2430_v7 = vsel %vm1124_vm9, %v2370_v28, 0.0 }
 0x27e   : > { %v2243_v16 = vadd.f32 %v2206_v50, %v2115_v22  ;;  %v2420_v50 = vsel %vm1124_vm9, %v2365_v33, 0.0 }
 0x27f   : > { %2402 = vst.msk [vmem:[%s3274_s25 + $0x34] sm:$0xf] %vm572_vm2, %v2386_v13  ;;  %v1765_v6 = vpop.permute.xlu1 %1764  ;;  %v1427_v2 = vpop.permute.xlu0 %1426  ;;  %v2421_v38 = vadd.f32 %v2420_v50, %v4171_v31  ;;  %v2119_v31 = vadd.f32 %v4003_v44, %v4154_v58  ;;  %v2485_v13 = vsel %vm1124_vm9, %v2457_v3, 0.0 }
 0x280   : > { %v2347_v59 = vadd.f32 %v2310_v35, %v2243_v16  ;;  %v1463_v29 = vadd.f32 %v1427_v2, %v1358_v25  ;;  %v2117_v35 = vadd.f32 %v3912_v1, %v4077_v21 }
 0x281   : > { %v2247_v56 = vadd.f32 %v2214_v8, %v2119_v31  ;;  %v2320_v8 = vpop.permute.xlu2 %2319 }
 0x282   : > { %v2367_v5 = vadd.f32 %v3825_v55, %v2347_v59  ;;  %v1673_v19 = vadd.f32 %v4016_v32, %v1463_v29  ;;  %v2422_v32 = vsel %vm1124_vm9, %v2366_v53, 0.0  ;;  %v2120_v53 = vadd.f32 %v4035_v54, %v4167_v48 }
 0x283   : > { %v2423_v1 = vadd.f32 %v2422_v32, %v2421_v38 }
 0x284   : > { %v2383_v60 = vpack.c.bf16 %v2367_v5, %v2367_v5  ;;  %v1801_v12 = vadd.f32 %v1765_v6, %v1673_v19  ;;  %v2454_v10 = vmul.f32 %v2367_v5, %v2367_v5 }
 0x286   : > { %2399 = vst.msk [vmem:[%s3274_s25 + $0x28] sm:$0xf] %vm572_vm2, %v2383_v60  ;;  %v1905_v9 = vadd.f32 %v1869_v46, %v1801_v12  ;;  %v2479_v21 = vsel %vm1124_vm9, %v2454_v10, 0.0 }
 0x287   : > { %v2208_v23 = vpop.permute.xlu1 %2207  ;;  %v2210_v4 = vpop.permute.xlu0 %2209  ;;  %v2480_v57 = vadd.f32 %v2479_v21, %v2478_v34 }
 0x288   : > { %v2116_v11 = vadd.f32 %v3987_v24, %v1905_v9  ;;  %v2245_v63 = vadd.f32 %v2210_v4, %v2117_v35  ;;  %v2424_v24 = vsel %vm1124_vm9, %v2367_v5, 0.0 }
 0x289   : > { %v2425_v27 = vadd.f32 %v2424_v24, %v2423_v1 }
 0x28a   : > { %v2244_v39 = vadd.f32 %v2208_v23, %v2116_v11 }
 0x28f   : > { %v2312_v51 = vpop.permute.xlu1 %2311  ;;  %v2314_v26 = vpop.permute.xlu0 %2313 }
 0x290   : > { %v2348_v33 = vadd.f32 %v2312_v51, %v2244_v39  ;;  %v2349_v20 = vadd.f32 %v2314_v26, %v2245_v63 }
 0x292   : > { %v2368_v36 = vadd.f32 %v3825_v55, %v2348_v33  ;;  %v2369_v37 = vadd.f32 %v3825_v55, %v2349_v20 }
 0x294   : > { %v2384_v30 = vpack.c.bf16 %v2368_v36, %v2368_v36  ;;  %v2426_v52 = vsel %vm1124_vm9, %v2368_v36, 0.0  ;;  %v2455_v18 = vmul.f32 %v2368_v36, %v2368_v36  ;;  %v2385_v15 = vpack.c.bf16 %v2369_v37, %v2369_v37 }
 0x295   : > { %v2427_v46 = vadd.f32 %v2426_v52, %v2425_v27  ;;  %v2456_v45 = vmul.f32 %v2369_v37, %v2369_v37  ;;  %v2428_v44 = vsel %vm1124_vm9, %v2369_v37, 0.0 }
 0x296   : > { %2400 = vst.msk [vmem:[%s3274_s25 + $0x2c] sm:$0xf] %vm572_vm2, %v2384_v30  ;;  %v2481_v17 = vsel %vm1124_vm9, %v2455_v18, 0.0 }
 0x297   : > { %v2482_v58 = vadd.f32 %v2481_v17, %v2480_v57  ;;  %2401 = vst.msk [vmem:[%s3274_s25 + $0x30] sm:$0xf] %vm572_vm2, %v2385_v15  ;;  %v2429_v0 = vadd.f32 %v2428_v44, %v2427_v46  ;;  %v2318_v62 = vpop.permute.xlu1 %2317  ;;  %v2216_v41 = vpop.permute.xlu0 %2215  ;;  %v2483_v42 = vsel %vm1124_vm9, %v2456_v45, 0.0 }
 0x298   : > { %v2351_v54 = vadd.f32 %v2318_v62, %v2247_v56  ;;  %v2248_v48 = vadd.f32 %v2216_v41, %v2120_v53 }
 0x299   : > { %v2484_v47 = vadd.f32 %v2483_v42, %v2482_v58  ;;  %v2431_v22 = vadd.f32 %v2430_v7, %v2429_v0 }
 0x29a   : > { %v2371_v25 = vadd.f32 %v3825_v55, %v2351_v54  ;;  %v2352_v16 = vadd.f32 %v2320_v8, %v2248_v48 }
 0x29b   : > { %v2486_v6 = vadd.f32 %v2485_v13, %v2484_v47 }
 0x29c   : > { %v2387_v2 = vpack.c.bf16 %v2371_v25, %v2371_v25  ;;  %v2432_v59 = vsel %vm1124_vm9, %v2371_v25, 0.0  ;;  %v2458_v29 = vmul.f32 %v2371_v25, %v2371_v25  ;;  %v2372_v28 = vadd.f32 %v3825_v55, %v2352_v16 }
 0x29d   : > { %v2433_v5 = vadd.f32 %v2432_v59, %v2431_v22 }
 0x29e   : > { %2403 = vst.msk [vmem:[%s3274_s25 + $0x38] sm:$0xf] %vm572_vm2, %v2387_v2  ;;  %v2487_v19 = vsel %vm1124_vm9, %v2458_v29, 0.0  ;;  %v2388_v60 = vpack.c.bf16 %v2372_v28, %v2372_v28  ;;  %v2434_v12 = vsel %vm1124_vm9, %v2372_v28, 0.0  ;;  %v2459_v9 = vmul.f32 %v2372_v28, %v2372_v28 }
 0x29f   : > { %v2488_v23 = vadd.f32 %v2487_v19, %v2486_v6  ;;  %v2435_v4 = vadd.f32 %v2434_v12, %v2433_v5 }
 0x2a0   : > { %2404 = vst.msk [vmem:[%s3274_s25 + $0x3c] sm:$0xf] %vm572_vm2, %v2388_v60  ;;  %v2489_v61 = vsel %vm1124_vm9, %v2459_v9, 0.0 }
 0x2a1   : > { %v2436_v11 = vrot.slane %v2435_v4, 4  ;;  %v2490_v50 = vadd.f32 %v2489_v61, %v2488_v23 }
 0x2a3   : > { %v2437_v55 = vadd.f32 %v2436_v11, %v2435_v4  ;;  %v2491_v49 = vrot.slane %v2490_v50, 4 }
 0x2a5   : > { %v2438_v35 = vrot.slane %v2437_v55, 2  ;;  %v2492_v43 = vadd.f32 %v2491_v49, %v2490_v50 }
 0x2a7   : > { %v2439_v32 = vadd.f32 %v2438_v35, %v2437_v55  ;;  %v2493_v39 = vrot.slane %v2492_v43, 2 }
 0x2a9   : > { %v2440_v63 = vrot.slane %v2439_v32, 1  ;;  %v2494_v10 = vadd.f32 %v2493_v39, %v2492_v43 }
 0x2ab   : > { %v2441_v38 = vadd.f32 %v2440_v63, %v2439_v32  ;;  %v2495_v51 = vrot.slane %v2494_v10, 1 }
 0x2ad   : > { %2443 = vst.msk [vmem:[%s530_s27] sm:$0x1] %vm539_vm0, %v2441_v38  ;;  %v2496_v26 = vadd.f32 %v2495_v51, %v2494_v10 }
 0x2af   : > { %2497 = vst.msk [vmem:[%s537_s17] sm:$0x1] %vm539_vm0, %v2496_v26 }
 0x2b0 PF: > { %s20_s13 = sadd.s32 1, %s3126_s13   ;;  %s4290_s30 = smov %s3118_s11 }
 0x2b1   : > { %p17_p1 = scmp.ge.s32.totalorder %s20_s13, 6   ;;  %s4291_s10 = smov %s3122_s12 }
 0x2b2   : > { %s4292_s11 = smov %s4295_s14  ;;  %s4293_s12 = smov %s4299_s15 }
 0x2b3   :  { %19 = sbr.rel (!%p17_p1) target bundleno = 3 (0x3), region = 130 }

// kernel: upblock_forward.5
= control target key start
LH: loop header
LB: loop body
LE: loop exit
PB: predicated region body
PF: predicated region fallthrough
CT: control target
= control target key end

     0   :  { %s3720_s13 = smov 0   ;;  %s3722_s14 = smov 0   ;;  %s4941_s0 = inlined_call_operand.vmem [shape: bf16[2,16,16,2], index: 0, kind: input, shape index: {}, may-alias: {0,1,2}]   ;;  %s4942_s1 = inlined_call_operand.vmem [shape: bf16[2,16,16,2], index: 1, kind: input, shape index: {}, may-alias: {0,1,2}]   ;;  %s4943_s2 = inlined_call_operand.vmem [shape: bf16[2,16,16,2], index: 2, kind: input, shape index: {}, may-alias: {0,1,2}]   ;;  %s4944_s3 = inlined_call_operand.vmem [shape: bf16[2,16,16,2], index: 3, kind: input, shape index: {}, may-alias: {3,4,5}]   ;;  %s4945_s4 = inlined_call_operand.vmem [shape: bf16[2,16,16,2], index: 4, kind: input, shape index: {}, may-alias: {3,4,5}]   ;;  %s4946_s5 = inlined_call_operand.vmem [shape: bf16[2,16,16,2], index: 5, kind: input, shape index: {}, may-alias: {3,4,5}]   ;;  %s4947_s6 = inlined_call_operand.vmem [shape: bf16[3,4,12], index: 6, kind: input, shape index: {}]   ;;  %s4948_s7 = inlined_call_operand.vmem [shape: f32[1,4], index: 7, kind: input, shape index: {}]   ;;  %s4949_s8 = inlined_call_operand.vmem [shape: bf16[2,16,16,4], index: 8, kind: output, shape index: {0}]   ;;  %s4950_s9 = inlined_call_operand.vmem [shape: f32[2,2,1,4], index: 9, kind: output, shape index: {1}]   ;;  %s4951_s10 = inlined_call_operand.vmem [shape: f32[2,2,1,4], index: 10, kind: output, shape index: {2}]  }
   0x1   :  { %4955 = sst [smem:[#allocation3_spill]] %s4941_s0  ;;  %s3724_s15 = smov 0  }
   0x2   :  { %4956 = sst [smem:[#allocation4_spill]] %s4944_s3  ;;  %s3726_s16 = smov 0  }
   0x3   :  { %s3728_s17 = smov 0  }
   0x4 LB: > { %s30_s18 = sadd.s32 1, %s3646_s15  ;;  %s33_s19 = sadd.s32 1, %s3650_s16  ;;  %s3654_s17 = sphi %s3728_s17, %s21_s17   ;;  %s3650_s16 = sphi %s3726_s16, %s4980_s16   ;;  %s3646_s15 = sphi %s3724_s15, %s4979_s15   ;;  %s3642_s14 = sphi %s3722_s14, %s4978_s14   ;;  %s3638_s13 = sphi %s3720_s13, %s4977_s13  }
   0x5   : > { %p31_p0 = scmp.ge.s32.totalorder %s30_s18, 2  ;;  %p3270_p1 = scmp.ge.s32.totalorder %s3654_s17, 1 }
   0x6   : > { %p489_p2 = scmp.lt.s32.totalorder %s3654_s17, 5 }
   0x7   : > { %s4982_s18 = smov (%p31_p0, %s30_s18), 0  ;;  %s4984_s19 = smov (!%p31_p0, %s33_s19), %s3650_s16 }
   0x8   : > { %p490_p3 = pnand %p3270_p1, %p489_p2  ;;  %p35_p4 = scmp.ge.s32.totalorder %s4984_s19, 2 }
   0x9   : > { %s3767_s20 = sshll.u32 (!%p490_p3), %s3638_s13, 3  ;;  %p614_p5 = scmp.lt.s32.totalorder (!%p490_p3), %s3642_s14, 1 }
   0xa   : > { %s4986_s19 = smov (%p35_p4, %s4984_s19), 0  ;;  %493 = sbr.rel (%p490_p3) target bundleno = 1120 (0x460), region = 52 }
   0xb   : > { %p616_p6 = scmp.lt.s32.totalorder (!%p490_p3), %s3767_s20, 15  ;;  %s3276_s25 = sadd.s32 (!%p490_p3), 4294967295, %s3767_s20 }
   0xc   : > { %p626_p7 = scmp.gt.s32.totalorder (!%p490_p3), %s3276_s25, 0  ;;  %p3277_p8 = scmp.lt.s32.totalorder (!%p490_p3), %s3276_s25, 15 }
   0xd   : > { %s4961_s3 = sld [smem:[#allocation4_spill]] (!%p490_p3)  ;;  %s3522_s11 = sadd.s32 (!%p490_p3), 8, %s3767_s20 }
   0xe   : > { %p3830_p9 = scmp.lt.s32.totalorder (!%p490_p3), %s3522_s11, 15  ;;  %s4963_s0 = sld [smem:[#allocation3_spill]] (!%p490_p3) }
   0xf   : > { %vm729_vm0 = vcmask 24576   ;;  %vm730_vm1 = vsmask.f32 256  ;;  %v735_v0 = vld [vmem:[#allocation2 + $0xc] sm:$0x1]  ;;  %vm762_vm2 = vcmask 27648  }
  0x10   : > { %vm3756_vm3 = vmand %vm729_vm0, %vm730_vm1  ;;  %v738_v2 = vld [vmem:[#allocation2 + $0x18] sm:$0x1]  ;;  %v741_v3 = vld [vmem:[#allocation2 + $0x24] sm:$0x1]  ;;  %vm763_vm4 = vsmask.f32 7938 }
  0x11   : > { %v736_v4 = vsel %vm3756_vm3, 0, %v735_v0  ;;  %v739_v5 = vsel %vm3756_vm3, 0, %v738_v2  ;;  %v742_v6 = vsel %vm3756_vm3, 0, %v741_v3  ;;  %v744_v7 = vld [vmem:[#allocation2 + $0x30] sm:$0x1]  ;;  %vm3779_vm5 = vmand %vm762_vm2, %vm763_vm4  ;;  %s4988_s14 = smov (!%p614_p5, %s3642_s14), 1 }
  0x12   : > { %737 = vst [vmem:[#allocation2 + $0xc] sm:$0x1] %v736_v4  ;;  %v745_v8 = vsel %vm3756_vm3, 0, %v744_v7  ;;  %v747_v9 = vld [vmem:[#allocation2 + $0x3c] sm:$0x1]  ;;  %s617_s21 = scalar_select %p616_p6, %s3767_s20, 15 }
  0x13   : > { %740 = vst [vmem:[#allocation2 + $0x18] sm:$0x1] %v739_v5  ;;  %v748_v10 = vsel %vm3756_vm3, 0, %v747_v9  ;;  %v750_v11 = vld [vmem:[#allocation2 + $0x48] sm:$0x1]  ;;  %s3792_s22 = sshll.u32 %s4988_s14, 5 }
  0x14   : > { %743 = vst [vmem:[#allocation2 + $0x24] sm:$0x1] %v742_v6  ;;  %v751_v12 = vsel %vm3756_vm3, 0, %v750_v11  ;;  %v753_v13 = vld [vmem:[#allocation2 + $0x54] sm:$0x1]  ;;  %s3272_s23 = sshll.u32 %s617_s21, 1 }
  0x15   : > { %746 = vst [vmem:[#allocation2 + $0x30] sm:$0x1] %v745_v8  ;;  %v754_v15 = vsel %vm3756_vm3, 0, %v753_v13  ;;  %v756_v16 = vld [vmem:[#allocation2 + $0x60] sm:$0x1]  ;;  %s620_s24 = sadd.s32 %s3792_s22, %s3272_s23  ;;  %p716_p10 = scmp.lt.s32.totalorder %s3638_s13, 1 }
  0x16   : > { %749 = vst [vmem:[#allocation2 + $0x3c] sm:$0x1] %v748_v10  ;;  %v757_v17 = vsel %vm3756_vm3, 0, %v756_v16  ;;  %v768_v18 = vld [vmem:[#allocation2 + $0x14] sm:$0xf]  ;;  %s3802_s26 = sshll.u32 %s620_s24, 2 }
  0x17   : > { %752 = vst [vmem:[#allocation2 + $0x48] sm:$0x1] %v751_v12  ;;  %v769_v19 = vsel %vm3779_vm5, 0, %v768_v18  ;;  %v771_v20 = vld [vmem:[#allocation2 + $0x20] sm:$0xf]  ;;  %s3812_s29 = scalar_lea.vmem %s4961_s3, %s3802_s26  ;;  %s3823_s23 = scalar_lea.vmem %s4949_s8, %s3802_s26  ;;  %vm974_vm6 = vcmask 11264  }
  0x18   : > { %755 = vst [vmem:[#allocation2 + $0x54] sm:$0x1] %v754_v15  ;;  %v772_v21 = vsel %vm3779_vm5, 0, %v771_v20  ;;  %v774_v22 = vld [vmem:[#allocation2 + $0x2c] sm:$0xf]  ;;  %s627_s30 = scalar_select %p626_p7, %s3276_s25, 0  ;;  %vm3872_vm9 = vmand %vm974_vm6, %vm763_vm4 }
  0x19   : > { %758 = vst [vmem:[#allocation2 + $0x60] sm:$0x1] %v757_v17  ;;  %v775_v23 = vsel %vm3779_vm5, 0, %v774_v22  ;;  %v777_v24 = vld [vmem:[#allocation2 + $0x38] sm:$0xf]  ;;  %s3840_s25 = scalar_lea.vmem %s4963_s0, %s3802_s26  ;;  %s3317_s21 = sshll.u32 %s4988_s14, 1 }
  0x1a   : > { %770 = vst [vmem:[#allocation2 + $0x14] sm:$0xf] %v769_v19  ;;  %v778_v25 = vsel %vm3779_vm5, 0, %v777_v24  ;;  %v780_v26 = vld [vmem:[#allocation2 + $0x44] sm:$0xf]  ;;  %s4990_s30 = smov (!%p3277_p8, %s627_s30), 15 }
  0x1b   : > { %773 = vst [vmem:[#allocation2 + $0x20] sm:$0xf] %v772_v21  ;;  %v781_v27 = vsel %vm3779_vm5, 0, %v780_v26  ;;  %v783_v28 = vld [vmem:[#allocation2 + $0x50] sm:$0xf]  ;;  %s3282_s28 = sshll.u32 %s4990_s30, 1 }
  0x1c   : > { %776 = vst [vmem:[#allocation2 + $0x2c] sm:$0xf] %v775_v23  ;;  %v784_v29 = vsel %vm3779_vm5, 0, %v783_v28  ;;  %v786_v30 = vld [vmem:[#allocation2 + $0x5c] sm:$0xf]  ;;  %s634_s12 = sadd.s32 %s3282_s28, %s3792_s22  ;;  %s4992_s11 = smov (!%p3830_p9, %s3522_s11), 15 }
  0x1d   : > { %779 = vst [vmem:[#allocation2 + $0x38] sm:$0xf] %v778_v25  ;;  %v787_v31 = vsel %vm3779_vm5, 0, %v786_v30  ;;  %v789_v32 = vld [vmem:[#allocation2 + $0x68] sm:$0xf]  ;;  %s3284_s26 = sshll.u32 %s634_s12, 2 }
  0x1e   : > { %782 = vst [vmem:[#allocation2 + $0x44] sm:$0xf] %v781_v27  ;;  %v790_v33 = vsel %vm3779_vm5, 0, %v789_v32  ;;  %v732_v34 = vld [vmem:[#allocation2] sm:$0x1]  ;;  %s3852_s27 = scalar_lea.vmem %s4942_s1, %s3284_s26  ;;  %s3857_s28 = scalar_lea.vmem %s4945_s4, %s3284_s26  ;;  %vm981_vm7 = vcmask 8192  }
  0x1f   : > { %785 = vst [vmem:[#allocation2 + $0x50] sm:$0xf] %v784_v29  ;;  %v733_v35 = vsel %vm3756_vm3, 0, %v732_v34  ;;  %v759_v36 = vld [vmem:[#allocation2 + $0x6c] sm:$0x1]  ;;  %s717_s14 = scalar_select %p716_p10, %s3638_s13, 1  ;;  %vm3883_vm10 = vmand %vm981_vm7, %vm730_vm1 }
  0x20   : > { %788 = vst [vmem:[#allocation2 + $0x5c] sm:$0xf] %v787_v31  ;;  %v760_v37 = vsel %vm3756_vm3, 0, %v759_v36  ;;  %v765_v38 = vld [vmem:[#allocation2 + $0x8] sm:$0xf]  ;;  %s4994_s11 = smov (!%p3830_p9, %s4992_s11), 15 }
  0x21   : > { %791 = vst [vmem:[#allocation2 + $0x68] sm:$0xf] %v790_v33  ;;  %v766_v39 = vsel %vm3779_vm5, 0, %v765_v38  ;;  %v792_v40 = vld [vmem:[#allocation2 + $0x74] sm:$0xf]  ;;  %s3868_s0 = sadd.s32 %s3317_s21, %s717_s14  ;;  %s3289_s3 = sshll.u32 %s4994_s11, 1 }
  0x22   : > { %734 = vst [vmem:[#allocation2] sm:$0x1] %v733_v35  ;;  %v793_v41 = vsel %vm3779_vm5, 0, %v792_v40  ;;  %v795_v42 = vld [vmem:[%s3840_s25] sm:$0xf]  ;;  %s720_s26 = scalar_lea.vmem %s4950_s9, %s3868_s0  ;;  %s651_s21 = sadd.s32 %s3289_s3, %s3792_s22 }
  0x23   : > { %761 = vst [vmem:[#allocation2 + $0x6c] sm:$0x1] %v760_v37  ;;  %v814_v43 = vshrl.u32 %v795_v42, 16  ;;  %v817_v44 = vshll.u32 %v795_v42, 16  ;;  %v796_v45 = vld [vmem:[%s3840_s25 + $0x4] sm:$0xf]  ;;  %s727_s11 = scalar_lea.vmem %s4951_s10, %s3868_s0 }
  0x24   : > { %767 = vst [vmem:[#allocation2 + $0x8] sm:$0xf] %v766_v39  ;;  %vm811_vm8 = vsmask.f32 4368  ;;  %v822_v47 = vshrl.u32 %v796_v45, 16  ;;  %v825_v48 = vshll.u32 %v796_v45, 16 }
  0x25   : > { %794 = vst [vmem:[#allocation2 + $0x74] sm:$0xf] %v793_v41  ;;  %v816_v46 = vrot.slane %v814_v43, 7  ;;  %v976_v50 = vld [vmem:[#allocation2 + $0xc] sm:$0xf]  ;;  %vm3894_vm11 = vmor %vm730_vm1, %vm811_vm8  ;;  %s3291_s14 = sshll.u32 %s651_s21, 2 }
  0x26   : > { %v797_v51 = vld [vmem:[%s3840_s25 + $0x8] sm:$0xf]  ;;  %v824_v54 = vrot.slane %v822_v47, 7  ;;  %v983_v56 = vld [vmem:[#allocation2 + $0x14] sm:$0x1]  ;;  %s3905_s20 = scalar_lea.vmem %s4943_s2, %s3291_s14  ;;  %s3910_s30 = scalar_lea.vmem %s4946_s5, %s3291_s14 }
  0x27   : > { %v819_v52 = vor.u32 %v817_v44, %v816_v46  ;;  %v820_v53 = vrot.slane %v816_v46, 4  ;;  %v831_v57 = vshrl.u32 %v797_v51, 16  ;;  %v834_v59 = vshll.u32 %v797_v51, 16  ;;  %v986_v60 = vld [vmem:[#allocation2 + $0x18] sm:$0xf]  ;;  %p3319_p11 = scmp.ne.s32.totalorder %s3638_s13, 0 }
  0x28   : > { %v798_v61 = vld [vmem:[%s3840_s25 + $0xc] sm:$0xf]  ;;  %v827_v63 = vor.u32 %v825_v48, %v824_v54  ;;  %v829_v0 = vrot.slane %v824_v54, 4  ;;  %v799_v2 = vld [vmem:[%s3840_s25 + $0x10] sm:$0xf] }
  0x29   : > { %v977_v62 = vsel %vm3872_vm9, %v819_v52, %v976_v50  ;;  %v833_v1 = vrot.slane %v831_v57, 7  ;;  %v839_v3 = vshrl.u32 %v798_v61, 16  ;;  %v842_v4 = vshll.u32 %v798_v61, 16  ;;  %v990_v10 = vld [vmem:[#allocation2 + $0x20] sm:$0x1] }
  0x2a   : > { %978 = vst [vmem:[#allocation2 + $0xc] sm:$0xf] %v977_v62  ;;  %v848_v5 = vshrl.u32 %v799_v2, 16  ;;  %v851_v6 = vshll.u32 %v799_v2, 16  ;;  %v828_v7 = vsel %vm3894_vm11, %v820_v53, %v827_v63  ;;  %v984_v8 = vsel %vm3883_vm10, %v829_v0, %v983_v56  ;;  %v993_v11 = vld [vmem:[#allocation2 + $0x24] sm:$0xf] }
  0x2b   : > { %v836_v9 = vor.u32 %v834_v59, %v833_v1  ;;  %v800_v12 = vld [vmem:[%s3840_s25 + $0x14] sm:$0xf]  ;;  %980 = vst.msk [vmem:[#allocation2 + $0x10] sm:$0xf] %vm974_vm6, %v828_v7  ;;  %v837_v13 = vrot.slane %v833_v1, 4  ;;  %v841_v14 = vrot.slane %v839_v3, 7 }
  0x2c   : > { %v850_v15 = vrot.slane %v848_v5, 7  ;;  %v856_v16 = vshrl.u32 %v800_v12, 16  ;;  %985 = vst [vmem:[#allocation2 + $0x14] sm:$0x1] %v984_v8  ;;  %v859_v18 = vshll.u32 %v800_v12, 16 }
  0x2d   : > { %v987_v17 = vsel %vm3872_vm9, %v836_v9, %v986_v60  ;;  %v801_v19 = vld [vmem:[%s3840_s25 + $0x18] sm:$0xf]  ;;  %v844_v20 = vor.u32 %v842_v4, %v841_v14  ;;  %v846_v21 = vrot.slane %v841_v14, 4  ;;  %v997_v23 = vld [vmem:[#allocation2 + $0x2c] sm:$0x1] }
  0x2e   : > { %988 = vst [vmem:[#allocation2 + $0x18] sm:$0xf] %v987_v17  ;;  %v853_v22 = vor.u32 %v851_v6, %v850_v15  ;;  %v854_v24 = vrot.slane %v850_v15, 4  ;;  %v858_v25 = vrot.slane %v856_v16, 7  ;;  %v865_v26 = vshrl.u32 %v801_v19, 16 }
  0x2f   : > { %v868_v27 = vshll.u32 %v801_v19, 16  ;;  %v802_v28 = vld [vmem:[%s3840_s25 + $0x1c] sm:$0xf]  ;;  %v845_v29 = vsel %vm3894_vm11, %v837_v13, %v844_v20  ;;  %v991_v30 = vsel %vm3883_vm10, %v846_v21, %v990_v10  ;;  %v1000_v32 = vld [vmem:[#allocation2 + $0x30] sm:$0xf] }
  0x30   : > { %v994_v31 = vsel %vm3872_vm9, %v853_v22, %v993_v11  ;;  %v873_v33 = vshrl.u32 %v802_v28, 16  ;;  %v803_v34 = vld [vmem:[%s3840_s25 + $0x20] sm:$0xf]  ;;  %989 = vst.msk [vmem:[#allocation2 + $0x1c] sm:$0xf] %vm974_vm6, %v845_v29  ;;  %v861_v35 = vor.u32 %v859_v18, %v858_v25  ;;  %v863_v36 = vrot.slane %v858_v25, 4 }
  0x31   : > { %v867_v37 = vrot.slane %v865_v26, 7  ;;  %v876_v38 = vshll.u32 %v802_v28, 16  ;;  %992 = vst [vmem:[#allocation2 + $0x20] sm:$0x1] %v991_v30  ;;  %v882_v40 = vshrl.u32 %v803_v34, 16  ;;  %v885_v41 = vshll.u32 %v803_v34, 16 }
  0x32   : > { %v875_v39 = vrot.slane %v873_v33, 7  ;;  %995 = vst [vmem:[#allocation2 + $0x24] sm:$0xf] %v994_v31  ;;  %v862_v42 = vsel %vm3894_vm11, %v854_v24, %v861_v35  ;;  %v998_v43 = vsel %vm3883_vm10, %v863_v36, %v997_v23  ;;  %v1004_v46 = vld [vmem:[#allocation2 + $0x38] sm:$0x1] }
  0x33   : > { %v870_v44 = vor.u32 %v868_v27, %v867_v37  ;;  %v871_v45 = vrot.slane %v867_v37, 4  ;;  %996 = vst.msk [vmem:[#allocation2 + $0x28] sm:$0xf] %vm974_vm6, %v862_v42  ;;  %v884_v50 = vrot.slane %v882_v40, 7  ;;  %v804_v51 = vld [vmem:[%s3840_s25 + $0x24] sm:$0xf] }
  0x34   : > { %v878_v47 = vor.u32 %v876_v38, %v875_v39  ;;  %v880_v48 = vrot.slane %v875_v39, 4  ;;  %999 = vst [vmem:[#allocation2 + $0x2c] sm:$0x1] %v998_v43  ;;  %v1007_v53 = vld [vmem:[#allocation2 + $0x3c] sm:$0xf]  ;;  %v890_v54 = vshrl.u32 %v804_v51, 16 }
  0x35   : > { %v1001_v52 = vsel %vm3872_vm9, %v870_v44, %v1000_v32  ;;  %v893_v56 = vshll.u32 %v804_v51, 16  ;;  %v887_v60 = vor.u32 %v885_v41, %v884_v50  ;;  %v805_v61 = vld [vmem:[%s3840_s25 + $0x28] sm:$0xf]  ;;  %v888_v62 = vrot.slane %v884_v50, 4  ;;  %v1011_v3 = vld [vmem:[#allocation2 + $0x44] sm:$0x1] }
  0x36   : > { %1002 = vst [vmem:[#allocation2 + $0x30] sm:$0xf] %v1001_v52  ;;  %v879_v57 = vsel %vm3894_vm11, %v871_v45, %v878_v47  ;;  %v1005_v59 = vsel %vm3883_vm10, %v880_v48, %v1004_v46  ;;  %v892_v63 = vrot.slane %v890_v54, 7  ;;  %v899_v0 = vshrl.u32 %v805_v61, 16  ;;  %v806_v4 = vld [vmem:[%s3840_s25 + $0x2c] sm:$0xf] }
  0x37   : > { %1003 = vst.msk [vmem:[#allocation2 + $0x34] sm:$0xf] %vm974_vm6, %v879_v57  ;;  %v902_v1 = vshll.u32 %v805_v61, 16  ;;  %v1008_v2 = vsel %vm3872_vm9, %v887_v60, %v1007_v53  ;;  %v907_v8 = vshrl.u32 %v806_v4, 16  ;;  %v1014_v9 = vld [vmem:[#allocation2 + $0x48] sm:$0xf] }
  0x38   : > { %1006 = vst [vmem:[#allocation2 + $0x38] sm:$0x1] %v1005_v59  ;;  %v895_v5 = vor.u32 %v893_v56, %v892_v63  ;;  %v897_v6 = vrot.slane %v892_v63, 4  ;;  %v901_v7 = vrot.slane %v899_v0, 7  ;;  %v910_v10 = vshll.u32 %v806_v4, 16 }
  0x39   : > { %1009 = vst [vmem:[#allocation2 + $0x3c] sm:$0xf] %v1008_v2  ;;  %v807_v11 = vld [vmem:[%s3840_s25 + $0x30] sm:$0xf]  ;;  %v808_v16 = vld [vmem:[%s3840_s25 + $0x34] sm:$0xf] }
  0x3a   : > { %v896_v12 = vsel %vm3894_vm11, %v888_v62, %v895_v5  ;;  %v1012_v13 = vsel %vm3883_vm10, %v897_v6, %v1011_v3  ;;  %v904_v14 = vor.u32 %v902_v1, %v901_v7  ;;  %v905_v15 = vrot.slane %v901_v7, 4  ;;  %v1018_v22 = vld [vmem:[#allocation2 + $0x50] sm:$0x1]  ;;  %v1021_v28 = vld [vmem:[#allocation2 + $0x54] sm:$0xf] }
  0x3b   : > { %1010 = vst.msk [vmem:[#allocation2 + $0x40] sm:$0xf] %vm974_vm6, %v896_v12  ;;  %v909_v17 = vrot.slane %v907_v8, 7  ;;  %v916_v18 = vshrl.u32 %v807_v11, 16  ;;  %v919_v19 = vshll.u32 %v807_v11, 16  ;;  %v924_v20 = vshrl.u32 %v808_v16, 16 }
  0x3c   : > { %1013 = vst [vmem:[#allocation2 + $0x44] sm:$0x1] %v1012_v13  ;;  %v1015_v21 = vsel %vm3872_vm9, %v904_v14, %v1014_v9  ;;  %v927_v23 = vshll.u32 %v808_v16, 16  ;;  %v809_v29 = vld [vmem:[%s3840_s25 + $0x38] sm:$0xf] }
  0x3d   : > { %1016 = vst [vmem:[#allocation2 + $0x48] sm:$0xf] %v1015_v21  ;;  %v912_v24 = vor.u32 %v910_v10, %v909_v17  ;;  %v914_v25 = vrot.slane %v909_v17, 4  ;;  %v918_v26 = vrot.slane %v916_v18, 7  ;;  %v926_v27 = vrot.slane %v924_v20, 7 }
  0x3e   : > { %v810_v30 = vld [vmem:[%s3840_s25 + $0x3c] sm:$0xf]  ;;  %v933_v38 = vshrl.u32 %v809_v29, 16  ;;  %v936_v39 = vshll.u32 %v809_v29, 16  ;;  %v1028_v46 = vld [vmem:[#allocation2 + $0x60] sm:$0xf] }
  0x3f   : > { %v913_v31 = vsel %vm3894_vm11, %v905_v15, %v912_v24  ;;  %v1019_v32 = vsel %vm3883_vm10, %v914_v25, %v1018_v22  ;;  %v921_v33 = vor.u32 %v919_v19, %v918_v26  ;;  %v922_v34 = vrot.slane %v918_v26, 4  ;;  %v1025_v35 = vld [vmem:[#allocation2 + $0x5c] sm:$0x1]  ;;  %v1032_v51 = vld [vmem:[#allocation2 + $0x68] sm:$0x1] }
  0x40   : > { %1017 = vst.msk [vmem:[#allocation2 + $0x4c] sm:$0xf] %vm974_vm6, %v913_v31  ;;  %v929_v36 = vor.u32 %v927_v23, %v926_v27  ;;  %v931_v37 = vrot.slane %v926_v27, 4  ;;  %v941_v41 = vshrl.u32 %v810_v30, 16  ;;  %v944_v42 = vshll.u32 %v810_v30, 16 }
  0x41   : > { %1020 = vst [vmem:[#allocation2 + $0x50] sm:$0x1] %v1019_v32  ;;  %v1022_v40 = vsel %vm3872_vm9, %v921_v33, %v1021_v28  ;;  %v935_v45 = vrot.slane %v933_v38, 7 }
  0x42   : > { %1023 = vst [vmem:[#allocation2 + $0x54] sm:$0xf] %v1022_v40  ;;  %v930_v43 = vsel %vm3894_vm11, %v922_v34, %v929_v36  ;;  %v1026_v44 = vsel %vm3883_vm10, %v931_v37, %v1025_v35  ;;  %v943_v47 = vrot.slane %v941_v41, 7 }
  0x43   : > { %1024 = vst.msk [vmem:[#allocation2 + $0x58] sm:$0xf] %vm974_vm6, %v930_v43  ;;  %v938_v48 = vor.u32 %v936_v39, %v935_v45  ;;  %v939_v50 = vrot.slane %v935_v45, 4 }
  0x44   : > { %1027 = vst [vmem:[#allocation2 + $0x5c] sm:$0x1] %v1026_v44  ;;  %v946_v52 = vor.u32 %v944_v42, %v943_v47  ;;  %v948_v53 = vrot.slane %v943_v47, 4  ;;  %1038 = sbr.rel (%p3319_p11) target bundleno = 77 (0x4d), region = 56 }
  0x45   : > { %v1029_v54 = vsel %vm3872_vm9, %v938_v48, %v1028_v46 }
  0x46   : > { %1030 = vst [vmem:[#allocation2 + $0x60] sm:$0xf] %v1029_v54  ;;  %v947_v56 = vsel %vm3894_vm11, %v939_v50, %v946_v52  ;;  %v1033_v57 = vsel %vm3883_vm10, %v948_v53, %v1032_v51 }
  0x47   : > { %1031 = vst.msk [vmem:[#allocation2 + $0x64] sm:$0xf] %vm974_vm6, %v947_v56 }
  0x48   : > { %1034 = vst [vmem:[#allocation2 + $0x68] sm:$0x1] %v1033_v57 }
  0x49   : > { %v1039_v59 = vld [vmem:[#allocation2] sm:$0xf]  ;;  %v1043_v60 = vld [vmem:[#allocation2 + $0x8] sm:$0x1]  ;;  %v3656_v62 = vmov 0  }
  0x4a   : > { %v1040_v61 = vsel %vm3872_vm9, 0, %v1039_v59  ;;  %1042 = vst.msk [vmem:[#allocation2 + $0x4] sm:$0xf] %vm974_vm6, %v3656_v62  ;;  %v1044_v63 = vsel %vm3883_vm10, 0, %v1043_v60 }
  0x4b   : > { %1041 = vst [vmem:[#allocation2] sm:$0xf] %v1040_v61 }
  0x4c   : > { %1045 = vst [vmem:[#allocation2 + $0x8] sm:$0x1] %v1044_v63 }
  0x4d PF: > { %p3320_p12 = scmp.le.s32.totalorder %s3638_s13, 0 }
  0x4f   : > { %1049 = sbr.rel (%p3320_p12) target bundleno = 95 (0x5f), region = 60 }
  0x54   : > { %v1050_v0 = vld [vmem:[%s3852_s27] sm:$0xf]  ;;  %v1051_v1 = vld [vmem:[%s3852_s27 + $0x4] sm:$0xf]  ;;  %v1076_v9 = vld [vmem:[#allocation2 + $0x8] sm:$0x1] }
  0x55   : > { %v1053_v2 = vshrl.u32 %v1050_v0, 16  ;;  %v1056_v3 = vshll.u32 %v1050_v0, 16  ;;  %v1061_v4 = vshrl.u32 %v1051_v1, 16  ;;  %v1064_v5 = vshll.u32 %v1051_v1, 16  ;;  %v1072_v8 = vld [vmem:[#allocation2] sm:$0xf] }
  0x57   : > { %v1055_v6 = vrot.slane %v1053_v2, 7  ;;  %v1063_v7 = vrot.slane %v1061_v4, 7 }
  0x59   : > { %v1058_v10 = vor.u32 %v1056_v3, %v1055_v6  ;;  %v1059_v11 = vrot.slane %v1055_v6, 4  ;;  %v1066_v12 = vor.u32 %v1064_v5, %v1063_v7  ;;  %v1068_v13 = vrot.slane %v1063_v7, 4 }
  0x5b   : > { %v1073_v14 = vsel %vm3872_vm9, %v1058_v10, %v1072_v8  ;;  %v1067_v15 = vsel %vm3894_vm11, %v1059_v11, %v1066_v12  ;;  %v1077_v16 = vsel %vm3883_vm10, %v1068_v13, %v1076_v9 }
  0x5c   : > { %1074 = vst [vmem:[#allocation2] sm:$0xf] %v1073_v14 }
  0x5d   : > { %1075 = vst.msk [vmem:[#allocation2 + $0x4] sm:$0xf] %vm974_vm6, %v1067_v15 }
  0x5e   : > { %1078 = vst [vmem:[#allocation2 + $0x8] sm:$0x1] %v1077_v16 }
  0x5f PF: > { %p3321_p13 = scmp.ne.s32.totalorder %s3638_s13, 1 }
  0x61   : > { %1082 = sbr.rel (%p3321_p13) target bundleno = 106 (0x6a), region = 64 }
  0x66   : > { %v1084_v17 = vld [vmem:[#allocation2 + $0x6c] sm:$0xf]  ;;  %v1088_v18 = vld [vmem:[#allocation2 + $0x74] sm:$0x1]  ;;  %v3657_v20 = vmov 0  }
  0x67   : > { %v1085_v19 = vsel %vm3872_vm9, 0, %v1084_v17  ;;  %1087 = vst.msk [vmem:[#allocation2 + $0x70] sm:$0xf] %vm974_vm6, %v3657_v20  ;;  %v1089_v21 = vsel %vm3883_vm10, 0, %v1088_v18 }
  0x68   : > { %1086 = vst [vmem:[#allocation2 + $0x6c] sm:$0xf] %v1085_v19 }
  0x69   : > { %1090 = vst [vmem:[#allocation2 + $0x74] sm:$0x1] %v1089_v21 }
  0x6a PF: > { %p3322_p0 = scmp.ge.s32.totalorder %s3638_s13, 1 }
  0x6c   : > { %1094 = sbr.rel (%p3322_p0) target bundleno = 124 (0x7c), region = 68 }
  0x71   : > { %v1095_v22 = vld [vmem:[%s3905_s20] sm:$0xf]  ;;  %v1096_v23 = vld [vmem:[%s3905_s20 + $0x4] sm:$0xf]  ;;  %v1118_v30 = vld [vmem:[#allocation2 + $0x6c] sm:$0xf] }
  0x72   : > { %v1098_v24 = vshrl.u32 %v1095_v22, 16  ;;  %v1101_v25 = vshll.u32 %v1095_v22, 16  ;;  %v1106_v26 = vshrl.u32 %v1096_v23, 16  ;;  %v1109_v27 = vshll.u32 %v1096_v23, 16  ;;  %v1122_v31 = vld [vmem:[#allocation2 + $0x74] sm:$0x1] }
  0x74   : > { %v1100_v28 = vrot.slane %v1098_v24, 7  ;;  %v1108_v29 = vrot.slane %v1106_v26, 7 }
  0x76   : > { %v1103_v32 = vor.u32 %v1101_v25, %v1100_v28  ;;  %v1104_v33 = vrot.slane %v1100_v28, 4  ;;  %v1111_v34 = vor.u32 %v1109_v27, %v1108_v29  ;;  %v1113_v35 = vrot.slane %v1108_v29, 4 }
  0x78   : > { %v1119_v36 = vsel %vm3872_vm9, %v1103_v32, %v1118_v30  ;;  %v1112_v37 = vsel %vm3894_vm11, %v1104_v33, %v1111_v34  ;;  %v1123_v38 = vsel %vm3883_vm10, %v1113_v35, %v1122_v31 }
  0x79   : > { %1120 = vst [vmem:[#allocation2 + $0x6c] sm:$0xf] %v1119_v36 }
  0x7a   : > { %1121 = vst.msk [vmem:[#allocation2 + $0x70] sm:$0xf] %vm974_vm6, %v1112_v37 }
  0x7b   : > { %1124 = vst [vmem:[#allocation2 + $0x74] sm:$0x1] %v1123_v38 }
  0x7c PF: > { %v1126_v39 = vld [vmem:[%s3812_s29 + $0x4] sm:$0xf]  ;;  %v1125_v49 = vld [vmem:[%s3812_s29] sm:$0xf]  ;;  %v1127_v43 = vld [vmem:[%s3812_s29 + $0x8] sm:$0xf] }
  0x7d   : > { %v1150_v40 = vshrl.u32 %v1126_v39, 16  ;;  %v1142_v41 = vshrl.u32 %v1125_v49, 16  ;;  %v1145_v42 = vshll.u32 %v1125_v49, 16  ;;  %v1159_v45 = vshrl.u32 %v1127_v43, 16  ;;  %v1128_v46 = vld [vmem:[%s3812_s29 + $0xc] sm:$0xf] }
  0x7e   : > { %v1153_v47 = vshll.u32 %v1126_v39, 16  ;;  %v1129_v48 = vld [vmem:[%s3812_s29 + $0x10] sm:$0xf]  ;;  %v1167_v50 = vshrl.u32 %v1128_v46, 16  ;;  %v1130_v53 = vld [vmem:[%s3812_s29 + $0x14] sm:$0xf] }
  0x7f   : > { %v1152_v44 = vrot.slane %v1150_v40, 7  ;;  %v1144_v55 = vrot.slane %v1142_v41, 7  ;;  %s3658_s25 = smov 2   ;;  %v1161_v56 = vrot.slane %v1159_v45, 7  ;;  %v1162_v57 = vshll.u32 %v1127_v43, 16 }
  0x80   : > { %v1169_v54 = vrot.slane %v1167_v50, 7  ;;  %v1176_v59 = vshrl.u32 %v1129_v48, 16  ;;  %v1184_v62 = vshrl.u32 %v1130_v53, 16  ;;  %v1170_v0 = vshll.u32 %v1128_v46, 16  ;;  %v1131_v8 = vld [vmem:[%s3812_s29 + $0x18] sm:$0xf] }
  0x81   : > { %v1157_v51 = vrot.slane %v1152_v44, 4  ;;  %v1147_v52 = vor.u32 %v1145_v42, %v1144_v55  ;;  %v1148_v60 = vrot.slane %v1144_v55, 4  ;;  %v1155_v61 = vor.u32 %v1153_v47, %v1152_v44  ;;  %v1132_v9 = vld [vmem:[%s3812_s29 + $0x1c] sm:$0xf]  ;;  %v1134_v25 = vld [vmem:[%s3812_s29 + $0x24] sm:$0xf] }
  0x82   : > { %v1174_v63 = vrot.slane %v1169_v54, 4  ;;  %v1164_v1 = vor.u32 %v1162_v57, %v1161_v56  ;;  %v1187_v2 = vshll.u32 %v1130_v53, 16  ;;  %v1165_v3 = vrot.slane %v1161_v56, 4  ;;  %v1133_v26 = vld [vmem:[%s3812_s29 + $0x20] sm:$0xf] }
  0x83   : > { %1281 = vrot.lane.b32.xlu1 %v1157_v51, %s3658_s25  ;;  %1277 = vrot.lane.b32.xlu0 %v1147_v52, %s3658_s25  ;;  %v1156_v4 = vsel %vm3894_vm11, %v1148_v60, %v1155_v61  ;;  %v1178_v5 = vrot.slane %v1176_v59, 7  ;;  %v1186_v6 = vrot.slane %v1184_v62, 7  ;;  %v1172_v7 = vor.u32 %v1170_v0, %v1169_v54  ;;  %v1135_v30 = vld [vmem:[%s3812_s29 + $0x28] sm:$0xf]  ;;  %v1137_v37 = vld [vmem:[%s3812_s29 + $0x30] sm:$0xf] }
  0x84   : > { %1287 = vrot.lane.b32.xlu2 %v1174_v63, %s3658_s25  ;;  %v1179_v10 = vshll.u32 %v1129_v48, 16  ;;  %v1193_v14 = vshrl.u32 %v1131_v8, 16  ;;  %v1201_v15 = vshrl.u32 %v1132_v9, 16  ;;  %v1204_v20 = vshll.u32 %v1132_v9, 16  ;;  %v1136_v38 = vld [vmem:[%s3812_s29 + $0x2c] sm:$0xf] }
  0x85   : > { %v1173_v11 = vsel %vm3894_vm11, %v1165_v3, %v1172_v7  ;;  %v1182_v12 = vrot.slane %v1178_v5, 4  ;;  %v1189_v13 = vor.u32 %v1187_v2, %v1186_v6  ;;  %v1191_v21 = vrot.slane %v1186_v6, 4  ;;  %v1138_v44 = vld [vmem:[%s3812_s29 + $0x34] sm:$0xf]  ;;  %v1140_v48 = vld [vmem:[%s3812_s29 + $0x3c] sm:$0xf] }
  0x86   : > { %v1181_v16 = vor.u32 %v1179_v10, %v1178_v5  ;;  %v1195_v18 = vrot.slane %v1193_v14, 7  ;;  %v1203_v19 = vrot.slane %v1201_v15, 7  ;;  %v1196_v22 = vshll.u32 %v1131_v8, 16  ;;  %v1139_v50 = vld [vmem:[%s3812_s29 + $0x38] sm:$0xf] }
  0x87   : > { %v1190_v17 = vsel %vm3894_vm11, %v1182_v12, %v1189_v13  ;;  %v1218_v28 = vshrl.u32 %v1134_v25, 16  ;;  %v1210_v29 = vshrl.u32 %v1133_v26, 16  ;;  %v1227_v33 = vshrl.u32 %v1135_v30, 16 }
  0x88   : > { %v1199_v23 = vrot.slane %v1195_v18, 4  ;;  %v1206_v24 = vor.u32 %v1204_v20, %v1203_v19  ;;  %v1198_v27 = vor.u32 %v1196_v22, %v1195_v18  ;;  %v1208_v32 = vrot.slane %v1203_v19, 4  ;;  %v1365_v18 = vld [vmem:[#allocation2 + $0x20] sm:$0x1]  ;;  %v1372_v22 = vld [vmem:[#allocation2 + $0x2c] sm:$0x1] }
  0x89   : > { %v1220_v34 = vrot.slane %v1218_v28, 7  ;;  %v1212_v35 = vrot.slane %v1210_v29, 7  ;;  %v1213_v36 = vshll.u32 %v1133_v26, 16  ;;  %v1229_v39 = vrot.slane %v1227_v33, 7 }
  0x8a   : > { %v1207_v31 = vsel %vm3894_vm11, %v1199_v23, %v1206_v24  ;;  %v1230_v49 = vshll.u32 %v1135_v30, 16  ;;  %v1244_v42 = vshrl.u32 %v1137_v37, 16  ;;  %v1235_v43 = vshrl.u32 %v1136_v38, 16 }
  0x8b   : > { %1283 = vrot.lane.b32.xlu1 %v1164_v1, %s3658_s25  ;;  %1279 = vrot.lane.b32.xlu0 %v1156_v4, %s3658_s25  ;;  %v1225_v40 = vrot.slane %v1220_v34, 4  ;;  %v1215_v41 = vor.u32 %v1213_v36, %v1212_v35  ;;  %v1247_v46 = vshll.u32 %v1137_v37, 16  ;;  %v1252_v51 = vshrl.u32 %v1138_v44, 16 }
  0x8c   : > { %1285 = vrot.lane.b32.xlu2 %v1173_v11, %s3658_s25  ;;  %v1232_v55 = vor.u32 %v1230_v49, %v1229_v39  ;;  %v1246_v45 = vrot.slane %v1244_v42, 7  ;;  %v1237_v47 = vrot.slane %v1235_v43, 7  ;;  %v1269_v54 = vshrl.u32 %v1140_v48, 16 }
  0x8d   : > { %v1261_v56 = vshrl.u32 %v1139_v50, 16  ;;  %v1254_v57 = vrot.slane %v1252_v51, 7  ;;  %v1264_v62 = vshll.u32 %v1139_v50, 16  ;;  %v1221_v63 = vshll.u32 %v1134_v25, 16  ;;  %v1358_v25 = vld [vmem:[#allocation2 + $0x14] sm:$0x1] }
  0x8e   : > { %v1249_v52 = vor.u32 %v1247_v46, %v1246_v45  ;;  %v1242_v53 = vrot.slane %v1237_v47, 4  ;;  %v1271_v60 = vrot.slane %v1269_v54, 7  ;;  %v1216_v2 = vrot.slane %v1212_v35, 4  ;;  %v1361_v35 = vld [vmem:[#allocation2 + $0x18] sm:$0xf] }
  0x8f   : > { %v1259_v59 = vrot.slane %v1254_v57, 4  ;;  %v1263_v61 = vrot.slane %v1261_v56, 7  ;;  %v1223_v3 = vor.u32 %v1221_v63, %v1220_v34  ;;  %v1255_v4 = vshll.u32 %v1138_v44, 16  ;;  %v1382_v54 = vld [vmem:[#allocation2 + $0x3c] sm:$0xf] }
  0x90   : > { %v1276_v0 = vrot.slane %v1271_v60, 4  ;;  %v1238_v5 = vshll.u32 %v1136_v38, 16  ;;  %v1272_v7 = vshll.u32 %v1140_v48, 16  ;;  %v1250_v8 = vrot.slane %v1246_v45, 4  ;;  %v1393_v63 = vld [vmem:[#allocation2 + $0x50] sm:$0x1] }
  0x91   : > { %v1266_v1 = vor.u32 %v1264_v62, %v1263_v61  ;;  %v1224_v6 = vsel %vm3894_vm11, %v1216_v2, %v1223_v3  ;;  %v1257_v9 = vor.u32 %v1255_v4, %v1254_v57  ;;  %v1233_v10 = vrot.slane %v1229_v39, 4  ;;  %v1389_v39 = vld [vmem:[#allocation2 + $0x48] sm:$0xf]  ;;  %v1396_v62 = vld [vmem:[#allocation2 + $0x54] sm:$0xf] }
  0x92   : > { %v1240_v11 = vor.u32 %v1238_v5, %v1237_v47  ;;  %v1267_v12 = vrot.slane %v1263_v61, 4  ;;  %v1274_v13 = vor.u32 %v1272_v7, %v1271_v60  ;;  %vm1356_vm12 = vcmask 24592   ;;  %v1375_v47 = vld [vmem:[#allocation2 + $0x30] sm:$0xf]  ;;  %v1407_v4 = vld [vmem:[#allocation2 + $0x68] sm:$0x1] }
  0x93   : > { %1291 = vrot.lane.b32.xlu1 %v1190_v17, %s3658_s25  ;;  %1289 = vrot.lane.b32.xlu0 %v1181_v16, %s3658_s25  ;;  %v1258_v14 = vsel %vm3894_vm11, %v1250_v8, %v1257_v9  ;;  %vm4074_vm13 = vmand %vm1356_vm12, %vm730_vm1  ;;  %vm1349_vm14 = vcmask 27664   ;;  %v1403_v5 = vld [vmem:[#allocation2 + $0x60] sm:$0xf] }
  0x94   : > { %1293 = vrot.lane.b32.xlu2 %v1191_v21, %s3658_s25  ;;  %v1241_v15 = vsel %vm3894_vm11, %v1233_v10, %v1240_v11  ;;  %v1275_v16 = vsel %vm3894_vm11, %v1267_v12, %v1274_v13  ;;  %vm4085_vm15 = vmand %vm1349_vm14, %vm763_vm4 }
  0x9b   : > { %1297 = vrot.lane.b32.xlu1 %v1207_v31, %s3658_s25  ;;  %1295 = vrot.lane.b32.xlu0 %v1198_v27, %s3658_s25  ;;  %v1351_v27 = vld [vmem:[#allocation2 + $0xc] sm:$0xf] }
  0x9c   : > { %1299 = vrot.lane.b32.xlu2 %v1208_v32, %s3658_s25  ;;  %v1379_v32 = vld [vmem:[#allocation2 + $0x38] sm:$0x1] }
  0xa3   : > { %1305 = vrot.lane.b32.xlu1 %v1225_v40, %s3658_s25  ;;  %1301 = vrot.lane.b32.xlu0 %v1215_v41, %s3658_s25  ;;  %v1368_v41 = vld [vmem:[#allocation2 + $0x24] sm:$0xf] }
  0xa4   : > { %1307 = vrot.lane.b32.xlu2 %v1232_v55, %s3658_s25  ;;  %v1400_v55 = vld [vmem:[#allocation2 + $0x5c] sm:$0x1] }
  0xab   : > { %1313 = vrot.lane.b32.xlu1 %v1249_v52, %s3658_s25  ;;  %1311 = vrot.lane.b32.xlu0 %v1242_v53, %s3658_s25  ;;  %v1386_v53 = vld [vmem:[#allocation2 + $0x44] sm:$0x1] }
  0xac   : > { %1317 = vrot.lane.b32.xlu2 %v1259_v59, %s3658_s25 }
  0xb3   : > { %1323 = vrot.lane.b32.xlu1 %v1276_v0, %s3658_s25  ;;  %1319 = vrot.lane.b32.xlu0 %v1266_v1, %s3658_s25 }
  0xb4   : > { %1303 = vrot.lane.b32.xlu2 %v1224_v6, %s3658_s25 }
  0xbb   : > { %1315 = vrot.lane.b32.xlu1 %v1258_v14, %s3658_s25  ;;  %1309 = vrot.lane.b32.xlu0 %v1241_v15, %s3658_s25 }
  0xbc   : > { %1321 = vrot.lane.b32.xlu2 %v1275_v16, %s3658_s25 }
  0xde   : > { %v1288_v19 = vpop.permute.xlu2 %1287 }
  0xdf   : > { %v1366_v20 = vsel %vm4074_vm13, %v1288_v19, %v1365_v18 }
  0xe0   : > { %1367 = vst [vmem:[#allocation2 + $0x20] sm:$0x1] %v1366_v20 }
  0xe6   : > { %v1286_v21 = vpop.permute.xlu2 %1285 }
  0xe7   : > { %1364 = vst.msk [vmem:[#allocation2 + $0x1c] sm:$0xf] %vm1349_vm14, %v1286_v21 }
  0xee   : > { %v1294_v23 = vpop.permute.xlu2 %1293 }
  0xef   : > { %v1373_v24 = vsel %vm4074_vm13, %v1294_v23, %v1372_v22 }
  0xf0   : > { %1374 = vst [vmem:[#allocation2 + $0x2c] sm:$0x1] %v1373_v24 }
  0xf5   : > { %v1282_v28 = vpop.permute.xlu1 %1281  ;;  %v1278_v29 = vpop.permute.xlu0 %1277 }
  0xf6   : > { %v1359_v30 = vsel %vm4074_vm13, %v1282_v28, %v1358_v25  ;;  %v1352_v31 = vsel %vm4085_vm15, %v1278_v29, %v1351_v27  ;;  %v1300_v33 = vpop.permute.xlu2 %1299 }
  0xf7   : > { %1360 = vst [vmem:[#allocation2 + $0x14] sm:$0x1] %v1359_v30  ;;  %v1380_v34 = vsel %vm4074_vm13, %v1300_v33, %v1379_v32 }
  0xf8   : > { %1353 = vst [vmem:[#allocation2 + $0xc] sm:$0xf] %v1352_v31 }
  0xf9   : > { %1381 = vst [vmem:[#allocation2 + $0x38] sm:$0x1] %v1380_v34 }
  0xfd   : > { %v1284_v36 = vpop.permute.xlu1 %1283  ;;  %v1280_v37 = vpop.permute.xlu0 %1279 }
  0xfe   : > { %v1362_v38 = vsel %vm4085_vm15, %v1284_v36, %v1361_v35  ;;  %1355 = vst.msk [vmem:[#allocation2 + $0x10] sm:$0xf] %vm1349_vm14, %v1280_v37  ;;  %v1308_v49 = vpop.permute.xlu2 %1307 }
  0xff   : > { %1363 = vst [vmem:[#allocation2 + $0x18] sm:$0xf] %v1362_v38  ;;  %v1390_v40 = vsel %vm4085_vm15, %v1308_v49, %v1389_v39 }
 0x100   : > { %1391 = vst [vmem:[#allocation2 + $0x48] sm:$0xf] %v1390_v40 }
 0x105   : > { %v1292_v42 = vpop.permute.xlu1 %1291  ;;  %v1290_v43 = vpop.permute.xlu0 %1289 }
 0x106   : > { %1371 = vst.msk [vmem:[#allocation2 + $0x28] sm:$0xf] %vm1349_vm14, %v1292_v42  ;;  %v1369_v44 = vsel %vm4085_vm15, %v1290_v43, %v1368_v41  ;;  %v1318_v45 = vpop.permute.xlu2 %1317 }
 0x107   : > { %1370 = vst [vmem:[#allocation2 + $0x24] sm:$0xf] %v1369_v44  ;;  %v1401_v46 = vsel %vm4074_vm13, %v1318_v45, %v1400_v55 }
 0x108   : > { %1402 = vst [vmem:[#allocation2 + $0x5c] sm:$0x1] %v1401_v46 }
 0x10d   : > { %v1298_v48 = vpop.permute.xlu1 %1297  ;;  %v1296_v50 = vpop.permute.xlu0 %1295 }
 0x10e   : > { %1378 = vst.msk [vmem:[#allocation2 + $0x34] sm:$0xf] %vm1349_vm14, %v1298_v48  ;;  %v1376_v51 = vsel %vm4085_vm15, %v1296_v50, %v1375_v47  ;;  %v1304_v52 = vpop.permute.xlu2 %1303 }
 0x10f   : > { %1377 = vst [vmem:[#allocation2 + $0x30] sm:$0xf] %v1376_v51 }
 0x110   : > { %1385 = vst.msk [vmem:[#allocation2 + $0x40] sm:$0xf] %vm1349_vm14, %v1304_v52 }
 0x115   : > { %v1306_v56 = vpop.permute.xlu1 %1305  ;;  %v1302_v57 = vpop.permute.xlu0 %1301 }
 0x116   : > { %v1387_v59 = vsel %vm4074_vm13, %v1306_v56, %v1386_v53  ;;  %v1383_v60 = vsel %vm4085_vm15, %v1302_v57, %v1382_v54  ;;  %v1322_v61 = vpop.permute.xlu2 %1321 }
 0x117   : > { %1388 = vst [vmem:[#allocation2 + $0x44] sm:$0x1] %v1387_v59 }
 0x118   : > { %1384 = vst [vmem:[#allocation2 + $0x3c] sm:$0xf] %v1383_v60 }
 0x119   : > { %1406 = vst.msk [vmem:[#allocation2 + $0x64] sm:$0xf] %vm1349_vm14, %v1322_v61 }
 0x11d   : > { %v1314_v0 = vpop.permute.xlu1 %1313  ;;  %v1312_v1 = vpop.permute.xlu0 %1311 }
 0x11e   : > { %v1397_v2 = vsel %vm4085_vm15, %v1314_v0, %v1396_v62  ;;  %v1394_v3 = vsel %vm4074_vm13, %v1312_v1, %v1393_v63 }
 0x11f   : > { %1398 = vst [vmem:[#allocation2 + $0x54] sm:$0xf] %v1397_v2 }
 0x120   : > { %1395 = vst [vmem:[#allocation2 + $0x50] sm:$0x1] %v1394_v3 }
 0x125   : > { %v1324_v6 = vpop.permute.xlu1 %1323  ;;  %v1320_v7 = vpop.permute.xlu0 %1319 }
 0x126   : > { %v1408_v8 = vsel %vm4074_vm13, %v1324_v6, %v1407_v4  ;;  %v1404_v9 = vsel %vm4085_vm15, %v1320_v7, %v1403_v5 }
 0x127   : > { %1409 = vst [vmem:[#allocation2 + $0x68] sm:$0x1] %v1408_v8 }
 0x128   : > { %1405 = vst [vmem:[#allocation2 + $0x60] sm:$0xf] %v1404_v9 }
 0x12b   : > { %1412 = sbr.rel (%p3319_p11) target bundleno = 308 (0x134), region = 72 }
 0x12d   : > { %v1316_v10 = vpop.permute.xlu1 %1315  ;;  %v1310_v11 = vpop.permute.xlu0 %1309 }
 0x12e   : > { %1399 = vst.msk [vmem:[#allocation2 + $0x58] sm:$0xf] %vm1349_vm14, %v1316_v10 }
 0x12f   : > { %1392 = vst.msk [vmem:[#allocation2 + $0x4c] sm:$0xf] %vm1349_vm14, %v1310_v11 }
 0x130   : > { %v1413_v12 = vld [vmem:[#allocation2] sm:$0xf]  ;;  %v1417_v13 = vld [vmem:[#allocation2 + $0x8] sm:$0x1]  ;;  %v3659_v15 = vmov 0  }
 0x131   : > { %v1414_v14 = vsel %vm4085_vm15, 0, %v1413_v12  ;;  %1416 = vst.msk [vmem:[#allocation2 + $0x4] sm:$0xf] %vm1349_vm14, %v3659_v15  ;;  %v1418_v16 = vsel %vm4074_vm13, 0, %v1417_v13 }
 0x132   : > { %1415 = vst [vmem:[#allocation2] sm:$0xf] %v1414_v14 }
 0x133   : > { %1419 = vst [vmem:[#allocation2 + $0x8] sm:$0x1] %v1418_v16 }
 0x134 PF: > { %1422 = sbr.rel (%p3320_p12) target bundleno = 445 (0x1bd), region = 76  ;;  %s3660_s29 = smov (!%p3320_p12), 2  }
 0x139   : > { %v1423_v18 = vld [vmem:[%s3857_s28] sm:$0xf]  ;;  %v1424_v19 = vld [vmem:[%s3857_s28 + $0x4] sm:$0xf] }
 0x13a   : > { %v1426_v20 = vshrl.u32 %v1423_v18, 16  ;;  %v1429_v21 = vshll.u32 %v1423_v18, 16  ;;  %v1434_v22 = vshrl.u32 %v1424_v19, 16  ;;  %v1437_v23 = vshll.u32 %v1424_v19, 16  ;;  %v1451_v32 = vld [vmem:[#allocation2] sm:$0xf] }
 0x13b   : > { %v1455_v36 = vld [vmem:[#allocation2 + $0x8] sm:$0x1] }
 0x13c   : > { %v1428_v24 = vrot.slane %v1426_v20, 7  ;;  %v1436_v25 = vrot.slane %v1434_v22, 7 }
 0x13e   : > { %v1431_v27 = vor.u32 %v1429_v21, %v1428_v24  ;;  %v1432_v28 = vrot.slane %v1428_v24, 4  ;;  %v1439_v29 = vor.u32 %v1437_v23, %v1436_v25  ;;  %v1441_v31 = vrot.slane %v1436_v25, 4 }
 0x140   : > { %1442 = vrot.lane.b32.xlu0 %v1431_v27, %s3660_s29  ;;  %v1440_v30 = vsel %vm3894_vm11, %v1432_v28, %v1439_v29 }
 0x141   : > { %1444 = vrot.lane.b32.xlu1 %v1440_v30, %s3660_s29 }
 0x148   : > { %1446 = vrot.lane.b32.xlu0 %v1441_v31, %s3660_s29 }
 0x1b2   : > { %v1443_v33 = vpop.permute.xlu0 %1442 }
 0x1b3   : > { %v1452_v34 = vsel %vm4085_vm15, %v1443_v33, %v1451_v32  ;;  %v1445_v35 = vpop.permute.xlu1 %1444 }
 0x1b4   : > { %1453 = vst [vmem:[#allocation2] sm:$0xf] %v1452_v34 }
 0x1b5   : > { %1454 = vst.msk [vmem:[#allocation2 + $0x4] sm:$0xf] %vm1349_vm14, %v1445_v35 }
 0x1ba   : > { %v1447_v37 = vpop.permute.xlu0 %1446 }
 0x1bb   : > { %v1456_v38 = vsel %vm4074_vm13, %v1447_v37, %v1455_v36 }
 0x1bc   : > { %1457 = vst [vmem:[#allocation2 + $0x8] sm:$0x1] %v1456_v38 }
 0x1bd PF: > { %1460 = sbr.rel (%p3321_p13) target bundleno = 454 (0x1c6), region = 80 }
 0x1c2   : > { %v1462_v39 = vld [vmem:[#allocation2 + $0x6c] sm:$0xf]  ;;  %v1466_v49 = vld [vmem:[#allocation2 + $0x74] sm:$0x1]  ;;  %v3661_v41 = vmov 0  }
 0x1c3   : > { %v1463_v40 = vsel %vm4085_vm15, 0, %v1462_v39  ;;  %1465 = vst.msk [vmem:[#allocation2 + $0x70] sm:$0xf] %vm1349_vm14, %v3661_v41  ;;  %v1467_v42 = vsel %vm4074_vm13, 0, %v1466_v49 }
 0x1c4   : > { %1464 = vst [vmem:[#allocation2 + $0x6c] sm:$0xf] %v1463_v40 }
 0x1c5   : > { %1468 = vst [vmem:[#allocation2 + $0x74] sm:$0x1] %v1467_v42 }
 0x1c6 PF: > { %1471 = sbr.rel (%p3322_p0) target bundleno = 591 (0x24f), region = 84  ;;  %s3662_s27 = smov (!%p3322_p0), 2  }
 0x1cb   : > { %v1472_v43 = vld [vmem:[%s3910_s30] sm:$0xf]  ;;  %v1473_v44 = vld [vmem:[%s3910_s30 + $0x4] sm:$0xf]  ;;  %v1501_v57 = vld [vmem:[#allocation2 + $0x6c] sm:$0xf] }
 0x1cc   : > { %v1475_v55 = vshrl.u32 %v1472_v43, 16  ;;  %v1478_v45 = vshll.u32 %v1472_v43, 16  ;;  %v1483_v46 = vshrl.u32 %v1473_v44, 16  ;;  %v1486_v47 = vshll.u32 %v1473_v44, 16  ;;  %v1505_v62 = vld [vmem:[#allocation2 + $0x74] sm:$0x1] }
 0x1ce   : > { %v1477_v48 = vrot.slane %v1475_v55, 7  ;;  %v1485_v50 = vrot.slane %v1483_v46, 7 }
 0x1d0   : > { %v1480_v51 = vor.u32 %v1478_v45, %v1477_v48  ;;  %v1481_v52 = vrot.slane %v1477_v48, 4  ;;  %v1488_v53 = vor.u32 %v1486_v47, %v1485_v50  ;;  %v1490_v56 = vrot.slane %v1485_v50, 4 }
 0x1d2   : > { %1491 = vrot.lane.b32.xlu0 %v1480_v51, %s3662_s27  ;;  %v1489_v54 = vsel %vm3894_vm11, %v1481_v52, %v1488_v53 }
 0x1d3   : > { %1493 = vrot.lane.b32.xlu1 %v1489_v54, %s3662_s27 }
 0x1da   : > { %1495 = vrot.lane.b32.xlu0 %v1490_v56, %s3662_s27 }
 0x244   : > { %v1492_v59 = vpop.permute.xlu0 %1491 }
 0x245   : > { %v1502_v60 = vsel %vm4085_vm15, %v1492_v59, %v1501_v57  ;;  %v1494_v61 = vpop.permute.xlu1 %1493 }
 0x246   : > { %1503 = vst [vmem:[#allocation2 + $0x6c] sm:$0xf] %v1502_v60 }
 0x247   : > { %1504 = vst.msk [vmem:[#allocation2 + $0x70] sm:$0xf] %vm1349_vm14, %v1494_v61 }
 0x24c   : > { %v1496_v63 = vpop.permute.xlu0 %1495 }
 0x24d   : > { %v1506_v0 = vsel %vm4074_vm13, %v1496_v63, %v1505_v62 }
 0x24e   : > { %1507 = vst [vmem:[#allocation2 + $0x74] sm:$0x1] %v1506_v0 }
 0x24f PF: > { %v1532_v58 = vld [vmem:[%s4947_s6] sm:$0x3]  ;;  %vm1630_vm1 = vcmask 1041408   ;;  %v3387_v26 = vld [vmem:[%s4947_s6 + $0x2] sm:$0x3]  ;;  %v3536_v17 = vld [vmem:[#allocation2 + $0x48] sm:$0xff] }
 0x250   : > { %v1632_v1 = vsel %vm1630_vm1, %v1532_v58, 0  ;;  %v2060_v2 = vsel %vm1630_vm1, %v3387_v26, 0  ;;  %v3448_v3 = vld [vmem:[%s4947_s6 + $0x4] sm:$0x3]  ;;  %vm1593_vm3 = vcmask 31744   ;;  %v3539_v6 = vld [vmem:[#allocation2 + $0xc] sm:$0xff] }
 0x251   : > { %v3527_v4 = vld [vmem:[#allocation2] sm:$0xff]  ;;  %1641 = vmatpush.bf16.msra.mxu0 %v1632_v1  ;;  %3563 = vmatpush.bf16.msra.mxu3 %v1632_v1  ;;  %v2503_v5 = vsel %vm1630_vm1, %v3448_v3, 0  ;;  %v3551_v7 = vld [vmem:[#allocation2 + $0x18] sm:$0xff]  ;;  %v3528_v8 = vld [vmem:[#allocation2 + $0x8] sm:$0xff]  ;;  %vm1727_vm4 = vcmask 1046528   ;;  %vm1832_vm5 = vcmask 1045504  }
 0x252   : > { %2069 = vmatpush.bf16.msra.mxu1 %v2060_v2  ;;  %2512 = vmatpush.bf16.msra.mxu2 %v2503_v5  ;;  %v3537_v9 = vld [vmem:[#allocation2 + $0x50] sm:$0xff]  ;;  %v3552_v11 = vld [vmem:[#allocation2 + $0x20] sm:$0xff]  ;;  %v3538_v13 = vld [vmem:[#allocation2 + $0x58] sm:$0xff]  ;;  %s3663_s20 = smov 120   ;;  %s3664_s12 = smov 124  }
 0x253   : > { %v3540_v10 = vld [vmem:[#allocation2 + $0x14] sm:$0xff]  ;;  %v3541_v14 = vld [vmem:[#allocation2 + $0x1c] sm:$0xff]  ;;  %v3553_v15 = vld [vmem:[#allocation2 + $0x28] sm:$0xff] }
 0x254   : > { %3375 = vmatmul.msk.bf16.vlgmr.msra.gmra.mxu0 %vm1593_vm3, %v3527_v4  ;;  %3384 = vmatmul.msk.bf16.vlgmr.msra.gmra.mxu3 %vm1593_vm3, %v3536_v17  ;;  %v3529_v12 = vld [vmem:[#allocation2 + $0x10] sm:$0xff]  ;;  %v3530_v16 = vld [vmem:[#allocation2 + $0x18] sm:$0xff]  ;;  %v3542_v19 = vld [vmem:[#allocation2 + $0x24] sm:$0xff] }
 0x255   : > { %3564 = vmatpush.bf16.msrb.mxu3 %v2060_v2  ;;  %3436 = vmatmul.msk.bf16.vlgmr.msra.gmra.mxu1 %vm1593_vm3, %v3539_v6  ;;  %v3548_v18 = vld [vmem:[#allocation2 + $0x54] sm:$0xff]  ;;  %v3531_v21 = vld [vmem:[#allocation2 + $0x20] sm:$0xff]  ;;  %v3543_v23 = vld [vmem:[#allocation2 + $0x2c] sm:$0xff] }
 0x256   : > { %3497 = vmatmul.msk.bf16.vlgmr.msra.gmra.mxu2 %vm1593_vm3, %v3551_v7  ;;  %v3554_v20 = vld [vmem:[#allocation2 + $0x30] sm:$0xff]  ;;  %v3549_v22 = vld [vmem:[#allocation2 + $0x5c] sm:$0xff]  ;;  %v3550_v25 = vld [vmem:[#allocation2 + $0x64] sm:$0xff] }
 0x257   : > { %v3555_v24 = vld [vmem:[#allocation2 + $0x38] sm:$0xff]  ;;  %v3532_v27 = vld [vmem:[#allocation2 + $0x28] sm:$0xff]  ;;  %v3556_v29 = vld [vmem:[#allocation2 + $0x40] sm:$0xff] }
 0x258   : > { %v3544_v28 = vld [vmem:[#allocation2 + $0x34] sm:$0xff]  ;;  %v3545_v30 = vld [vmem:[#allocation2 + $0x3c] sm:$0xff]  ;;  %v3557_v31 = vld [vmem:[#allocation2 + $0x48] sm:$0xff] }
 0x259   : > { %3565 = vmatpush.bf16.msra.mxu3 %v2503_v5  ;;  %v3533_v34 = vld [vmem:[#allocation2 + $0x30] sm:$0xff]  ;;  %v3546_v36 = vld [vmem:[#allocation2 + $0x44] sm:$0xff]  ;;  %v3534_v54 = vld [vmem:[#allocation2 + $0x38] sm:$0xff] }
 0x25a   : > { %v3558_v47 = vld [vmem:[#allocation2 + $0x50] sm:$0xff]  ;;  %v3560_v48 = vld [vmem:[#allocation2 + $0x60] sm:$0xff]  ;;  %v3561_v7 = vld [vmem:[#allocation2 + $0x68] sm:$0xff] }
 0x264   : > { %3376 = vmatmul.msk.bf16.gmra.mxu0 %vm1593_vm3, %v3528_v8  ;;  %3385 = vmatmul.msk.bf16.gmra.mxu3 %vm1593_vm3, %v3537_v9 }
 0x265   : > { %3437 = vmatmul.msk.bf16.gmra.mxu1 %vm1593_vm3, %v3540_v10 }
 0x266   : > { %3498 = vmatmul.msk.bf16.gmra.mxu2 %vm1593_vm3, %v3552_v11 }
 0x274   : > { %3377 = vmatmul.msk.bf16.gmra.mxu0 %vm1593_vm3, %v3529_v12  ;;  %3386 = vmatmul.msk.bf16.gmra.mxu3 %vm1593_vm3, %v3538_v13  ;;  %v3535_v13 = vld [vmem:[#allocation2 + $0x40] sm:$0xff] }
 0x275   : > { %3438 = vmatmul.msk.bf16.gmra.mxu1 %vm1593_vm3, %v3541_v14 }
 0x276   : > { %3499 = vmatmul.msk.bf16.gmra.mxu2 %vm1593_vm3, %v3553_v15 }
 0x284   : > { %3378 = vmatmul.msk.bf16.gmra.mxu0 %vm1593_vm3, %v3530_v16  ;;  %3445 = vmatmul.msk.bf16.vlgmr.msrb.gmra.mxu3 %vm1593_vm3, %v3548_v18 }
 0x285   : > { %3439 = vmatmul.msk.bf16.gmra.mxu1 %vm1593_vm3, %v3542_v19 }
 0x286   : > { %3500 = vmatmul.msk.bf16.gmra.mxu2 %vm1593_vm3, %v3554_v20  ;;  %v3547_v20 = vld [vmem:[#allocation2 + $0x4c] sm:$0xff] }
 0x294   : > { %3379 = vmatmul.msk.bf16.gmra.mxu0 %vm1593_vm3, %v3531_v21  ;;  %3446 = vmatmul.msk.bf16.gmra.mxu3 %vm1593_vm3, %v3549_v22 }
 0x295   : > { %3440 = vmatmul.msk.bf16.gmra.mxu1 %vm1593_vm3, %v3543_v23 }
 0x296   : > { %3501 = vmatmul.msk.bf16.gmra.mxu2 %vm1593_vm3, %v3555_v24 }
 0x2a4   : > { %3447 = vmatmul.msk.bf16.gmra.mxu3 %vm1593_vm3, %v3550_v25  ;;  %3380 = vmatmul.msk.bf16.gmra.mxu0 %vm1593_vm3, %v3532_v27 }
 0x2a5   : > { %3441 = vmatmul.msk.bf16.gmra.mxu1 %vm1593_vm3, %v3544_v28 }
 0x2a6   : > { %3502 = vmatmul.msk.bf16.gmra.mxu2 %vm1593_vm3, %v3556_v29 }
 0x2b4   : > { %3381 = vmatmul.msk.bf16.gmra.mxu0 %vm1593_vm3, %v3533_v34  ;;  %3506 = vmatmul.msk.bf16.vlgmr.msra.gmra.mxu3 %vm1593_vm3, %v3560_v48 }
 0x2b5   : > { %3442 = vmatmul.msk.bf16.gmra.mxu1 %vm1593_vm3, %v3545_v30  ;;  %v3559_v30 = vld [vmem:[#allocation2 + $0x58] sm:$0xff] }
 0x2b6   : > { %3503 = vmatmul.msk.bf16.gmra.mxu2 %vm1593_vm3, %v3557_v31  ;;  %v3562_v31 = vld [vmem:[#allocation2 + $0x70] sm:$0xff] }
 0x2c4   : > { %3382 = vmatmul.msk.bf16.gmra.mxu0 %vm1593_vm3, %v3534_v54  ;;  %3507 = vmatmul.msk.bf16.gmra.mxu3 %vm1593_vm3, %v3561_v7 }
 0x2c5   : > { %3443 = vmatmul.msk.bf16.gmra.mxu1 %vm1593_vm3, %v3546_v36 }
 0x2c6   : > { %3504 = vmatmul.msk.bf16.gmra.mxu2 %vm1593_vm3, %v3558_v47 }
 0x2d1   : > { %v4195_v32 = vpop.f32.mrf.mxu0 }
 0x2d2   : > { %v4197_v33 = vpop.f32.mrf.mxu1  ;;  %v1728_v39 = vrot.slane %v4195_v32, 1  ;;  %v1833_v49 = vrot.slane %v4195_v32, 2 }
 0x2d3   : > { %v2171_v37 = vrot.slane %v4197_v33, 1  ;;  %v2275_v51 = vrot.slane %v4197_v33, 2 }
 0x2d4   : > { %3383 = vmatmul.msk.bf16.gmra.mxu0 %vm1593_vm3, %v3535_v13  ;;  %3508 = vmatmul.msk.bf16.gmra.mxu3 %vm1593_vm3, %v3562_v31 }
 0x2d5   : > { %3444 = vmatmul.msk.bf16.gmra.mxu1 %vm1593_vm3, %v3547_v20 }
 0x2d6   : > { %3505 = vmatmul.msk.bf16.gmra.mxu2 %vm1593_vm3, %v3559_v30 }
 0x2d7   : > { %v4200_v35 = vpop.f32.mrf.mxu3 }
 0x2d8   : > { %v1863_v57 = vrot.slane %v4200_v35, 2  ;;  %v1758_v3 = vrot.slane %v4200_v35, 1 }
 0x2d9   : > { %v4203_v38 = vpop.f32.mrf.mxu0  ;;  %v4207_v40 = vpop.f32.mrf.mxu2 }
 0x2da   : > { %v1729_v41 = vrot.slane %v4203_v38, 1  ;;  %v1834_v42 = vrot.slane %v4203_v38, 2  ;;  %v4211_v43 = vpop.f32.mrf.mxu1  ;;  %v2614_v58 = vrot.slane %v4207_v40, 1  ;;  %v2718_v9 = vrot.slane %v4207_v40, 2 }
 0x2db   : > { %v2172_v44 = vrot.slane %v4211_v43, 1  ;;  %v2276_v52 = vrot.slane %v4211_v43, 2 }
 0x2dc   : > { %v1835_v55 = vsel %vm1832_vm5, %v1833_v49, %v1834_v42  ;;  %v1730_v45 = vsel %vm1727_vm4, %v1728_v39, %v1729_v41 }
 0x2dd   : > { %v2173_v46 = vsel %vm1727_vm4, %v2171_v37, %v2172_v44  ;;  %1873 = vrot.lane.b32.xlu1 %v1835_v55, %s3663_s20  ;;  %1768 = vrot.lane.b32.xlu0 %v1730_v45, %s3664_s12  ;;  %v2277_v62 = vsel %vm1832_vm5, %v2275_v51, %v2276_v52 }
 0x2de   : > { %2211 = vrot.lane.b32.xlu2 %v2173_v46, %s3664_s12 }
 0x2df   : > { %v4223_v50 = vpop.f32.mrf.mxu3 }
 0x2e0   : > { %v1864_v53 = vrot.slane %v4223_v50, 2  ;;  %v1759_v26 = vrot.slane %v4223_v50, 1 }
 0x2e1   : > { %v1648_v56 = vpop.f32.mrf.mxu0  ;;  %v4231_v60 = vpop.f32.mrf.mxu2 }
 0x2e2   : > { %v1836_v59 = vrot.slane %v1648_v56, 2  ;;  %v1865_v61 = vsel %vm1832_vm5, %v1863_v57, %v1864_v53  ;;  %v2615_v1 = vrot.slane %v4231_v60, 1  ;;  %v2076_v4 = vpop.f32.mrf.mxu1  ;;  %v1760_v5 = vsel %vm1727_vm4, %v1758_v3, %v1759_v26 }
 0x2e3   : > { %v2719_v10 = vrot.slane %v4231_v60, 2  ;;  %v1731_v11 = vrot.slane %v1648_v56, 1  ;;  %v2174_v21 = vrot.slane %v2076_v4, 1  ;;  %v2278_v22 = vrot.slane %v2076_v4, 2 }
 0x2e4   : > { %v1837_v63 = vsel %vm1832_vm5, %v1834_v42, %v1836_v59  ;;  %v2616_v17 = vsel %vm1727_vm4, %v2614_v58, %v2615_v1 }
 0x2e5   : > { %1897 = vrot.lane.b32.xlu1 %v1865_v61, %s3663_s20  ;;  %2315 = vrot.lane.b32.xlu0 %v2277_v62, %s3663_s20  ;;  %v2720_v16 = vsel %vm1832_vm5, %v2718_v9, %v2719_v10  ;;  %v1732_v18 = vsel %vm1727_vm4, %v1729_v41, %v1731_v11  ;;  %v2279_v27 = vsel %vm1832_vm5, %v2276_v52, %v2278_v22 }
 0x2e6   : > { %1875 = vrot.lane.b32.xlu2 %v1837_v63, %s3663_s20  ;;  %v2175_v28 = vsel %vm1727_vm4, %v2172_v44, %v2174_v21 }
 0x2e7   : > { %v1693_v0 = vpop.f32.mrf.mxu3 }
 0x2e8   : > { %v1866_v2 = vrot.slane %v1693_v0, 2  ;;  %v1761_v36 = vrot.slane %v1693_v0, 1 }
 0x2e9   : > { %v2519_v8 = vpop.f32.mrf.mxu2  ;;  %v4253_v12 = vpop.f32.mrf.mxu0 }
 0x2ea   : > { %v1867_v6 = vsel %vm1832_vm5, %v1864_v53, %v1866_v2  ;;  %v2617_v14 = vrot.slane %v2519_v8, 1  ;;  %v4255_v15 = vpop.f32.mrf.mxu1  ;;  %v2721_v23 = vrot.slane %v2519_v8, 2  ;;  %v1838_v37 = vrot.slane %v4253_v12, 2 }
 0x2eb   : > { %v2280_v49 = vrot.slane %v4255_v15, 2  ;;  %v1762_v55 = vsel %vm1727_vm4, %v1759_v26, %v1761_v36  ;;  %v1733_v48 = vrot.slane %v4253_v12, 1  ;;  %v2176_v26 = vrot.slane %v4255_v15, 1 }
 0x2ec   : > { %v2618_v19 = vsel %vm1727_vm4, %v2615_v1, %v2617_v14  ;;  %v2722_v29 = vsel %vm1832_vm5, %v2719_v10, %v2721_v23 }
 0x2ed   : > { %2654 = vrot.lane.b32.xlu1 %v2616_v17, %s3664_s12  ;;  %1792 = vrot.lane.b32.xlu0 %v1760_v5, %s3664_s12 }
 0x2ee   : > { %1899 = vrot.lane.b32.xlu2 %v1867_v6, %s3663_s20 }
 0x2ef   : > { %v4267_v25 = vpop.f32.mrf.mxu3 }
 0x2f0   : > { %v1868_v52 = vrot.slane %v4267_v25, 2  ;;  %v1763_v54 = vrot.slane %v4267_v25, 1 }
 0x2f1   : > { %v4265_v24 = vpop.f32.mrf.mxu0  ;;  %v4287_v44 = vpop.f32.mrf.mxu2 }
 0x2f2   : > { %v4276_v34 = vpop.f32.mrf.mxu1  ;;  %v1839_v39 = vrot.slane %v4265_v24, 2  ;;  %v1734_v51 = vrot.slane %v4265_v24, 1  ;;  %v2619_v2 = vrot.slane %v4287_v44, 1  ;;  %v2723_v10 = vrot.slane %v4287_v44, 2 }
 0x2f3   : > { %v2281_v41 = vrot.slane %v4276_v34, 2  ;;  %v2177_v1 = vrot.slane %v4276_v34, 1 }
 0x2f4   : > { %v1840_v45 = vsel %vm1832_vm5, %v1838_v37, %v1839_v39  ;;  %v1735_v61 = vsel %vm1727_vm4, %v1733_v48, %v1734_v51 }
 0x2f5   : > { %2758 = vrot.lane.b32.xlu1 %v2720_v16, %s3663_s20  ;;  %1770 = vrot.lane.b32.xlu0 %v1732_v18, %s3664_s12  ;;  %v2282_v47 = vsel %vm1832_vm5, %v2280_v49, %v2281_v41  ;;  %v2178_v6 = vsel %vm1727_vm4, %v2176_v26, %v2177_v1 }
 0x2f6   : > { %2656 = vrot.lane.b32.xlu2 %v2618_v19, %s3664_s12 }
 0x2f7   : > { %v4293_v46 = vpop.f32.mrf.mxu3 }
 0x2f8   : > { %v1869_v53 = vrot.slane %v4293_v46, 2  ;;  %v1764_v56 = vrot.slane %v4293_v46, 1 }
 0x2f9   : > { %v4285_v42 = vpop.f32.mrf.mxu0  ;;  %v4311_v63 = vpop.f32.mrf.mxu2 }
 0x2fa   : > { %v1870_v59 = vsel %vm1832_vm5, %v1868_v52, %v1869_v53  ;;  %v2083_v62 = vpop.f32.mrf.mxu1  ;;  %v1765_v0 = vsel %vm1727_vm4, %v1763_v54, %v1764_v56  ;;  %v2620_v3 = vrot.slane %v4311_v63, 1  ;;  %v2724_v11 = vrot.slane %v4311_v63, 2 }
 0x2fb   : > { %v2179_v58 = vrot.slane %v2083_v62, 1  ;;  %v2283_v13 = vrot.slane %v2083_v62, 2  ;;  %v1736_v23 = vrot.slane %v4285_v42, 1 }
 0x2fc   : > { %v2621_v5 = vsel %vm1727_vm4, %v2619_v2, %v2620_v3  ;;  %v2725_v20 = vsel %vm1832_vm5, %v2723_v10, %v2724_v11 }
 0x2fd   : > { %2317 = vrot.lane.b32.xlu1 %v2279_v27, %s3663_s20  ;;  %2213 = vrot.lane.b32.xlu0 %v2175_v28, %s3664_s12  ;;  %v2180_v17 = vsel %vm1727_vm4, %v2177_v1, %v2179_v58  ;;  %v2284_v19 = vsel %vm1832_vm5, %v2281_v41, %v2283_v13  ;;  %v1737_v31 = vsel %vm1727_vm4, %v1734_v51, %v1736_v23 }
 0x2fe   : > { %2760 = vrot.lane.b32.xlu2 %v2722_v29, %s3663_s20 }
 0x2ff   : > { %v1700_v4 = vpop.f32.mrf.mxu3 }
 0x300   : > { %v1766_v27 = vrot.slane %v1700_v4, 1 }
 0x301   : > { %v4305_v57 = vpop.f32.mrf.mxu0  ;;  %v2526_v14 = vpop.f32.mrf.mxu2 }
 0x302   : > { %v1738_v8 = vrot.slane %v4305_v57, 1  ;;  %v1843_v21 = vrot.slane %v4305_v57, 2  ;;  %v1767_v30 = vsel %vm1727_vm4, %v1764_v56, %v1766_v27  ;;  %v4357_v37 = vpop.f32.mrf.mxu1  ;;  %v1871_v56 = vrot.slane %v1700_v4, 2 }
 0x303   : > { %v2181_v1 = vrot.slane %v4357_v37, 1  ;;  %v2285_v2 = vrot.slane %v4357_v37, 2 }
 0x305   : > { %1794 = vrot.lane.b32.xlu1 %v1762_v55, %s3664_s12  ;;  %1877 = vrot.lane.b32.xlu0 %v1840_v45, %s3663_s20  ;;  %v1841_v55 = vrot.slane %v4285_v42, 2  ;;  %v2622_v45 = vrot.slane %v2526_v14, 1 }
 0x306   : > { %2319 = vrot.lane.b32.xlu2 %v2282_v47, %s3663_s20 }
 0x307   : > { %v4333_v16 = vpop.f32.mrf.mxu3  ;;  %v2623_v48 = vsel %vm1727_vm4, %v2620_v3, %v2622_v45  ;;  %v1842_v51 = vsel %vm1832_vm5, %v1839_v39, %v1841_v55 }
 0x308   : > { %v2201_v49 = vrot.slane %v4333_v16, 1 }
 0x309   : > { %v4324_v7 = vpop.f32.mrf.mxu0  ;;  %v4346_v28 = vpop.f32.mrf.mxu2 }
 0x30a   : > { %v1739_v9 = vrot.slane %v4324_v7, 1  ;;  %v1844_v22 = vrot.slane %v4324_v7, 2  ;;  %v2624_v42 = vrot.slane %v4346_v28, 1  ;;  %v2728_v58 = vrot.slane %v4346_v28, 2 }
 0x30c   : > { %v1740_v18 = vsel %vm1727_vm4, %v1738_v8, %v1739_v9  ;;  %v1845_v29 = vsel %vm1832_vm5, %v1843_v21, %v1844_v22 }
 0x30d   : > { %1901 = vrot.lane.b32.xlu0 %v1870_v59, %s3663_s20  ;;  %1772 = vrot.lane.b32.xlu1 %v1735_v61, %s3664_s12  ;;  %v2726_v59 = vrot.slane %v2526_v14, 2  ;;  %v4377_v61 = vpop.f32.mrf.mxu1 }
 0x30e   : > { %1796 = vrot.lane.b32.xlu2 %v1765_v0, %s3664_s12  ;;  %v1872_v0 = vsel %vm1832_vm5, %v1869_v53, %v1871_v56  ;;  %v2182_v3 = vrot.slane %v4377_v61, 1  ;;  %v2286_v4 = vrot.slane %v4377_v61, 2 }
 0x30f   : > { %v4353_v36 = vpop.f32.mrf.mxu3  ;;  %v2727_v39 = vsel %vm1832_vm5, %v2724_v11, %v2726_v59  ;;  %v2305_v11 = vrot.slane %v4333_v16, 2 }
 0x310   : > { %v2202_v41 = vrot.slane %v4353_v36, 1  ;;  %v2287_v8 = vsel %vm1832_vm5, %v2285_v2, %v2286_v4  ;;  %v2306_v13 = vrot.slane %v4353_v36, 2 }
 0x311   : > { %v4370_v52 = vpop.f32.mrf.mxu2  ;;  %v1663_v10 = vpop.f32.mrf.mxu0 }
 0x312   : > { %v2203_v47 = vsel %vm1727_vm4, %v2201_v49, %v2202_v41  ;;  %v2625_v54 = vrot.slane %v4370_v52, 1  ;;  %v2729_v26 = vrot.slane %v4370_v52, 2  ;;  %v2307_v23 = vsel %vm1832_vm5, %v2305_v11, %v2306_v13 }
 0x314   : > { %v2626_v62 = vsel %vm1727_vm4, %v2624_v42, %v2625_v54 }
 0x315   : > { %2658 = vrot.lane.b32.xlu0 %v2621_v5, %s3664_s12  ;;  %2215 = vrot.lane.b32.xlu1 %v2178_v6, %s3664_s12  ;;  %v2091_v53 = vpop.f32.mrf.mxu1  ;;  %v2730_v5 = vsel %vm1832_vm5, %v2728_v58, %v2729_v26  ;;  %v2183_v6 = vsel %vm1727_vm4, %v2181_v1, %v2182_v3 }
 0x316   : > { %2217 = vrot.lane.b32.xlu2 %v2180_v17, %s3664_s12  ;;  %v2184_v14 = vrot.slane %v2091_v53, 1  ;;  %v2288_v55 = vrot.slane %v2091_v53, 2 }
 0x318   : > { %v2185_v27 = vsel %vm1727_vm4, %v2182_v3, %v2184_v14 }
 0x319   : > { %v4419_v45 = vpop.f32.mrf.mxu0  ;;  %v2534_v42 = vpop.f32.mrf.mxu2 }
 0x31a   : > { %v2731_v11 = vrot.slane %v2534_v42, 2 }
 0x31d   : > { %2321 = vrot.lane.b32.xlu0 %v2284_v19, %s3663_s20  ;;  %2762 = vrot.lane.b32.xlu1 %v2725_v20, %s3663_s20  ;;  %v1741_v19 = vrot.slane %v1663_v10, 1  ;;  %v2121_v20 = vpop.f32.mrf.mxu3  ;;  %v4407_v21 = vpop.f32.mrf.mxu1 }
 0x31e   : > { %1776 = vrot.lane.b32.xlu2 %v1740_v18, %s3664_s12 }
 0x325   : > { %1798 = vrot.lane.b32.xlu0 %v1767_v30, %s3664_s12  ;;  %1774 = vrot.lane.b32.xlu1 %v1737_v31, %s3664_s12  ;;  %v1846_v30 = vrot.slane %v1663_v10, 2  ;;  %v2308_v31 = vrot.slane %v2121_v20, 2  ;;  %v4430_v56 = vpop.f32.mrf.mxu1  ;;  %v1743_v10 = vrot.slane %v4419_v45, 1 }
 0x326   : > { %1881 = vrot.lane.b32.xlu2 %v1845_v29, %s3663_s20  ;;  %v1742_v29 = vsel %vm1727_vm4, %v1739_v9, %v1741_v19  ;;  %v2289_v9 = vsel %vm1832_vm5, %v2286_v4, %v2288_v55  ;;  %v2187_v2 = vrot.slane %v4430_v56, 1  ;;  %v1848_v55 = vrot.slane %v4419_v45, 2 }
 0x32d   : > { %2660 = vrot.lane.b32.xlu0 %v2623_v48, %s3664_s12  ;;  %1879 = vrot.lane.b32.xlu1 %v1842_v51, %s3663_s20  ;;  %v2309_v48 = vsel %vm1832_vm5, %v2306_v13, %v2308_v31  ;;  %v1847_v51 = vsel %vm1832_vm5, %v1844_v22, %v1846_v30  ;;  %v2186_v22 = vrot.slane %v4407_v21, 1 }
 0x32e   : > { %2235 = vrot.lane.b32.xlu2 %v2203_v47, %s3664_s12  ;;  %v4421_v47 = vpop.f32.mrf.mxu3 }
 0x32f   : > { %v2310_v19 = vrot.slane %v4421_v47, 2 }
 0x335   : > { %2764 = vrot.lane.b32.xlu0 %v2727_v39, %s3663_s20  ;;  %1903 = vrot.lane.b32.xlu1 %v1872_v0, %s3663_s20  ;;  %v2204_v39 = vrot.slane %v2121_v20, 1  ;;  %v2627_v0 = vrot.slane %v2534_v42, 1 }
 0x336   : > { %2662 = vrot.lane.b32.xlu2 %v2626_v62, %s3664_s12 }
 0x337   : > { %v2628_v53 = vsel %vm1727_vm4, %v2625_v54, %v2627_v0  ;;  %v2205_v4 = vsel %vm1727_vm4, %v2202_v41, %v2204_v39 }
 0x338   : > { %v4393_v17 = vpop.permute.xlu2 %2211 }
 0x33d   : > { %2219 = vrot.lane.b32.xlu0 %v2183_v6, %s3664_s12  ;;  %2323 = vrot.lane.b32.xlu1 %v2287_v8, %s3663_s20  ;;  %v4449_v6 = vpop.f32.mrf.mxu3 }
 0x33e   : > { %2766 = vrot.lane.b32.xlu2 %v2730_v5, %s3663_s20  ;;  %v4442_v5 = vpop.f32.mrf.mxu0  ;;  %v2311_v20 = vrot.slane %v4449_v6, 2 }
 0x33f   : > { %v1744_v41 = vrot.slane %v4442_v5, 1  ;;  %v1849_v42 = vrot.slane %v4442_v5, 2 }
 0x340   : > { %v4405_v18 = vpop.permute.xlu2 %1875 }
 0x341   : > { %v1745_v30 = vsel %vm1727_vm4, %v1743_v10, %v1744_v41 }
 0x345   : > { %2339 = vrot.lane.b32.xlu0 %v2307_v23, %s3663_s20  ;;  %2221 = vrot.lane.b32.xlu1 %v2185_v27, %s3664_s12  ;;  %v4459_v23 = vpop.f32.mrf.mxu2 }
 0x346   : > { %1778 = vrot.lane.b32.xlu2 %v1742_v29, %s3664_s12  ;;  %v2732_v29 = vsel %vm1832_vm5, %v2729_v26, %v2731_v11  ;;  %v1670_v31 = vpop.f32.mrf.mxu0 }
 0x347   : > { %v1851_v39 = vrot.slane %v1670_v31, 2 }
 0x348   : > { %v4417_v49 = vpop.permute.xlu2 %1899 }
 0x34d   : > { %2341 = vrot.lane.b32.xlu1 %v2309_v48, %s3663_s20  ;;  %1883 = vrot.lane.b32.xlu0 %v1847_v51, %s3663_s20  ;;  %v2291_v51 = vrot.slane %v4430_v56, 2 }
 0x34e   : > { %2325 = vrot.lane.b32.xlu2 %v2289_v9, %s3663_s20 }
 0x34f   : > { %v1874_v59 = vpop.permute.xlu1 %1873  ;;  %v1769_v62 = vpop.permute.xlu0 %1768 }
 0x350   : > { %v1816_v58 = vadd.f32 %v1769_v62, %v4195_v32  ;;  %v4434_v1 = vpop.permute.xlu2 %2656  ;;  %v2188_v32 = vsel %vm1727_vm4, %v2186_v22, %v2187_v2 }
 0x352   : > { %v1921_v3 = vadd.f32 %v1874_v59, %v1816_v58  ;;  %v4483_v58 = vpop.f32.mrf.mxu2 }
 0x354   : > { %v2131_v13 = vadd.f32 %v4197_v33, %v1921_v3  ;;  %v2312_v33 = vsel %vm1832_vm5, %v2310_v19, %v2311_v20  ;;  %v1850_v3 = vsel %vm1832_vm5, %v1848_v55, %v1849_v42  ;;  %v2629_v19 = vrot.slane %v4459_v23, 1 }
 0x355   : > { %2664 = vrot.lane.b32.xlu1 %v2628_v53, %s3664_s12  ;;  %2237 = vrot.lane.b32.xlu0 %v2205_v4, %s3664_s12  ;;  %v4490_v4 = vpop.f32.mrf.mxu3 }
 0x356   : > { %2223 = vrot.lane.b32.xlu2 %v2188_v32, %s3664_s12  ;;  %v2259_v27 = vadd.f32 %v4393_v17, %v2131_v13  ;;  %v2290_v17 = vrot.slane %v4407_v21, 2  ;;  %v2209_v13 = vrot.slane %v4490_v4, 1 }
 0x357   : > { %v1898_v8 = vpop.permute.xlu1 %1897  ;;  %v2316_v54 = vpop.permute.xlu0 %2315 }
 0x358   : > { %v4455_v14 = vpop.permute.xlu2 %2760  ;;  %v2363_v9 = vadd.f32 %v2316_v54, %v2259_v27  ;;  %v2292_v53 = vsel %vm1832_vm5, %v2290_v17, %v2291_v51  ;;  %v2207_v54 = vrot.slane %v4449_v6, 1  ;;  %v2630_v27 = vrot.slane %v4483_v58, 1  ;;  %v2098_v17 = vpop.f32.mrf.mxu1 }
 0x35a   : > { %v2574_v22 = vadd.f32 %v4207_v40, %v2363_v9  ;;  %v4499_v40 = vld [vmem:[%s4948_s7] ss:$0 sm:$0xff]  ;;  %v2541_v9 = vpop.f32.mrf.mxu2 }
 0x35d   : > { %2768 = vrot.lane.b32.xlu1 %v2732_v29, %s3663_s20  ;;  %1780 = vrot.lane.b32.xlu0 %v1745_v30, %s3664_s12 }
 0x35e   : > { %2343 = vrot.lane.b32.xlu2 %v2312_v33, %s3663_s20 }
 0x35f   : > { %v2655_v26 = vpop.permute.xlu1 %2654  ;;  %v1793_v48 = vpop.permute.xlu0 %1792 }
 0x360   : > { %v1828_v59 = vadd.f32 %v1793_v48, %v4200_v35  ;;  %v4479_v62 = vpop.permute.xlu2 %2319  ;;  %v1852_v35 = vsel %vm1832_vm5, %v1849_v42, %v1851_v39  ;;  %v2702_v32 = vadd.f32 %v2655_v26, %v2574_v22  ;;  %v2210_v48 = vsel %vm1727_vm4, %v2207_v54, %v2209_v13  ;;  %v4518_v22 = vpop.f32.mrf.mxu0 }
 0x361   : > { %v2631_v39 = vsel %vm1727_vm4, %v2629_v19, %v2630_v27  ;;  %v4524_v13 = vpop.f32.mrf.mxu1 }
 0x362   : > { %v4481_v0 = vadd.f32 %v1898_v8, %v1828_v59  ;;  %v2206_v8 = vrot.slane %v4421_v47, 1 }
 0x364   : > { %v2208_v59 = vsel %vm1727_vm4, %v2206_v8, %v2207_v54 }
 0x365   : > { %1885 = vrot.lane.b32.xlu1 %v1850_v3, %s3663_s20  ;;  %2327 = vrot.lane.b32.xlu0 %v2292_v53, %s3663_s20  ;;  %v2733_v53 = vrot.slane %v4459_v23, 2 }
 0x366   : > { %1887 = vrot.lane.b32.xlu2 %v1852_v35, %s3663_s20  ;;  %v2734_v35 = vrot.slane %v4483_v58, 2 }
 0x367   : > { %v2759_v10 = vpop.permute.xlu1 %2758  ;;  %v1771_v11 = vpop.permute.xlu0 %1770 }
 0x368   : > { %v2806_v29 = vadd.f32 %v2759_v10, %v2702_v32  ;;  %v1797_v30 = vpop.permute.xlu2 %1796  ;;  %v1817_v33 = vadd.f32 %v1771_v11, %v4203_v38  ;;  %v1746_v32 = vrot.slane %v1670_v31, 1  ;;  %v2632_v10 = vrot.slane %v2541_v9, 1 }
 0x36a   : > { %v2826_v55 = vadd.f32 %v4499_v40, %v2806_v29  ;;  %v1922_v26 = vadd.f32 %v4405_v18, %v1817_v33  ;;  %v1747_v29 = vsel %vm1727_vm4, %v1744_v41, %v1746_v32  ;;  %v2633_v33 = vsel %vm1727_vm4, %v2630_v27, %v2632_v10 }
 0x36b   : > { %v2736_v27 = vrot.slane %v2541_v9, 2 }
 0x36c   : > { %v2842_v42 = vpack.c.bf16 %v2826_v55, %v2826_v55  ;;  %v2132_v38 = vadd.f32 %v4211_v43, %v1922_v26  ;;  %v2735_v43 = vsel %vm1832_vm5, %v2733_v53, %v2734_v35  ;;  %v4535_v26 = vpop.f32.mrf.mxu2 }
 0x36d   : > { %2239 = vrot.lane.b32.xlu1 %v2208_v59, %s3664_s12  ;;  %2666 = vrot.lane.b32.xlu0 %v2631_v39, %s3664_s12  ;;  %v2737_v10 = vsel %vm1832_vm5, %v2734_v35, %v2736_v27  ;;  %v1748_v35 = vrot.slane %v4518_v22, 1 }
 0x36e   : > { %2859 = vst.msk [vmem:[%s3823_s23] sm:$0xf] %vm762_vm2, %v2842_v42  ;;  %2241 = vrot.lane.b32.xlu2 %v2210_v48, %s3664_s12  ;;  %v2189_v48 = vrot.slane %v2098_v17, 1 }
 0x36f   : > { %v2318_v18 = vpop.permute.xlu1 %2317  ;;  %v2214_v3 = vpop.permute.xlu0 %2213 }
 0x370   : > { %v4522_v8 = vpop.permute.xlu2 %2217  ;;  %v2260_v54 = vadd.f32 %v2214_v3, %v2132_v38  ;;  %v2914_v3 = vmul.f32 %v2826_v55, %v2826_v55 }
 0x372   : > { %v2364_v11 = vadd.f32 %v2318_v18, %v2260_v54  ;;  %v4542_v18 = vpop.f32.mrf.mxu0 }
 0x374   : > { %v2575_v19 = vadd.f32 %v4231_v60, %v2364_v11  ;;  %v2293_v60 = vrot.slane %v2098_v17, 2  ;;  %v2190_v17 = vsel %vm1727_vm4, %v2187_v2, %v2189_v48  ;;  %v2930_v2 = vsel %vm1593_vm3, %v2914_v3, 0.0  ;;  %v4576_v48 = vpop.f32.mrf.mxu2  ;;  %v4586_v3 = vpop.f32.mrf.mxu3 }
 0x375   : > { %2770 = vrot.lane.b32.xlu0 %v2735_v43, %s3663_s20  ;;  %1782 = vrot.lane.b32.xlu1 %v1747_v29, %s3664_s12  ;;  %v1830_v11 = vadd.f32 %v1797_v30, %v4267_v25  ;;  %v1749_v43 = vrot.slane %v4542_v18, 1  ;;  %v2191_v25 = vrot.slane %v4524_v13, 1 }
 0x376   : > { %v2703_v31 = vadd.f32 %v4434_v1, %v2575_v19  ;;  %2668 = vrot.lane.b32.xlu2 %v2633_v33, %s3664_s12  ;;  %v2313_v19 = vrot.slane %v4490_v4, 2 }
 0x377   : > { %v1795_v42 = vpop.permute.xlu1 %1794  ;;  %v1878_v59 = vpop.permute.xlu0 %1877  ;;  %v1750_v27 = vsel %vm1727_vm4, %v1748_v35, %v1749_v43 }
 0x378   : > { %v2807_v39 = vadd.f32 %v4455_v14, %v2703_v31  ;;  %v1829_v41 = vadd.f32 %v1795_v42, %v4223_v50  ;;  %v4540_v38 = vpop.permute.xlu2 %1776  ;;  %v2294_v50 = vsel %vm1832_vm5, %v2291_v51, %v2293_v60  ;;  %v2875_v14 = vsel %vm1593_vm3, %v2826_v55, 0.0  ;;  %v4565_v51 = vpop.f32.mrf.mxu1 }
 0x379   : > { %v2192_v30 = vrot.slane %v4565_v51, 1 }
 0x37a   : > { %v2827_v1 = vadd.f32 %v4499_v40, %v2807_v39  ;;  %v4546_v53 = vadd.f32 %v4417_v49, %v1829_v41  ;;  %v4583_v41 = vpop.f32.mrf.mxu0 }
 0x37c   : > { %v2843_v32 = vpack.c.bf16 %v2827_v1, %v2827_v1  ;;  %v2876_v9 = vsel %vm1593_vm3, %v2827_v1, 0.0  ;;  %v2915_v54 = vmul.f32 %v2827_v1, %v2827_v1  ;;  %v2314_v1 = vsel %vm1832_vm5, %v2311_v20, %v2313_v19  ;;  %v4606_v19 = vpop.f32.mrf.mxu2 }
 0x37d   : > { %2225 = vrot.lane.b32.xlu0 %v2190_v17, %s3664_s12  ;;  %2329 = vrot.lane.b32.xlu1 %v2294_v50, %s3663_s20  ;;  %v4559_v49 = vadd.f32 %v2876_v9, %v2875_v14  ;;  %v2193_v17 = vsel %vm1727_vm4, %v2191_v25, %v2192_v30  ;;  %v2634_v9 = vrot.slane %v4535_v26, 1  ;;  %v1854_v20 = vrot.slane %v4542_v18, 2 }
 0x37e   : > { %2860 = vst.msk [vmem:[%s3823_s23 + $0x4] sm:$0xf] %vm762_vm2, %v2843_v32  ;;  %2772 = vrot.lane.b32.xlu2 %v2737_v10, %s3663_s20  ;;  %v2931_v55 = vsel %vm1593_vm3, %v2915_v54, 0.0  ;;  %v2143_v32 = vadd.f32 %v4333_v16, %v4481_v0  ;;  %v2635_v54 = vrot.slane %v4576_v48, 1 }
 0x37f   : > { %v1902_v29 = vpop.permute.xlu0 %1901  ;;  %v1773_v33 = vpop.permute.xlu1 %1772  ;;  %v4572_v31 = vadd.f32 %v2931_v55, %v2930_v2  ;;  %v2296_v55 = vrot.slane %v4565_v51, 2 }
 0x380   : > { %v4578_v60 = vadd.f32 %v1902_v29, %v1830_v11  ;;  %v1818_v42 = vadd.f32 %v1773_v33, %v4253_v12  ;;  %v4581_v39 = vpop.permute.xlu2 %1881  ;;  %v2295_v11 = vrot.slane %v4524_v13, 2  ;;  %v2636_v16 = vsel %vm1727_vm4, %v2634_v9, %v2635_v54 }
 0x382   : > { %v1923_v4 = vadd.f32 %v1878_v59, %v1818_v42  ;;  %v1853_v59 = vrot.slane %v4518_v22, 2  ;;  %v4609_v29 = vpop.f32.mrf.mxu0  ;;  %v2297_v25 = vsel %vm1832_vm5, %v2295_v11, %v2296_v55  ;;  %v2106_v42 = vpop.f32.mrf.mxu1 }
 0x384   : > { %v2133_v12 = vadd.f32 %v4255_v15, %v1923_v4  ;;  %v1855_v0 = vsel %vm1832_vm5, %v1853_v59, %v1854_v20  ;;  %v4619_v4 = vpop.f32.mrf.mxu3 }
 0x385   : > { %2345 = vrot.lane.b32.xlu0 %v2314_v1, %s3663_s20  ;;  %2227 = vrot.lane.b32.xlu1 %v2193_v17, %s3664_s12  ;;  %v2739_v1 = vrot.slane %v4576_v48, 2 }
 0x386   : > { %1784 = vrot.lane.b32.xlu2 %v1750_v27, %s3664_s12  ;;  %v2738_v27 = vrot.slane %v4535_v26, 2 }
 0x387   : > { %v2659_v50 = vpop.permute.xlu0 %2658  ;;  %v2216_v14 = vpop.permute.xlu1 %2215 }
 0x388   : > { %v2261_v10 = vadd.f32 %v2216_v14, %v2133_v12  ;;  %v2236_v2 = vpop.permute.xlu2 %2235 }
 0x389   : > { %v4604_v15 = vadd.f32 %v2236_v2, %v2143_v32  ;;  %v2194_v32 = vrot.slane %v2106_v42, 1 }
 0x38a   : > { %v2365_v35 = vadd.f32 %v4479_v62, %v2261_v10  ;;  %v4628_v10 = vpop.f32.mrf.mxu2 }
 0x38c   : > { %v2576_v33 = vadd.f32 %v4287_v44, %v2365_v35  ;;  %v1751_v44 = vrot.slane %v4583_v41, 1 }
 0x38d   : > { %2670 = vrot.lane.b32.xlu1 %v2636_v16, %s3664_s12  ;;  %1889 = vrot.lane.b32.xlu0 %v1855_v0, %s3663_s20 }
 0x38e   : > { %2331 = vrot.lane.b32.xlu2 %v2297_v25, %s3663_s20  ;;  %v2704_v62 = vadd.f32 %v2659_v50, %v2576_v33  ;;  %v2740_v50 = vsel %vm1832_vm5, %v2738_v27, %v2739_v1  ;;  %v1752_v16 = vsel %vm1727_vm4, %v1749_v43, %v1751_v44  ;;  %v2195_v33 = vsel %vm1727_vm4, %v2192_v30, %v2194_v32 }
 0x38f   : > { %v2322_v17 = vpop.permute.xlu0 %2321  ;;  %v2763_v12 = vpop.permute.xlu1 %2762  ;;  %v1856_v44 = vrot.slane %v4583_v41, 2  ;;  %v1858_v32 = vrot.slane %v4609_v29, 2 }
 0x390   : > { %v2808_v59 = vadd.f32 %v2763_v12, %v2704_v62  ;;  %v4625_v14 = vpop.permute.xlu2 %2662  ;;  %v4644_v62 = vpop.f32.mrf.mxu0  ;;  %v2298_v12 = vrot.slane %v2106_v42, 2 }
 0x392   : > { %v2828_v9 = vadd.f32 %v4499_v40, %v2808_v59  ;;  %v4651_v59 = vpop.f32.mrf.mxu3 }
 0x394   : > { %v2844_v2 = vpack.c.bf16 %v2828_v9, %v2828_v9  ;;  %v2878_v11 = vsel %vm1593_vm3, %v2828_v9, 0.0  ;;  %v2916_v35 = vmul.f32 %v2828_v9, %v2828_v9  ;;  %v1859_v9 = vrot.slane %v4644_v62, 2 }
 0x395   : > { %v4636_v0 = vadd.f32 %v2878_v11, %v4559_v49  ;;  %2774 = vrot.lane.b32.xlu1 %v2740_v50, %s3663_s20  ;;  %1786 = vrot.lane.b32.xlu0 %v1752_v16, %s3664_s12  ;;  %v4657_v50 = vpop.f32.mrf.mxu1  ;;  %v4661_v11 = vpop.f32.mrf.mxu2 }
 0x396   : > { %2861 = vst.msk [vmem:[%s3823_s23 + $0x8] sm:$0xf] %vm762_vm2, %v2844_v2  ;;  %v2933_v25 = vsel %vm1593_vm3, %v2916_v35, 0.0  ;;  %2229 = vrot.lane.b32.xlu2 %v2195_v33, %s3664_s12  ;;  %v1857_v2 = vsel %vm1832_vm5, %v1854_v20, %v1856_v44  ;;  %v1860_v41 = vsel %vm1832_vm5, %v1858_v32, %v1859_v9  ;;  %v2639_v35 = vrot.slane %v4628_v10, 1 }
 0x397   : > { %v4648_v27 = vadd.f32 %v2933_v25, %v4572_v31  ;;  %v1799_v43 = vpop.permute.xlu0 %1798  ;;  %v1775_v49 = vpop.permute.xlu1 %1774  ;;  %v2299_v31 = vsel %vm1832_vm5, %v2296_v55, %v2298_v12  ;;  %v4952_v55 = vrot.slane %v4661_v11, 1  ;;  %v2637_v33 = vrot.slane %v4606_v19, 1 }
 0x398   : > { %v4653_v30 = vpop.permute.xlu2 %2766  ;;  %v1819_v42 = vadd.f32 %v1775_v49, %v4265_v24  ;;  %v1753_v25 = vrot.slane %v4609_v29, 1  ;;  %v1754_v12 = vrot.slane %v4644_v62, 1 }
 0x399   : > { %v2641_v49 = vsel %vm1727_vm4, %v2639_v35, %v4952_v55 }
 0x39a   : > { %v4677_v32 = vpop.f32.mrf.mxu3 }
 0x39d   : > { %1891 = vrot.lane.b32.xlu1 %v1857_v2, %s3663_s20  ;;  %2333 = vrot.lane.b32.xlu0 %v2299_v31, %s3663_s20 }
 0x39e   : > { %1893 = vrot.lane.b32.xlu2 %v1860_v41, %s3663_s20  ;;  %v2638_v41 = vsel %vm1727_vm4, %v2635_v54, %v2637_v33 }
 0x39f   : > { %v2661_v16 = vpop.permute.xlu0 %2660  ;;  %v1880_v20 = vpop.permute.xlu1 %1879 }
 0x3a0   : > { %v1924_v44 = vadd.f32 %v1880_v20, %v1819_v42  ;;  %v4675_v2 = vpop.permute.xlu2 %1778  ;;  %v1755_v42 = vsel %vm1727_vm4, %v1753_v25, %v1754_v12  ;;  %v4690_v20 = vpop.f32.mrf.mxu1  ;;  %v1820_v25 = vadd.f32 %v4540_v38, %v4305_v57 }
 0x3a2   : > { %v2134_v24 = vadd.f32 %v4276_v34, %v1924_v44  ;;  %v1831_v34 = vadd.f32 %v1799_v43, %v4293_v46  ;;  %v2300_v44 = vrot.slane %v4657_v50, 2  ;;  %v2743_v46 = vrot.slane %v4628_v10, 2 }
 0x3a4   : > { %v2262_v31 = vadd.f32 %v4522_v8, %v2134_v24  ;;  %v2741_v8 = vrot.slane %v4606_v19, 2  ;;  %v4954_v24 = vrot.slane %v4690_v20, 2  ;;  %v1925_v19 = vadd.f32 %v4581_v39, %v1820_v25  ;;  %v1685_v39 = vpop.f32.mrf.mxu0 }
 0x3a5   : > { %2672 = vrot.lane.b32.xlu0 %v2638_v41, %s3664_s12  ;;  %1788 = vrot.lane.b32.xlu1 %v1755_v42, %s3664_s12 }
 0x3a6   : > { %2674 = vrot.lane.b32.xlu2 %v2641_v49, %s3664_s12  ;;  %v2366_v35 = vadd.f32 %v2322_v17, %v2262_v31  ;;  %v4953_v17 = vrot.slane %v4661_v11, 2  ;;  %v4709_v49 = vpop.f32.mrf.mxu3  ;;  %v2742_v57 = vsel %vm1832_vm5, %v2739_v1, %v2741_v8  ;;  %v2135_v1 = vadd.f32 %v4357_v37, %v1925_v19 }
 0x3a7   : > { %v2765_v54 = vpop.permute.xlu0 %2764  ;;  %v1904_v33 = vpop.permute.xlu1 %1903  ;;  %v2649_v8 = vrot.slane %v4677_v32, 1 }
 0x3a8   : > { %v2577_v41 = vadd.f32 %v4311_v63, %v2366_v35  ;;  %v4702_v55 = vadd.f32 %v1904_v33, %v1831_v34  ;;  %v4704_v42 = vpop.permute.xlu2 %2325  ;;  %v2302_v63 = vsel %vm1832_vm5, %v2300_v44, %v4954_v24  ;;  %v2745_v38 = vsel %vm1832_vm5, %v2743_v46, %v4953_v17 }
 0x3a9   : > { %v2196_v34 = vrot.slane %v4657_v50, 1  ;;  %v2197_v35 = vrot.slane %v4690_v20, 1  ;;  %v2650_v44 = vrot.slane %v4709_v49, 1 }
 0x3aa   : > { %v2705_v43 = vadd.f32 %v2661_v16, %v2577_v41 }
 0x3ab   : > { %v2198_v24 = vsel %vm1727_vm4, %v2196_v34, %v2197_v35 }
 0x3ac   : > { %v2809_v31 = vadd.f32 %v2765_v54, %v2705_v43 }
 0x3ad   : > { %2776 = vrot.lane.b32.xlu0 %v2742_v57, %s3663_s20  ;;  %2335 = vrot.lane.b32.xlu1 %v2302_v63, %s3663_s20  ;;  %v1756_v57 = vrot.slane %v1685_v39, 1 }
 0x3ae   : > { %v2829_v16 = vadd.f32 %v4499_v40, %v2809_v31  ;;  %2778 = vrot.lane.b32.xlu2 %v2745_v38, %s3663_s20 }
 0x3af   : > { %v2220_v54 = vpop.permute.xlu0 %2219  ;;  %v2324_v33 = vpop.permute.xlu1 %2323 }
 0x3b0   : > { %v2845_v25 = vpack.c.bf16 %v2829_v16, %v2829_v16  ;;  %v2880_v41 = vsel %vm1593_vm3, %v2829_v16, 0.0  ;;  %v2917_v46 = vmul.f32 %v2829_v16, %v2829_v16  ;;  %v2263_v43 = vadd.f32 %v2220_v54, %v2135_v1  ;;  %v4730_v31 = vpop.permute.xlu2 %2223  ;;  %v2113_v1 = vpop.f32.mrf.mxu1 }
 0x3b1   : > { %v2881_v37 = vadd.f32 %v2880_v41, %v4636_v0  ;;  %v2651_v16 = vsel %vm1727_vm4, %v2649_v8, %v2650_v44  ;;  %v1757_v0 = vsel %vm1727_vm4, %v1754_v12, %v1756_v57  ;;  %v2645_v41 = vrot.slane %v4619_v4, 1 }
 0x3b2   : > { %2862 = vst.msk [vmem:[%s3823_s23 + $0xc] sm:$0xf] %vm762_vm2, %v2845_v25  ;;  %v2935_v19 = vsel %vm1593_vm3, %v2917_v46, 0.0  ;;  %v2367_v63 = vadd.f32 %v2324_v33, %v2263_v43  ;;  %v2199_v33 = vrot.slane %v2113_v1, 1  ;;  %v2647_v12 = vrot.slane %v4651_v59, 1  ;;  %v2556_v43 = vpop.f32.mrf.mxu2 }
 0x3b3   : > { %v2936_v38 = vadd.f32 %v2935_v19, %v4648_v27 }
 0x3b4   : > { %v2578_v17 = vadd.f32 %v4346_v28, %v2367_v63  ;;  %v1861_v28 = vrot.slane %v1685_v39, 2  ;;  %v2648_v57 = vsel %vm1727_vm4, %v2645_v41, %v2647_v12  ;;  %v1821_v63 = vadd.f32 %v4675_v2, %v4324_v7 }
 0x3b5   : > { %2231 = vrot.lane.b32.xlu0 %v2198_v24, %s3664_s12  ;;  %2682 = vrot.lane.b32.xlu1 %v2651_v16, %s3664_s12  ;;  %v4974_v7 = vrot.slane %v4661_v11, 1 }
 0x3b6   : > { %v2706_v54 = vadd.f32 %v4625_v14, %v2578_v17  ;;  %1790 = vrot.lane.b32.xlu2 %v1757_v0, %s3664_s12  ;;  %v1862_v17 = vsel %vm1832_vm5, %v1859_v9, %v1861_v28  ;;  %v2642_v28 = vrot.slane %v2556_v43, 1 }
 0x3b7   : > { %v2340_v27 = vpop.permute.xlu0 %2339  ;;  %v2222_v34 = vpop.permute.xlu1 %2221 }
 0x3b8   : > { %v2810_v25 = vadd.f32 %v4653_v30, %v2706_v54  ;;  %v4751_v8 = vadd.f32 %v2340_v27, %v4604_v15  ;;  %v4753_v24 = vpop.permute.xlu2 %2343  ;;  %v2200_v30 = vsel %vm1727_vm4, %v2197_v35, %v2199_v33  ;;  %v2644_v54 = vrot.slane %v4586_v3, 1 }
 0x3b9   : > { %v2643_v2 = vsel %vm1727_vm4, %v4974_v7, %v2642_v28 }
 0x3ba   : > { %v2830_v14 = vadd.f32 %v4499_v40, %v2810_v25  ;;  %v2303_v25 = vrot.slane %v2113_v1, 2 }
 0x3bc   : > { %v2846_v39 = vpack.c.bf16 %v2830_v14, %v2830_v14  ;;  %v2918_v46 = vmul.f32 %v2830_v14, %v2830_v14  ;;  %v2882_v15 = vsel %vm1593_vm3, %v2830_v14, 0.0  ;;  %v2646_v14 = vsel %vm1727_vm4, %v2644_v54, %v2645_v41 }
 0x3bd   : > { %2233 = vrot.lane.b32.xlu1 %v2200_v30, %s3664_s12  ;;  %1895 = vrot.lane.b32.xlu0 %v1862_v17, %s3663_s20  ;;  %v2883_v19 = vadd.f32 %v2882_v15, %v2881_v37  ;;  %v2146_v41 = vadd.f32 %v4449_v6, %v4702_v55  ;;  %v2749_v30 = vrot.slane %v4619_v4, 2  ;;  %v2746_v15 = vrot.slane %v2556_v43, 2  ;;  %v2571_v55 = vpop.f32.mrf.mxu3 }
 0x3be   : > { %2863 = vst.msk [vmem:[%s3823_s23 + $0x10] sm:$0xf] %vm762_vm2, %v2846_v39  ;;  %2680 = vrot.lane.b32.xlu2 %v2648_v57, %s3664_s12  ;;  %v2937_v9 = vsel %vm1593_vm3, %v2918_v46, 0.0  ;;  %v2748_v46 = vrot.slane %v4586_v3, 2  ;;  %v2756_v7 = vrot.slane %v2571_v55, 2 }
 0x3bf   : > { %v2342_v35 = vpop.permute.xlu1 %2341  ;;  %v1884_v16 = vpop.permute.xlu0 %1883  ;;  %v2938_v0 = vadd.f32 %v2937_v9, %v2936_v38  ;;  %v4975_v38 = vrot.slane %v4690_v20, 2  ;;  %v2751_v9 = vrot.slane %v4651_v59, 2 }
 0x3c0   : > { %v1926_v27 = vadd.f32 %v1884_v16, %v1821_v63  ;;  %v4773_v33 = vpop.permute.xlu2 %1887  ;;  %v2750_v6 = vsel %vm1832_vm5, %v2748_v46, %v2749_v30 }
 0x3c1   : > { %v2304_v17 = vsel %vm1832_vm5, %v4975_v38, %v2303_v25  ;;  %v2752_v43 = vsel %vm1832_vm5, %v2749_v30, %v2751_v9  ;;  %v2652_v25 = vrot.slane %v2571_v55, 1 }
 0x3c2   : > { %v2136_v37 = vadd.f32 %v4377_v61, %v1926_v27  ;;  %v2144_v61 = vadd.f32 %v4353_v36, %v4546_v53  ;;  %v4976_v36 = vrot.slane %v4661_v11, 2 }
 0x3c4   : > { %v2264_v12 = vadd.f32 %v2222_v34, %v2136_v37  ;;  %v2747_v53 = vsel %vm1832_vm5, %v4976_v36, %v2746_v15  ;;  %v2145_v36 = vadd.f32 %v4421_v47, %v4578_v60 }
 0x3c5   : > { %2676 = vrot.lane.b32.xlu1 %v2643_v2, %s3664_s12  ;;  %2678 = vrot.lane.b32.xlu0 %v2646_v14, %s3664_s12 }
 0x3c6   : > { %2337 = vrot.lane.b32.xlu2 %v2304_v17, %s3663_s20  ;;  %v2368_v1 = vadd.f32 %v4704_v42, %v2264_v12 }
 0x3c7   : > { %v2665_v34 = vpop.permute.xlu1 %2664  ;;  %v2238_v39 = vpop.permute.xlu0 %2237 }
 0x3c8   : > { %v2272_v57 = vadd.f32 %v2238_v39, %v2144_v61  ;;  %v2242_v63 = vpop.permute.xlu2 %2241  ;;  %v2579_v42 = vadd.f32 %v4370_v52, %v2368_v1  ;;  %v2753_v52 = vrot.slane %v4677_v32, 2  ;;  %v2653_v61 = vsel %vm1727_vm4, %v2650_v44, %v2652_v25 }
 0x3c9   : > { %v4794_v16 = vadd.f32 %v2242_v63, %v2146_v41 }
 0x3ca   : > { %v4797_v54 = vadd.f32 %v2342_v35, %v2272_v57  ;;  %v2707_v59 = vadd.f32 %v2665_v34, %v2579_v42  ;;  %v2754_v35 = vrot.slane %v4709_v49, 2 }
 0x3cc   : > { %v2755_v14 = vsel %vm1832_vm5, %v2753_v52, %v2754_v35  ;;  %v2757_v39 = vsel %vm1832_vm5, %v2754_v35, %v2756_v7 }
 0x3cd   : > { %2780 = vrot.lane.b32.xlu1 %v2747_v53, %s3663_s20  ;;  %2782 = vrot.lane.b32.xlu0 %v2750_v6, %s3663_s20 }
 0x3ce   : > { %2784 = vrot.lane.b32.xlu2 %v2752_v43, %s3663_s20 }
 0x3cf   : > { %v2769_v28 = vpop.permute.xlu1 %2768  ;;  %v1781_v27 = vpop.permute.xlu0 %1780 }
 0x3d0   : > { %v2811_v37 = vadd.f32 %v2769_v28, %v2707_v59  ;;  %v2669_v12 = vpop.permute.xlu2 %2668  ;;  %v1822_v46 = vadd.f32 %v1781_v27, %v4419_v45 }
 0x3d2   : > { %v2831_v2 = vadd.f32 %v4499_v40, %v2811_v37 }
 0x3d4   : > { %v2847_v38 = vpack.c.bf16 %v2831_v2, %v2831_v2  ;;  %v2884_v17 = vsel %vm1593_vm3, %v2831_v2, 0.0  ;;  %v2919_v1 = vmul.f32 %v2831_v2, %v2831_v2 }
 0x3d5   : > { %v2885_v34 = vadd.f32 %v2884_v17, %v2883_v19  ;;  %2786 = vrot.lane.b32.xlu1 %v2755_v14, %s3663_s20  ;;  %2684 = vrot.lane.b32.xlu0 %v2653_v61, %s3664_s12 }
 0x3d6   : > { %2864 = vst.msk [vmem:[%s3823_s23 + $0x14] sm:$0xf] %vm762_vm2, %v2847_v38  ;;  %v2939_v41 = vsel %vm1593_vm3, %v2919_v1, 0.0  ;;  %2788 = vrot.lane.b32.xlu2 %v2757_v39, %s3663_s20 }
 0x3d7   : > { %v2940_v30 = vadd.f32 %v2939_v41, %v2938_v0  ;;  %v1886_v15 = vpop.permute.xlu1 %1885  ;;  %v2328_v57 = vpop.permute.xlu0 %2327 }
 0x3d8   : > { %v1927_v63 = vadd.f32 %v1886_v15, %v1822_v46  ;;  %v2773_v44 = vpop.permute.xlu2 %2772 }
 0x3da   : > { %v2137_v19 = vadd.f32 %v4407_v21, %v1927_v63 }
 0x3dc   : > { %v2265_v9 = vadd.f32 %v4730_v31, %v2137_v19 }
 0x3de   : > { %v2369_v42 = vadd.f32 %v2328_v57, %v2265_v9 }
 0x3df   : > { %v2240_v53 = vpop.permute.xlu1 %2239  ;;  %v2667_v6 = vpop.permute.xlu0 %2666 }
 0x3e0   : > { %v2273_v55 = vadd.f32 %v2240_v53, %v2145_v36  ;;  %v1785_v45 = vpop.permute.xlu2 %1784  ;;  %v2580_v0 = vadd.f32 %v4459_v23, %v2369_v42 }
 0x3e1   : > { %v1824_v9 = vadd.f32 %v1785_v45, %v4518_v22 }
 0x3e2   : > { %v4828_v43 = vadd.f32 %v4753_v24, %v2273_v55  ;;  %v2708_v59 = vadd.f32 %v2667_v6, %v2580_v0 }
 0x3e7   : > { %v2771_v52 = vpop.permute.xlu0 %2770  ;;  %v1783_v35 = vpop.permute.xlu1 %1782 }
 0x3e8   : > { %v2812_v21 = vadd.f32 %v2771_v52, %v2708_v59  ;;  %v1823_v31 = vadd.f32 %v1783_v35, %v4442_v5  ;;  %v2332_v28 = vpop.permute.xlu2 %2331 }
 0x3ea   : > { %v2832_v27 = vadd.f32 %v4499_v40, %v2812_v21  ;;  %v1928_v47 = vadd.f32 %v4773_v33, %v1823_v31 }
 0x3ec   : > { %v2848_v60 = vpack.c.bf16 %v2832_v27, %v2832_v27  ;;  %v2886_v25 = vsel %vm1593_vm3, %v2832_v27, 0.0  ;;  %v2920_v37 = vmul.f32 %v2832_v27, %v2832_v27  ;;  %v2138_v24 = vadd.f32 %v4430_v56, %v1928_v47 }
 0x3ed   : > { %v2887_v7 = vadd.f32 %v2886_v25, %v2885_v34 }
 0x3ee   : > { %2865 = vst.msk [vmem:[%s3823_s23 + $0x18] sm:$0xf] %vm762_vm2, %v2848_v60  ;;  %v2941_v23 = vsel %vm1593_vm3, %v2920_v37, 0.0 }
 0x3ef   : > { %v2942_v2 = vadd.f32 %v2941_v23, %v2940_v30  ;;  %v2226_v14 = vpop.permute.xlu0 %2225  ;;  %v2330_v38 = vpop.permute.xlu1 %2329 }
 0x3f0   : > { %v2266_v5 = vadd.f32 %v2226_v14, %v2138_v24  ;;  %v2230_v17 = vpop.permute.xlu2 %2229 }
 0x3f2   : > { %v2370_v1 = vadd.f32 %v2330_v38, %v2266_v5 }
 0x3f4   : > { %v2581_v33 = vadd.f32 %v4483_v58, %v2370_v1 }
 0x3f6   : > { %v2709_v61 = vadd.f32 %v2669_v12, %v2581_v33 }
 0x3f7   : > { %v2346_v39 = vpop.permute.xlu0 %2345  ;;  %v2228_v41 = vpop.permute.xlu1 %2227 }
 0x3f8   : > { %v2813_v46 = vadd.f32 %v2773_v44, %v2709_v61  ;;  %v4841_v34 = vadd.f32 %v2346_v39, %v4794_v16  ;;  %v1894_v15 = vpop.permute.xlu2 %1893 }
 0x3fa   : > { %v2833_v57 = vadd.f32 %v4499_v40, %v2813_v46 }
 0x3fc   : > { %v2849_v56 = vpack.c.bf16 %v2833_v57, %v2833_v57  ;;  %v2921_v30 = vmul.f32 %v2833_v57, %v2833_v57  ;;  %v2888_v63 = vsel %vm1593_vm3, %v2833_v57, 0.0 }
 0x3fd   : > { %v4845_v19 = vadd.f32 %v2888_v63, %v2887_v7 }
 0x3fe   : > { %2866 = vst.msk [vmem:[%s3823_s23 + $0x1c] sm:$0xf] %vm762_vm2, %v2849_v56  ;;  %v2943_v58 = vsel %vm1593_vm3, %v2921_v30, 0.0 }
 0x3ff   : > { %v2671_v12 = vpop.permute.xlu1 %2670  ;;  %v1890_v44 = vpop.permute.xlu0 %1889  ;;  %v4851_v42 = vadd.f32 %v2943_v58, %v2942_v2 }
 0x400   : > { %v1929_v16 = vadd.f32 %v1890_v44, %v1824_v9  ;;  %v2675_v36 = vpop.permute.xlu2 %2674 }
 0x402   : > { %v2139_v53 = vadd.f32 %v4524_v13, %v1929_v16 }
 0x404   : > { %v2267_v6 = vadd.f32 %v2228_v41, %v2139_v53 }
 0x406   : > { %v2371_v55 = vadd.f32 %v2332_v28, %v2267_v6 }
 0x407   : > { %v2775_v0 = vpop.permute.xlu1 %2774  ;;  %v1787_v59 = vpop.permute.xlu0 %1786 }
 0x408   : > { %v2582_v52 = vadd.f32 %v4535_v26, %v2371_v55  ;;  %v2779_v22 = vpop.permute.xlu2 %2778  ;;  %v1825_v31 = vadd.f32 %v1787_v59, %v4542_v18 }
 0x40a   : > { %v2710_v45 = vadd.f32 %v2671_v12, %v2582_v52 }
 0x40c   : > { %v2814_v35 = vadd.f32 %v2775_v0, %v2710_v45 }
 0x40e   : > { %v2834_v21 = vadd.f32 %v4499_v40, %v2814_v35 }
 0x40f   : > { %v1892_v27 = vpop.permute.xlu1 %1891  ;;  %v2334_v47 = vpop.permute.xlu0 %2333 }
 0x410   : > { %v2850_v60 = vpack.c.bf16 %v2834_v21, %v2834_v21  ;;  %v1930_v25 = vadd.f32 %v1892_v27, %v1825_v31  ;;  %v1791_v37 = vpop.permute.xlu2 %1790  ;;  %v2922_v45 = vmul.f32 %v2834_v21, %v2834_v21 }
 0x411   : > { %v1827_v12 = vadd.f32 %v1791_v37, %v4644_v62 }
 0x412   : > { %2867 = vst.msk [vmem:[%s3823_s23 + $0x20] sm:$0xf] %vm762_vm2, %v2850_v60  ;;  %v2140_v13 = vadd.f32 %v4565_v51, %v1930_v25  ;;  %v2587_v51 = vadd.f32 %v4619_v4, %v4797_v54  ;;  %v2945_v31 = vsel %vm1593_vm3, %v2922_v45, 0.0 }
 0x414   : > { %v2268_v28 = vadd.f32 %v2230_v17, %v2140_v13 }
 0x416   : > { %v2372_v7 = vadd.f32 %v2334_v47, %v2268_v28 }
 0x417   : > { %v2673_v26 = vpop.permute.xlu0 %2672  ;;  %v1789_v23 = vpop.permute.xlu1 %1788 }
 0x418   : > { %v2681_v24 = vpop.permute.xlu2 %2680  ;;  %v2583_v2 = vadd.f32 %v4576_v48, %v2372_v7  ;;  %v1826_v18 = vadd.f32 %v1789_v23, %v4609_v29 }
 0x419   : > { %v2715_v48 = vadd.f32 %v2681_v24, %v2587_v51 }
 0x41a   : > { %v2711_v14 = vadd.f32 %v2673_v26, %v2583_v2  ;;  %v1931_v61 = vadd.f32 %v1894_v15, %v1826_v18  ;;  %v2946_v26 = vadd.f32 %v2945_v31, %v4851_v42 }
 0x41c   : > { %v2141_v17 = vadd.f32 %v4657_v50, %v1931_v61 }
 0x41f   : > { %v2777_v38 = vpop.permute.xlu0 %2776  ;;  %v2336_v5 = vpop.permute.xlu1 %2335 }
 0x420   : > { %v2815_v1 = vadd.f32 %v2777_v38, %v2711_v14  ;;  %v2338_v33 = vpop.permute.xlu2 %2337 }
 0x422   : > { %v2835_v39 = vadd.f32 %v4499_v40, %v2815_v1 }
 0x424   : > { %v2851_v41 = vpack.c.bf16 %v2835_v39, %v2835_v39  ;;  %v2923_v35 = vmul.f32 %v2835_v39, %v2835_v39 }
 0x426   : > { %2868 = vst.msk [vmem:[%s3823_s23 + $0x24] sm:$0xf] %vm762_vm2, %v2851_v41  ;;  %v2947_v28 = vsel %vm1593_vm3, %v2923_v35, 0.0 }
 0x427   : > { %v2232_v46 = vpop.permute.xlu0 %2231  ;;  %v2683_v57 = vpop.permute.xlu1 %2682  ;;  %v2948_v2 = vadd.f32 %v2947_v28, %v2946_v26 }
 0x428   : > { %v2269_v29 = vadd.f32 %v2232_v46, %v2141_v17  ;;  %v2785_v56 = vpop.permute.xlu2 %2784 }
 0x429   : > { %v2819_v30 = vadd.f32 %v2785_v56, %v2715_v48 }
 0x42a   : > { %v2373_v63 = vadd.f32 %v2336_v5, %v2269_v29 }
 0x42b   : > { %v2839_v15 = vadd.f32 %v4499_v40, %v2819_v30 }
 0x42c   : > { %v2584_v9 = vadd.f32 %v4628_v10, %v2373_v63 }
 0x42d   : > { %v2855_v58 = vpack.c.bf16 %v2839_v15, %v2839_v15  ;;  %v2927_v51 = vmul.f32 %v2839_v15, %v2839_v15  ;;  %v2900_v56 = vsel %vm1593_vm3, %v2839_v15, 0.0 }
 0x42e   : > { %v2712_v4 = vadd.f32 %v2675_v36, %v2584_v9  ;;  %v2890_v36 = vsel %vm1593_vm3, %v2834_v21, 0.0 }
 0x42f   : > { %2872 = vst.msk [vmem:[%s3823_s23 + $0x34] sm:$0xf] %vm762_vm2, %v2855_v58  ;;  %v2234_v54 = vpop.permute.xlu1 %2233  ;;  %v1896_v50 = vpop.permute.xlu0 %1895  ;;  %v2891_v25 = vadd.f32 %v2890_v36, %v4845_v19  ;;  %v2588_v19 = vadd.f32 %v4677_v32, %v4828_v43  ;;  %v2955_v58 = vsel %vm1593_vm3, %v2927_v51, 0.0 }
 0x430   : > { %v2816_v44 = vadd.f32 %v2779_v22, %v2712_v4  ;;  %v1932_v16 = vadd.f32 %v1896_v50, %v1827_v12  ;;  %v2586_v22 = vadd.f32 %v4586_v3, %v4751_v8 }
 0x431   : > { %v2716_v41 = vadd.f32 %v2683_v57, %v2588_v19  ;;  %v2789_v57 = vpop.permute.xlu2 %2788 }
 0x432   : > { %v2836_v53 = vadd.f32 %v4499_v40, %v2816_v44  ;;  %v2142_v6 = vadd.f32 %v4690_v20, %v1932_v16  ;;  %v2892_v20 = vsel %vm1593_vm3, %v2835_v39, 0.0  ;;  %v2589_v39 = vadd.f32 %v4709_v49, %v4841_v34 }
 0x433   : > { %v2893_v3 = vadd.f32 %v2892_v20, %v2891_v25 }
 0x434   : > { %v2852_v55 = vpack.c.bf16 %v2836_v53, %v2836_v53  ;;  %v2270_v0 = vadd.f32 %v2234_v54, %v2142_v6  ;;  %v2924_v60 = vmul.f32 %v2836_v53, %v2836_v53 }
 0x436   : > { %2869 = vst.msk [vmem:[%s3823_s23 + $0x28] sm:$0xf] %vm762_vm2, %v2852_v55  ;;  %v2374_v59 = vadd.f32 %v2338_v33, %v2270_v0  ;;  %v2949_v8 = vsel %vm1593_vm3, %v2924_v60, 0.0 }
 0x437   : > { %v2677_v10 = vpop.permute.xlu1 %2676  ;;  %v2679_v52 = vpop.permute.xlu0 %2678  ;;  %v2950_v42 = vadd.f32 %v2949_v8, %v2948_v2 }
 0x438   : > { %v2585_v62 = vadd.f32 %v4661_v11, %v2374_v59  ;;  %v2714_v47 = vadd.f32 %v2679_v52, %v2586_v22  ;;  %v2894_v11 = vsel %vm1593_vm3, %v2836_v53, 0.0 }
 0x439   : > { %v2895_v14 = vadd.f32 %v2894_v11, %v2893_v3 }
 0x43a   : > { %v2713_v27 = vadd.f32 %v2677_v10, %v2585_v62 }
 0x43f   : > { %v2781_v37 = vpop.permute.xlu1 %2780  ;;  %v2783_v13 = vpop.permute.xlu0 %2782 }
 0x440   : > { %v2817_v21 = vadd.f32 %v2781_v37, %v2713_v27  ;;  %v2818_v7 = vadd.f32 %v2783_v13, %v2714_v47 }
 0x442   : > { %v2837_v23 = vadd.f32 %v4499_v40, %v2817_v21  ;;  %v2838_v24 = vadd.f32 %v4499_v40, %v2818_v7 }
 0x444   : > { %v2853_v18 = vpack.c.bf16 %v2837_v23, %v2837_v23  ;;  %v2896_v38 = vsel %vm1593_vm3, %v2837_v23, 0.0  ;;  %v2925_v5 = vmul.f32 %v2837_v23, %v2837_v23  ;;  %v2854_v1 = vpack.c.bf16 %v2838_v24, %v2838_v24 }
 0x445   : > { %v2897_v33 = vadd.f32 %v2896_v38, %v2895_v14  ;;  %v2926_v61 = vmul.f32 %v2838_v24, %v2838_v24  ;;  %v2898_v32 = vsel %vm1593_vm3, %v2838_v24, 0.0 }
 0x446   : > { %2870 = vst.msk [vmem:[%s3823_s23 + $0x2c] sm:$0xf] %vm762_vm2, %v2853_v18  ;;  %v2951_v17 = vsel %vm1593_vm3, %v2925_v5, 0.0 }
 0x447   : > { %v2952_v43 = vadd.f32 %v2951_v17, %v2950_v42  ;;  %2871 = vst.msk [vmem:[%s3823_s23 + $0x30] sm:$0xf] %vm762_vm2, %v2854_v1  ;;  %v2899_v48 = vadd.f32 %v2898_v32, %v2897_v33  ;;  %v2787_v46 = vpop.permute.xlu1 %2786  ;;  %v2685_v29 = vpop.permute.xlu0 %2684  ;;  %v2953_v30 = vsel %vm1593_vm3, %v2926_v61, 0.0 }
 0x448   : > { %v2820_v49 = vadd.f32 %v2787_v46, %v2716_v41  ;;  %v2717_v34 = vadd.f32 %v2685_v29, %v2589_v39 }
 0x449   : > { %v2954_v63 = vadd.f32 %v2953_v30, %v2952_v43  ;;  %v2901_v9 = vadd.f32 %v2900_v56, %v2899_v48 }
 0x44a   : > { %v2840_v12 = vadd.f32 %v4499_v40, %v2820_v49  ;;  %v2821_v4 = vadd.f32 %v2789_v57, %v2717_v34 }
 0x44b   : > { %v2956_v54 = vadd.f32 %v2955_v58, %v2954_v63 }
 0x44c   : > { %v2856_v50 = vpack.c.bf16 %v2840_v12, %v2840_v12  ;;  %v2902_v44 = vsel %vm1593_vm3, %v2840_v12, 0.0  ;;  %v2928_v16 = vmul.f32 %v2840_v12, %v2840_v12  ;;  %v2841_v15 = vadd.f32 %v4499_v40, %v2821_v4 }
 0x44d   : > { %v2903_v53 = vadd.f32 %v2902_v44, %v2901_v9 }
 0x44e   : > { %2873 = vst.msk [vmem:[%s3823_s23 + $0x38] sm:$0xf] %vm762_vm2, %v2856_v50  ;;  %v2957_v6 = vsel %vm1593_vm3, %v2928_v16, 0.0  ;;  %v2857_v55 = vpack.c.bf16 %v2841_v15, %v2841_v15  ;;  %v2904_v0 = vsel %vm1593_vm3, %v2841_v15, 0.0  ;;  %v2929_v59 = vmul.f32 %v2841_v15, %v2841_v15 }
 0x44f   : > { %v2958_v10 = vadd.f32 %v2957_v6, %v2956_v54  ;;  %v2905_v52 = vadd.f32 %v2904_v0, %v2903_v53 }
 0x450   : > { %2874 = vst.msk [vmem:[%s3823_s23 + $0x3c] sm:$0xf] %vm762_vm2, %v2857_v55  ;;  %v2959_v45 = vsel %vm1593_vm3, %v2929_v59, 0.0 }
 0x451   : > { %v2906_v62 = vrot.slane %v2905_v52, 4  ;;  %v2960_v36 = vadd.f32 %v2959_v45, %v2958_v10 }
 0x453   : > { %v2907_v40 = vadd.f32 %v2906_v62, %v2905_v52  ;;  %v2961_v35 = vrot.slane %v2960_v36, 4 }
 0x455   : > { %v2908_v22 = vrot.slane %v2907_v40, 2  ;;  %v2962_v31 = vadd.f32 %v2961_v35, %v2960_v36 }
 0x457   : > { %v2909_v20 = vadd.f32 %v2908_v22, %v2907_v40  ;;  %v2963_v27 = vrot.slane %v2962_v31, 2 }
 0x459   : > { %v2910_v47 = vrot.slane %v2909_v20, 1  ;;  %v2964_v60 = vadd.f32 %v2963_v27, %v2962_v31 }
 0x45b   : > { %v2911_v25 = vadd.f32 %v2910_v47, %v2909_v20  ;;  %v2965_v37 = vrot.slane %v2964_v60, 1 }
 0x45d   : > { %2913 = vst.msk [vmem:[%s720_s26] sm:$0x1] %vm729_vm0, %v2911_v25  ;;  %v2966_v13 = vadd.f32 %v2965_v37, %v2964_v60 }
 0x45f   : > { %2967 = vst.msk [vmem:[%s727_s11] sm:$0x1] %vm729_vm0, %v2966_v13 }
 0x460 PF: > { %s21_s17 = sadd.s32 1, %s3654_s17   ;;  %s4977_s13 = smov %s3646_s15 }
 0x461   : > { %p18_p1 = scmp.ge.s32.totalorder %s21_s17, 6   ;;  %s4978_s14 = smov %s3650_s16 }
 0x462   : > { %s4979_s15 = smov %s4982_s18  ;;  %s4980_s16 = smov %s4986_s19 }
 0x463   :  { %20 = sbr.rel (!%p18_p1) target bundleno = 4 (0x4), region = 161 }

</bundles_post_ra>
